<compile_context>
chip_gen: v5e
topology: v5e:2x2
jax: 0.10.0
libtpu: 0.0.40
codegen_flags: <defaults>
</compile_context>

<pallas_src>
import functools

import jax
import jax.numpy as jnp
from jax.experimental import pallas as pl
from jax.experimental.pallas import tpu as pltpu

VMEM = pltpu.MemorySpace.VMEM
SMEM = pltpu.MemorySpace.SMEM


def _cparams(sem):
    return pltpu.CompilerParams(dimension_semantics=sem,
                                vmem_limit_bytes=48 * 1024 * 1024)


def _pick_block_b(B):
    """Batch rows folded per grid step (rows become the matmul M dimension)."""
    if B <= 16:
        return B
    for bb in (16, 8):
        if B % bb == 0:
            return bb
    return B


def _pick_block_v(V):
    """Vocab tile for the decoder (online LSE across vocab blocks)."""
    if V <= 4096:
        return V
    for bv in (4096, 2048, 1024, 512, 256, 128):
        if V % bv == 0:
            return bv
    return V


# ---------------------------------------------------------------------------
# In-kernel helpers
# ---------------------------------------------------------------------------
def _relu(x):
    return jnp.maximum(x, 0.0)


def _softplus(x):
    # torch.nn.Softplus(beta=1, threshold=20). log(1+exp(x)) is used instead of
    # log1p: the subsequent clamp of std to [1e-3, 5] makes the difference
    # numerically immaterial (softplus < 1e-3 is clamped anyway).
    return jnp.where(x > 20.0, x, jnp.log(1.0 + jnp.exp(jnp.minimum(x, 20.0))))


def _causal_shift(x, t_pos, shift, T):
    """y[row] = x[row - shift] within each length-T sequence, 0 in the causal pad.
    x: (N, C) flat rows (batch-major, T rows per sequence); shift is static.
    The roll crosses sequence boundaries; those rows are masked to zero."""
    if shift == 0:
        return x
    if shift >= T:
        return jnp.zeros_like(x)
    rolled = pltpu.roll(x, shift=shift, axis=0)            # XLU sublane rotate
    return jnp.where(t_pos < shift, 0.0, rolled)


# ---------------------------------------------------------------------------
# Kernel 1: fused TemporalConvNet (all TemporalBlocks, activation stays in VMEM).
# rows (block_B*T, E) -> d_all rows (L, block_B*T, C)
# ---------------------------------------------------------------------------
def _tcn_kernel(*refs, L, K, T, has_ds):
    if has_ds:
        (t_ref, x_ref, w1_0, b1_0, w2_0, b2_0, wd_0, bd_0,
         w1s, b1s, w2s, b2s, d_ref) = refs
    else:
        (t_ref, x_ref, w1_0, b1_0, w2_0, b2_0,
         w1s, b1s, w2s, b2s, d_ref) = refs
        wd_0 = bd_0 = None

    t_pos = t_ref[...]                                     # (N, 1) int32 position in sequence
    h = x_ref[...].astype(jnp.float32)                     # (N, Cin)

    def conv(inp, w_get, bias, dil):
        # Dilated causal Conv1d(pad=(K-1)*dil) + Chomp1d as K accumulated matmuls.
        acc = None
        for j in range(K):
            shift = (K - 1 - j) * dil
            xs = _causal_shift(inp, t_pos, shift, T)
            p = jnp.dot(xs.astype(jnp.bfloat16), w_get(j),
                        preferred_element_type=jnp.float32)
            acc = p if acc is None else acc + p
        return acc + bias

    for l in range(L):
        dil = 2 ** l
        if l == 0:
            w1_get = lambda j: w1_0[j]
            w2_get = lambda j: w2_0[j]
            b1, b2 = b1_0[...], b2_0[...]
        else:
            base = (l - 1) * K
            w1_get = lambda j, base=base: w1s[base + j]
            w2_get = lambda j, base=base: w2s[base + j]
            b1, b2 = b1s[l - 1], b2s[l - 1]

        h1 = _relu(conv(h, w1_get, b1, dil))
        out = _relu(conv(h1, w2_get, b2, dil))
        if l == 0 and has_ds:                              # 1x1 downsample conv on residual
            res = jnp.dot(h.astype(jnp.bfloat16), wd_0[...],
                          preferred_element_type=jnp.float32) + bd_0[...]
        else:                                              # identity (Cin == Cout)
            res = h
        h = _relu(out + res)
        d_ref[l] = h.astype(d_ref.dtype)


def fused_tcn(emb_flat, t_pos, tp, *, ksize, T):
    NT, E = emb_flat.shape
    B = NT // T
    C = tp["w1_0"].shape[-1]
    L = tp["w1s"].shape[0] // ksize + 1
    has_ds = tp["wd_0"] is not None
    bb = _pick_block_b(B)
    N = bb * T

    row_spec = pl.BlockSpec((N, 1), lambda b: (b, 0))
    x_spec = pl.BlockSpec((N, E), lambda b: (b, 0))
    w_spec = pl.BlockSpec(memory_space=VMEM)               # weights: resident, untiled
    d_spec = pl.BlockSpec((L, N, C), lambda b: (0, b, 0))

    inputs = [t_pos, emb_flat, tp["w1_0"], tp["b1_0"], tp["w2_0"], tp["b2_0"]]
    in_specs = [row_spec, x_spec] + [w_spec] * 4
    if has_ds:
        inputs += [tp["wd_0"], tp["bd_0"]]
        in_specs += [w_spec] * 2
    inputs += [tp["w1s"], tp["b1s"], tp["w2s"], tp["b2s"]]
    in_specs += [w_spec] * 4

    kern = functools.partial(_tcn_kernel, L=L, K=ksize, T=T, has_ds=has_ds)
    return pl.pallas_call(
        kern,
        grid=(B // bb,),
        out_shape=jax.ShapeDtypeStruct((L, NT, C), jnp.bfloat16),
        in_specs=in_specs,
        out_specs=d_spec,
        compiler_params=_cparams(("parallel",)),
    )(*inputs)


# ---------------------------------------------------------------------------
# Kernel 2: fused Generative + Inference EncodeBlock stacks + KL.
# Prior/posterior mean/std stay in VMEM; only all_z and per-row KL leave.
# ---------------------------------------------------------------------------
def _encoders_kl_kernel(t_ref, len_ref, d_ref, eps_ref,
                        w1, b1, w2, b2, w3, b3, wm, bm,
                        z_ref, kl_ref, *, L, C):
    N = d_ref.shape[1]
    t_pos = t_ref[...]                                     # (N, 1) int32
    len_row = len_ref[...]                                 # (N, 1) int32

    def run_net(net):                                      # net 0: generative, 1: inference
        z = None
        means, stds = [], []
        for l in range(L):
            idx = net * L + l
            din = d_ref[L - 1 if l == 0 else l - 1]        # (N, C) bf16
            e = _relu(jnp.dot(din, w1[idx],
                              preferred_element_type=jnp.float32) + b1[idx])
            if l > 0:
                e = e + _relu(jnp.dot(z.astype(jnp.bfloat16), w2[idx],
                                      preferred_element_type=jnp.float32) + b2[idx])
            eb = e.astype(jnp.bfloat16)
            mean = jnp.dot(eb, wm[idx], preferred_element_type=jnp.float32) + bm[idx]
            pre = jnp.dot(eb, w3[idx], preferred_element_type=jnp.float32) + b3[idx]
            std = jnp.clip(_softplus(pre), 0.001, 5.0)
            # TODO(synk): generate eps in-kernel with pltpu.prng_seed + stateful_normal
            # to drop the (2L, B*T, C) eps HBM read entirely.
            z = eps_ref[idx].astype(jnp.float32) * std + mean
            if net == 0:
                z_ref[l] = z.astype(z_ref.dtype)
            means.append(mean)
            stds.append(std)
        return means, stds

    prior_mean, prior_std = run_net(0)
    post_mean, post_std = run_net(1)

    # KL(prior[t] || posterior[t+1]) summed over levels & channels, per row.
    total = jnp.zeros((N, 1), jnp.float32)
    for l in range(L):
        m1, s1 = prior_mean[l], prior_std[l]
        m2 = pltpu.roll(post_mean[l], shift=N - 1, axis=0)  # row t -> row t+1 (wrap masked)
        s2 = pltpu.roll(post_std[l], shift=N - 1, axis=0)
        inv_s2sq = pl.reciprocal(s2 * s2, approx=True)
        term = (2.0 * jnp.log(s2 * pl.reciprocal(s1, approx=True))
                + (s1 * s1 + (m1 - m2) ** 2) * inv_s2sq - 1.0)
        total = total + jnp.sum(term, axis=-1, keepdims=True)

    valid = t_pos < (len_row - 1)                          # reference: t in [0, length-1)
    denom = (L * C * jnp.maximum(len_row - 1, 1)).astype(jnp.float32)
    kl_ref[...] = jnp.where(valid, total / denom, 0.0)     # per-batch mean emitted per row


def encoders_and_kl(d_all, eps, t_pos, len_row, enc_p, *, T):
    L, NT, C = d_all.shape
    B = NT // T
    bb = _pick_block_b(B)
    N = bb * T

    d_spec = pl.BlockSpec((L, N, C), lambda b: (0, b, 0))
    e_spec = pl.BlockSpec((2 * L, N, C), lambda b: (0, b, 0))
    row_spec = pl.BlockSpec((N, 1), lambda b: (b, 0))
    w_spec = pl.BlockSpec(memory_space=VMEM)

    kern = functools.partial(_encoders_kl_kernel, L=L, C=C)
    all_z, kl_rows = pl.pallas_call(
        kern,
        grid=(B // bb,),
        out_shape=(jax.ShapeDtypeStruct((L, NT, C), jnp.bfloat16),
                   jax.ShapeDtypeStruct((NT, 1), jnp.float32)),
        in_specs=[row_spec, row_spec, d_spec, e_spec] + [w_spec] * 8,
        out_specs=(d_spec, row_spec),
        compiler_params=_cparams(("parallel",)),
    )(t_pos, len_row, d_all, eps,
      enc_p["w1"], enc_p["b1"], enc_p["w2"], enc_p["b2"],
      enc_p["w3"], enc_p["b3"], enc_p["wm"], enc_p["bm"])
    return all_z, kl_rows


# ---------------------------------------------------------------------------
# Kernel 3: decoder (Linear over concatenated z == sum of per-level matmuls)
# + CrossEntropy(ignore_index=0, sum) restricted to t < max(length)+1.
# Tiled over a vocab grid axis with an online-LSE scratch.
# ---------------------------------------------------------------------------
def _decoder_nll_kernel(t_ref, maxlen_ref, z_ref, w_ref, b_ref, tgt_ref,
                        logp_ref, nll_ref, m_s, s_s, p_s, *, L):
    v = pl.program_id(1)
    nv = pl.num_programs(1)
    N, block_V = logp_ref.shape

    @pl.when(v == 0)
    def _():
        m_s[...] = jnp.full(m_s.shape, -jnp.inf, m_s.dtype)
        s_s[...] = jnp.zeros(s_s.shape, s_s.dtype)
        p_s[...] = jnp.zeros(p_s.shape, p_s.dtype)

    acc = jnp.zeros((N, block_V), jnp.float32)
    for l in range(L):
        acc = acc + jnp.dot(z_ref[l], w_ref[l], preferred_element_type=jnp.float32)
    logits = acc + b_ref[...]
    logp_ref[...] = logits.astype(logp_ref.dtype)          # reference: raw decoder output

    # Note: out-of-range targets silently contribute picked-logit 0 (as before).
    tgt = tgt_ref[...]                                     # (N, 1) int32
    v_iota = jax.lax.broadcasted_iota(jnp.int32, (N, block_V), 1) + v * block_V
    p_s[...] += jnp.sum(jnp.where(v_iota == tgt, logits, 0.0), axis=-1, keepdims=True)

    m_prev = m_s[...]
    m_new = jnp.maximum(m_prev, jnp.max(logits, axis=-1, keepdims=True))
    s_s[...] = (s_s[...] * jnp.exp(m_prev - m_new)
                + jnp.sum(jnp.exp(logits - m_new), axis=-1, keepdims=True))
    m_s[...] = m_new

    @pl.when(v == nv - 1)
    def _():
        lse = m_s[...] + jnp.log(s_s[...])
        mask = (tgt != 0) & (t_ref[...] < maxlen_ref[0])   # ignore_index=0, t < max(len)+1
        nll_ref[...] = jnp.where(mask, lse - p_s[...], 0.0)


def decoder_nll(all_z, dec_w, dec_b, target_rows, t_pos, maxlen, *, T):
    L, NT, C = all_z.shape
    V = dec_w.shape[-1]
    B = NT // T
    bb = _pick_block_b(B)
    bv = _pick_block_v(V)
    N = bb * T

    z_spec = pl.BlockSpec((L, N, C), lambda b, v: (0, b, 0))
    w_spec = pl.BlockSpec((L, C, bv), lambda b, v: (0, 0, v))
    bias_spec = pl.BlockSpec((1, bv), lambda b, v: (0, v))
    row_spec = pl.BlockSpec((N, 1), lambda b, v: (b, 0))
    logp_spec = pl.BlockSpec((N, bv), lambda b, v: (b, v))

    kern = functools.partial(_decoder_nll_kernel, L=L)
    logp_flat, nll_rows = pl.pallas_call(
        kern,
        grid=(B // bb, V // bv),
        out_shape=(jax.ShapeDtypeStruct((NT, V), jnp.float32),
                   jax.ShapeDtypeStruct((NT, 1), jnp.float32)),
        in_specs=[row_spec, pl.BlockSpec(memory_space=SMEM),
                  z_spec, w_spec, bias_spec, row_spec],
        out_specs=(logp_spec, row_spec),
        scratch_shapes=[pltpu.VMEM((N, 1), jnp.float32),
                        pltpu.VMEM((N, 1), jnp.float32),
                        pltpu.VMEM((N, 1), jnp.float32)],
        compiler_params=_cparams(("parallel", "arbitrary")),
    )(t_pos, maxlen, all_z, dec_w, dec_b, target_rows)
    return logp_flat, nll_rows


# ---------------------------------------------------------------------------
# Parameters (deterministic, synthetic) and full forward.
# ---------------------------------------------------------------------------
def init_params(key, vocab_size, embed_size, num_channels, ksize):
    C = num_channels[0]
    L = len(num_channels)
    assert all(c == C for c in num_channels), "reference stacks d => equal channels"
    assert L >= 2
    E, K, V = embed_size, ksize, vocab_size
    bf = jnp.bfloat16

    keys = iter(jax.random.split(key, 64))
    nk = lambda: next(keys)
    u = lambda shape, r: jax.random.uniform(nk(), shape, jnp.float32, -r, r)
    n = lambda shape, s: s * jax.random.normal(nk(), shape, jnp.float32)
    zeros = lambda shape: jnp.zeros(shape, jnp.float32)

    emb = u((V, E), 0.1)                                   # encoder.weight

    tcn = {
        # conv weights flat over (tap, Cin) so the kernel indexes one leading axis
        "w1_0": n((K, E, C), 0.01).astype(bf), "b1_0": zeros((1, C)),
        "w2_0": n((K, C, C), 0.01).astype(bf), "b2_0": zeros((1, C)),
        "wd_0": (n((E, C), 0.01).astype(bf) if E != C else None),
        "bd_0": (zeros((1, C)) if E != C else None),
        "w1s": n(((L - 1) * K, C, C), 0.01).astype(bf), "b1s": zeros((L - 1, 1, C)),
        "w2s": n(((L - 1) * K, C, C), 0.01).astype(bf), "b2s": zeros((L - 1, 1, C)),
    }

    # generative (net 0) and inference (net 1) EncodeBlock params stacked: (2*L, ...)
    enc = {"w1": u((2 * L, C, C), 0.01).astype(bf), "b1": zeros((2 * L, 1, C)),
           "w2": u((2 * L, C, C), 0.01).astype(bf), "b2": zeros((2 * L, 1, C)),
           "w3": u((2 * L, C, C), 0.01).astype(bf), "b3": zeros((2 * L, 1, C)),
           "wm": u((2 * L, C, C), 0.01).astype(bf), "bm": zeros((2 * L, 1, C))}

    return {"emb": emb, "tcn": tcn, "enc": enc,
            "dec_w": u((L, C, V), 0.1).astype(bf),         # Linear(L*C, V) split per level
            "dec_b": zeros((1, V))}


def stcn_forward(params, x_tokens, length, target, eps, *, ksize):
    B, T = x_tokens.shape
    # Embedding gather (nn.Embedding) + dropouts (eval => identity): XLA glue.
    emb = jnp.take(params["emb"], x_tokens.reshape(-1), axis=0).astype(jnp.bfloat16)

    # Per-row helpers shared by all kernels (position in sequence / its length).
    t_pos = jnp.tile(jnp.arange(T, dtype=jnp.int32), B).reshape(B * T, 1)
    len_row = jnp.repeat(length.astype(jnp.int32), T).reshape(B * T, 1)

    d_all = fused_tcn(emb, t_pos, params["tcn"], ksize=ksize, T=T)   # (L, B*T, C) bf16

    all_z, kl_rows = encoders_and_kl(d_all, eps, t_pos, len_row, params["enc"], T=T)
    kl = 0.5 * jnp.sum(kl_rows)

    maxlen = (jnp.max(length) + 1).astype(jnp.int32).reshape(1)      # NLL uses length + 1
    target_rows = target.reshape(B * T, 1).astype(jnp.int32)
    logp_flat, nll_rows = decoder_nll(all_z, params["dec_w"], params["dec_b"],
                                      target_rows, t_pos, maxlen, T=T)
    nll = jnp.sum(nll_rows)
    logp = logp_flat.reshape(B, T, -1)
    return logp, nll, kl


if __name__ == "__main__":
    # Small shapes: batch=2, seq=8, embed=16, vocab=32, channels=[32, 32, 32], k=2.
    B, T, E, V = 2, 8, 16, 32
    num_channels = [32, 32, 32]
    ksize = 2
    L, C = len(num_channels), num_channels[0]

    key = jax.random.PRNGKey(0)
    pkey, xkey, tkey, ekey = jax.random.split(key, 4)
    params = init_params(pkey, V, E, num_channels, ksize)

    x = jax.random.randint(xkey, (B, T), 1, V, dtype=jnp.int32)       # token ids
    target = jax.random.randint(tkey, (B, T), 0, V, dtype=jnp.int32)  # 0 == ignore_index
    length = jnp.array([6, 5], dtype=jnp.int32)
    # eps ~ N(0,1): rows for the generative net (0..L-1) and inference net (L..2L-1).
    eps = jax.random.normal(ekey, (2 * L, B * T, C), jnp.float32).astype(jnp.bfloat16)

    fwd = jax.jit(functools.partial(stcn_forward, ksize=ksize))
    logp, nll, kl = fwd(params, x, length, target, eps)
    jax.block_until_ready((logp, nll, kl))
    assert logp.shape == (B, T, V) and nll.shape == () and kl.shape == ()
    print("KERNEL_OK")
</pallas_src>

<mosaic_0001>
module attributes {stable_mosaic.version = 11 : i64} {
  func.func @_tcn_kernel(%arg0: i32, %arg1: memref<16x1xi32, #tpu.memory_space<vmem>>, %arg2: memref<16x16xbf16, #tpu.memory_space<vmem>>, %arg3: memref<2x16x32xbf16, #tpu.memory_space<vmem>>, %arg4: memref<1x32xf32, #tpu.memory_space<vmem>>, %arg5: memref<2x32x32xbf16, #tpu.memory_space<vmem>>, %arg6: memref<1x32xf32, #tpu.memory_space<vmem>>, %arg7: memref<16x32xbf16, #tpu.memory_space<vmem>>, %arg8: memref<1x32xf32, #tpu.memory_space<vmem>>, %arg9: memref<4x32x32xbf16, #tpu.memory_space<vmem>>, %arg10: memref<2x1x32xf32, #tpu.memory_space<vmem>>, %arg11: memref<4x32x32xbf16, #tpu.memory_space<vmem>>, %arg12: memref<2x1x32xf32, #tpu.memory_space<vmem>>, %arg13: memref<3x16x32xbf16, #tpu.memory_space<vmem>>) attributes {dimension_semantics = [#tpu.dimension_semantics<parallel>], iteration_bounds = array<i64: 1>, scalar_prefetch = 0 : i64, scratch_operands = 0 : i64, tpu.core_type = #tpu.core_type<tc>, window_params = [{transform_indices = @transform_0, window_bounds = array<i64: 16, 1>}, {transform_indices = @transform_1, window_bounds = array<i64: 16, 16>}, {pipeline_mode = #tpu.pipeline_mode<synchronous>, transform_indices = @transform_2, window_bounds = array<i64: 2, 16, 32>}, {pipeline_mode = #tpu.pipeline_mode<synchronous>, transform_indices = @transform_3, window_bounds = array<i64: 1, 32>}, {pipeline_mode = #tpu.pipeline_mode<synchronous>, transform_indices = @transform_4, window_bounds = array<i64: 2, 32, 32>}, {pipeline_mode = #tpu.pipeline_mode<synchronous>, transform_indices = @transform_5, window_bounds = array<i64: 1, 32>}, {pipeline_mode = #tpu.pipeline_mode<synchronous>, transform_indices = @transform_6, window_bounds = array<i64: 16, 32>}, {pipeline_mode = #tpu.pipeline_mode<synchronous>, transform_indices = @transform_7, window_bounds = array<i64: 1, 32>}, {pipeline_mode = #tpu.pipeline_mode<synchronous>, transform_indices = @transform_8, window_bounds = array<i64: 4, 32, 32>}, {pipeline_mode = #tpu.pipeline_mode<synchronous>, transform_indices = @transform_9, window_bounds = array<i64: 2, 1, 32>}, {pipeline_mode = #tpu.pipeline_mode<synchronous>, transform_indices = @transform_10, window_bounds = array<i64: 4, 32, 32>}, {pipeline_mode = #tpu.pipeline_mode<synchronous>, transform_indices = @transform_11, window_bounds = array<i64: 2, 1, 32>}, {transform_indices = @transform_12, window_bounds = array<i64: 3, 16, 32>}]} {
    %c0 = arith.constant 0 : index
    %c0_0 = arith.constant 0 : index
    %0 = vector.load %arg1[%c0, %c0_0] : memref<16x1xi32, #tpu.memory_space<vmem>>, vector<16x1xi32>
    %c0_1 = arith.constant 0 : index
    %c0_2 = arith.constant 0 : index
    %1 = vector.load %arg2[%c0_1, %c0_2] : memref<16x16xbf16, #tpu.memory_space<vmem>>, vector<16x16xbf16>
    %2 = arith.extf %1 : vector<16x16xbf16> to vector<16x16xf32>
    %c0_3 = arith.constant 0 : index
    %c0_4 = arith.constant 0 : index
    %3 = vector.load %arg4[%c0_3, %c0_4] : memref<1x32xf32, #tpu.memory_space<vmem>>, vector<1x32xf32>
    %c0_5 = arith.constant 0 : index
    %c0_6 = arith.constant 0 : index
    %4 = vector.load %arg6[%c0_5, %c0_6] : memref<1x32xf32, #tpu.memory_space<vmem>>, vector<1x32xf32>
    %c1_i32 = arith.constant 1 : i32
    %5 = tpu.dynamic_rotate %2 by %c1_i32 dim 0 : vector<16x16xf32>, i32 -> vector<16x16xf32>
    %c1_i32_7 = arith.constant 1 : i32
    %6 = vector.broadcast %c1_i32_7 : i32 to vector<16x1xi32>
    %7 = arith.cmpi slt, %0, %6 : vector<16x1xi32>
    %cst = arith.constant 0.000000e+00 : f32
    %8 = vector.shape_cast %7 : vector<16x1xi1> to vector<16x1xi1>
    %9 = vector.broadcast %8 : vector<16x1xi1> to vector<16x16xi1>
    %10 = vector.broadcast %cst : f32 to vector<16x16xf32>
    %11 = arith.select %9, %10, %5 : vector<16x16xi1>, vector<16x16xf32>
    %12 = arith.truncf %11 : vector<16x16xf32> to vector<16x16xbf16>
    %c0_8 = arith.constant 0 : index
    %c0_9 = arith.constant 0 : index
    %c0_10 = arith.constant 0 : index
    %13 = vector.load %arg3[%c0_8, %c0_9, %c0_10] : memref<2x16x32xbf16, #tpu.memory_space<vmem>>, vector<1x16x32xbf16>
    %14 = vector.shape_cast %13 : vector<1x16x32xbf16> to vector<16x32xbf16>
    %cst_11 = arith.constant dense<0.000000e+00> : vector<16x32xf32>
    %15 = tpu.matmul %12, %14, %cst_11 {dimension_numbers = #tpu.dot_dimension_numbers<[1], [0], [0], [1], [0, 0, 1, 1], [], []>} : vector<16x16xbf16>, vector<16x32xbf16>, vector<16x32xf32> -> vector<16x32xf32>
    %16 = arith.truncf %2 : vector<16x16xf32> to vector<16x16xbf16>
    %c1 = arith.constant 1 : index
    %c0_12 = arith.constant 0 : index
    %c0_13 = arith.constant 0 : index
    %17 = vector.load %arg3[%c1, %c0_12, %c0_13] : memref<2x16x32xbf16, #tpu.memory_space<vmem>>, vector<1x16x32xbf16>
    %18 = vector.shape_cast %17 : vector<1x16x32xbf16> to vector<16x32xbf16>
    %cst_14 = arith.constant dense<0.000000e+00> : vector<16x32xf32>
    %19 = tpu.matmul %16, %18, %cst_14 {dimension_numbers = #tpu.dot_dimension_numbers<[1], [0], [0], [1], [0, 0, 1, 1], [], []>} : vector<16x16xbf16>, vector<16x32xbf16>, vector<16x32xf32> -> vector<16x32xf32>
    %20 = arith.addf %15, %19 : vector<16x32xf32>
    %21 = vector.broadcast %3 : vector<1x32xf32> to vector<16x32xf32>
    %22 = arith.addf %20, %21 : vector<16x32xf32>
    %cst_15 = arith.constant 0.000000e+00 : f32
    %23 = vector.broadcast %cst_15 : f32 to vector<16x32xf32>
    %24 = arith.maximumf %22, %23 : vector<16x32xf32>
    %c1_i32_16 = arith.constant 1 : i32
    %25 = tpu.dynamic_rotate %24 by %c1_i32_16 dim 0 : vector<16x32xf32>, i32 -> vector<16x32xf32>
    %c1_i32_17 = arith.constant 1 : i32
    %26 = vector.broadcast %c1_i32_17 : i32 to vector<16x1xi32>
    %27 = arith.cmpi slt, %0, %26 : vector<16x1xi32>
    %cst_18 = arith.constant 0.000000e+00 : f32
    %28 = vector.shape_cast %27 : vector<16x1xi1> to vector<16x1xi1>
    %29 = vector.broadcast %28 : vector<16x1xi1> to vector<16x32xi1>
    %30 = vector.broadcast %cst_18 : f32 to vector<16x32xf32>
    %31 = arith.select %29, %30, %25 : vector<16x32xi1>, vector<16x32xf32>
    %32 = arith.truncf %31 : vector<16x32xf32> to vector<16x32xbf16>
    %c0_19 = arith.constant 0 : index
    %c0_20 = arith.constant 0 : index
    %c0_21 = arith.constant 0 : index
    %33 = vector.load %arg5[%c0_19, %c0_20, %c0_21] : memref<2x32x32xbf16, #tpu.memory_space<vmem>>, vector<1x32x32xbf16>
    %34 = vector.shape_cast %33 : vector<1x32x32xbf16> to vector<32x32xbf16>
    %cst_22 = arith.constant dense<0.000000e+00> : vector<16x32xf32>
    %35 = tpu.matmul %32, %34, %cst_22 {dimension_numbers = #tpu.dot_dimension_numbers<[1], [0], [0], [1], [0, 0, 1, 1], [], []>} : vector<16x32xbf16>, vector<32x32xbf16>, vector<16x32xf32> -> vector<16x32xf32>
    %36 = arith.truncf %24 : vector<16x32xf32> to vector<16x32xbf16>
    %c1_23 = arith.constant 1 : index
    %c0_24 = arith.constant 0 : index
    %c0_25 = arith.constant 0 : index
    %37 = vector.load %arg5[%c1_23, %c0_24, %c0_25] : memref<2x32x32xbf16, #tpu.memory_space<vmem>>, vector<1x32x32xbf16>
    %38 = vector.shape_cast %37 : vector<1x32x32xbf16> to vector<32x32xbf16>
    %cst_26 = arith.constant dense<0.000000e+00> : vector<16x32xf32>
    %39 = tpu.matmul %36, %38, %cst_26 {dimension_numbers = #tpu.dot_dimension_numbers<[1], [0], [0], [1], [0, 0, 1, 1], [], []>} : vector<16x32xbf16>, vector<32x32xbf16>, vector<16x32xf32> -> vector<16x32xf32>
    %40 = arith.addf %35, %39 : vector<16x32xf32>
    %41 = vector.broadcast %4 : vector<1x32xf32> to vector<16x32xf32>
    %42 = arith.addf %40, %41 : vector<16x32xf32>
    %cst_27 = arith.constant 0.000000e+00 : f32
    %43 = vector.broadcast %cst_27 : f32 to vector<16x32xf32>
    %44 = arith.maximumf %42, %43 : vector<16x32xf32>
    %45 = arith.truncf %2 : vector<16x16xf32> to vector<16x16xbf16>
    %c0_28 = arith.constant 0 : index
    %c0_29 = arith.constant 0 : index
    %46 = vector.load %arg7[%c0_28, %c0_29] : memref<16x32xbf16, #tpu.memory_space<vmem>>, vector<16x32xbf16>
    %cst_30 = arith.constant dense<0.000000e+00> : vector<16x32xf32>
    %47 = tpu.matmul %45, %46, %cst_30 {dimension_numbers = #tpu.dot_dimension_numbers<[1], [0], [0], [1], [0, 0, 1, 1], [], []>} : vector<16x16xbf16>, vector<16x32xbf16>, vector<16x32xf32> -> vector<16x32xf32>
    %c0_31 = arith.constant 0 : index
    %c0_32 = arith.constant 0 : index
    %48 = vector.load %arg8[%c0_31, %c0_32] : memref<1x32xf32, #tpu.memory_space<vmem>>, vector<1x32xf32>
    %49 = vector.broadcast %48 : vector<1x32xf32> to vector<16x32xf32>
    %50 = arith.addf %47, %49 : vector<16x32xf32>
    %51 = arith.addf %44, %50 : vector<16x32xf32>
    %cst_33 = arith.constant 0.000000e+00 : f32
    %52 = vector.broadcast %cst_33 : f32 to vector<16x32xf32>
    %53 = arith.maximumf %51, %52 : vector<16x32xf32>
    %54 = arith.truncf %53 : vector<16x32xf32> to vector<16x32xbf16>
    %c0_34 = arith.constant 0 : index
    %c0_35 = arith.constant 0 : index
    %c0_36 = arith.constant 0 : index
    %55 = vector.load %arg13[%c0_34, %c0_35, %c0_36] : memref<3x16x32xbf16, #tpu.memory_space<vmem>>, vector<1x16x32xbf16>
    %56 = vector.shape_cast %55 : vector<1x16x32xbf16> to vector<16x32xbf16>
    %57 = vector.shape_cast %54 : vector<16x32xbf16> to vector<1x16x32xbf16>
    tpu.vector_store %arg13[%c0_34, %c0_35, %c0_36], %57 {strides = array<i32>} : memref<3x16x32xbf16, #tpu.memory_space<vmem>>, vector<1x16x32xbf16>,
    %c0_37 = arith.constant 0 : index
    %c0_38 = arith.constant 0 : index
    %c0_39 = arith.constant 0 : index
    %58 = vector.load %arg10[%c0_37, %c0_38, %c0_39] : memref<2x1x32xf32, #tpu.memory_space<vmem>>, vector<1x1x32xf32>
    %59 = vector.shape_cast %58 : vector<1x1x32xf32> to vector<1x32xf32>
    %c0_40 = arith.constant 0 : index
    %c0_41 = arith.constant 0 : index
    %c0_42 = arith.constant 0 : index
    %60 = vector.load %arg12[%c0_40, %c0_41, %c0_42] : memref<2x1x32xf32, #tpu.memory_space<vmem>>, vector<1x1x32xf32>
    %61 = vector.shape_cast %60 : vector<1x1x32xf32> to vector<1x32xf32>
    %c2_i32 = arith.constant 2 : i32
    %62 = tpu.dynamic_rotate %53 by %c2_i32 dim 0 : vector<16x32xf32>, i32 -> vector<16x32xf32>
    %c2_i32_43 = arith.constant 2 : i32
    %63 = vector.broadcast %c2_i32_43 : i32 to vector<16x1xi32>
    %64 = arith.cmpi slt, %0, %63 : vector<16x1xi32>
    %cst_44 = arith.constant 0.000000e+00 : f32
    %65 = vector.shape_cast %64 : vector<16x1xi1> to vector<16x1xi1>
    %66 = vector.broadcast %65 : vector<16x1xi1> to vector<16x32xi1>
    %67 = vector.broadcast %cst_44 : f32 to vector<16x32xf32>
    %68 = arith.select %66, %67, %62 : vector<16x32xi1>, vector<16x32xf32>
    %69 = arith.truncf %68 : vector<16x32xf32> to vector<16x32xbf16>
    %c0_45 = arith.constant 0 : index
    %c0_46 = arith.constant 0 : index
    %c0_47 = arith.constant 0 : index
    %70 = vector.load %arg9[%c0_45, %c0_46, %c0_47] : memref<4x32x32xbf16, #tpu.memory_space<vmem>>, vector<1x32x32xbf16>
    %71 = vector.shape_cast %70 : vector<1x32x32xbf16> to vector<32x32xbf16>
    %cst_48 = arith.constant dense<0.000000e+00> : vector<16x32xf32>
    %72 = tpu.matmul %69, %71, %cst_48 {dimension_numbers = #tpu.dot_dimension_numbers<[1], [0], [0], [1], [0, 0, 1, 1], [], []>} : vector<16x32xbf16>, vector<32x32xbf16>, vector<16x32xf32> -> vector<16x32xf32>
    %73 = arith.truncf %53 : vector<16x32xf32> to vector<16x32xbf16>
    %c1_49 = arith.constant 1 : index
    %c0_50 = arith.constant 0 : index
    %c0_51 = arith.constant 0 : index
    %74 = vector.load %arg9[%c1_49, %c0_50, %c0_51] : memref<4x32x32xbf16, #tpu.memory_space<vmem>>, vector<1x32x32xbf16>
    %75 = vector.shape_cast %74 : vector<1x32x32xbf16> to vector<32x32xbf16>
    %cst_52 = arith.constant dense<0.000000e+00> : vector<16x32xf32>
    %76 = tpu.matmul %73, %75, %cst_52 {dimension_numbers = #tpu.dot_dimension_numbers<[1], [0], [0], [1], [0, 0, 1, 1], [], []>} : vector<16x32xbf16>, vector<32x32xbf16>, vector<16x32xf32> -> vector<16x32xf32>
    %77 = arith.addf %72, %76 : vector<16x32xf32>
    %78 = vector.broadcast %59 : vector<1x32xf32> to vector<16x32xf32>
    %79 = arith.addf %77, %78 : vector<16x32xf32>
    %cst_53 = arith.constant 0.000000e+00 : f32
    %80 = vector.broadcast %cst_53 : f32 to vector<16x32xf32>
    %81 = arith.maximumf %79, %80 : vector<16x32xf32>
    %c2_i32_54 = arith.constant 2 : i32
    %82 = tpu.dynamic_rotate %81 by %c2_i32_54 dim 0 : vector<16x32xf32>, i32 -> vector<16x32xf32>
    %c2_i32_55 = arith.constant 2 : i32
    %83 = vector.broadcast %c2_i32_55 : i32 to vector<16x1xi32>
    %84 = arith.cmpi slt, %0, %83 : vector<16x1xi32>
    %cst_56 = arith.constant 0.000000e+00 : f32
    %85 = vector.shape_cast %84 : vector<16x1xi1> to vector<16x1xi1>
    %86 = vector.broadcast %85 : vector<16x1xi1> to vector<16x32xi1>
    %87 = vector.broadcast %cst_56 : f32 to vector<16x32xf32>
    %88 = arith.select %86, %87, %82 : vector<16x32xi1>, vector<16x32xf32>
    %89 = arith.truncf %88 : vector<16x32xf32> to vector<16x32xbf16>
    %c0_57 = arith.constant 0 : index
    %c0_58 = arith.constant 0 : index
    %c0_59 = arith.constant 0 : index
    %90 = vector.load %arg11[%c0_57, %c0_58, %c0_59] : memref<4x32x32xbf16, #tpu.memory_space<vmem>>, vector<1x32x32xbf16>
    %91 = vector.shape_cast %90 : vector<1x32x32xbf16> to vector<32x32xbf16>
    %cst_60 = arith.constant dense<0.000000e+00> : vector<16x32xf32>
    %92 = tpu.matmul %89, %91, %cst_60 {dimension_numbers = #tpu.dot_dimension_numbers<[1], [0], [0], [1], [0, 0, 1, 1], [], []>} : vector<16x32xbf16>, vector<32x32xbf16>, vector<16x32xf32> -> vector<16x32xf32>
    %93 = arith.truncf %81 : vector<16x32xf32> to vector<16x32xbf16>
    %c1_61 = arith.constant 1 : index
    %c0_62 = arith.constant 0 : index
    %c0_63 = arith.constant 0 : index
    %94 = vector.load %arg11[%c1_61, %c0_62, %c0_63] : memref<4x32x32xbf16, #tpu.memory_space<vmem>>, vector<1x32x32xbf16>
    %95 = vector.shape_cast %94 : vector<1x32x32xbf16> to vector<32x32xbf16>
    %cst_64 = arith.constant dense<0.000000e+00> : vector<16x32xf32>
    %96 = tpu.matmul %93, %95, %cst_64 {dimension_numbers = #tpu.dot_dimension_numbers<[1], [0], [0], [1], [0, 0, 1, 1], [], []>} : vector<16x32xbf16>, vector<32x32xbf16>, vector<16x32xf32> -> vector<16x32xf32>
    %97 = arith.addf %92, %96 : vector<16x32xf32>
    %98 = vector.broadcast %61 : vector<1x32xf32> to vector<16x32xf32>
    %99 = arith.addf %97, %98 : vector<16x32xf32>
    %cst_65 = arith.constant 0.000000e+00 : f32
    %100 = vector.broadcast %cst_65 : f32 to vector<16x32xf32>
    %101 = arith.maximumf %99, %100 : vector<16x32xf32>
    %102 = arith.addf %101, %53 : vector<16x32xf32>
    %cst_66 = arith.constant 0.000000e+00 : f32
    %103 = vector.broadcast %cst_66 : f32 to vector<16x32xf32>
    %104 = arith.maximumf %102, %103 : vector<16x32xf32>
    %105 = arith.truncf %104 : vector<16x32xf32> to vector<16x32xbf16>
    %c1_67 = arith.constant 1 : index
    %c0_68 = arith.constant 0 : index
    %c0_69 = arith.constant 0 : index
    %106 = vector.load %arg13[%c1_67, %c0_68, %c0_69] : memref<3x16x32xbf16, #tpu.memory_space<vmem>>, vector<1x16x32xbf16>
    %107 = vector.shape_cast %106 : vector<1x16x32xbf16> to vector<16x32xbf16>
    %108 = vector.shape_cast %105 : vector<16x32xbf16> to vector<1x16x32xbf16>
    tpu.vector_store %arg13[%c1_67, %c0_68, %c0_69], %108 {strides = array<i32>} : memref<3x16x32xbf16, #tpu.memory_space<vmem>>, vector<1x16x32xbf16>,
    %c1_70 = arith.constant 1 : index
    %c0_71 = arith.constant 0 : index
    %c0_72 = arith.constant 0 : index
    %109 = vector.load %arg10[%c1_70, %c0_71, %c0_72] : memref<2x1x32xf32, #tpu.memory_space<vmem>>, vector<1x1x32xf32>
    %110 = vector.shape_cast %109 : vector<1x1x32xf32> to vector<1x32xf32>
    %c1_73 = arith.constant 1 : index
    %c0_74 = arith.constant 0 : index
    %c0_75 = arith.constant 0 : index
    %111 = vector.load %arg12[%c1_73, %c0_74, %c0_75] : memref<2x1x32xf32, #tpu.memory_space<vmem>>, vector<1x1x32xf32>
    %112 = vector.shape_cast %111 : vector<1x1x32xf32> to vector<1x32xf32>
    %c4_i32 = arith.constant 4 : i32
    %113 = tpu.dynamic_rotate %104 by %c4_i32 dim 0 : vector<16x32xf32>, i32 -> vector<16x32xf32>
    %c4_i32_76 = arith.constant 4 : i32
    %114 = vector.broadcast %c4_i32_76 : i32 to vector<16x1xi32>
    %115 = arith.cmpi slt, %0, %114 : vector<16x1xi32>
    %cst_77 = arith.constant 0.000000e+00 : f32
    %116 = vector.shape_cast %115 : vector<16x1xi1> to vector<16x1xi1>
    %117 = vector.broadcast %116 : vector<16x1xi1> to vector<16x32xi1>
    %118 = vector.broadcast %cst_77 : f32 to vector<16x32xf32>
    %119 = arith.select %117, %118, %113 : vector<16x32xi1>, vector<16x32xf32>
    %120 = arith.truncf %119 : vector<16x32xf32> to vector<16x32xbf16>
    %c2 = arith.constant 2 : index
    %c0_78 = arith.constant 0 : index
    %c0_79 = arith.constant 0 : index
    %121 = vector.load %arg9[%c2, %c0_78, %c0_79] : memref<4x32x32xbf16, #tpu.memory_space<vmem>>, vector<1x32x32xbf16>
    %122 = vector.shape_cast %121 : vector<1x32x32xbf16> to vector<32x32xbf16>
    %cst_80 = arith.constant dense<0.000000e+00> : vector<16x32xf32>
    %123 = tpu.matmul %120, %122, %cst_80 {dimension_numbers = #tpu.dot_dimension_numbers<[1], [0], [0], [1], [0, 0, 1, 1], [], []>} : vector<16x32xbf16>, vector<32x32xbf16>, vector<16x32xf32> -> vector<16x32xf32>
    %124 = arith.truncf %104 : vector<16x32xf32> to vector<16x32xbf16>
    %c3 = arith.constant 3 : index
    %c0_81 = arith.constant 0 : index
    %c0_82 = arith.constant 0 : index
    %125 = vector.load %arg9[%c3, %c0_81, %c0_82] : memref<4x32x32xbf16, #tpu.memory_space<vmem>>, vector<1x32x32xbf16>
    %126 = vector.shape_cast %125 : vector<1x32x32xbf16> to vector<32x32xbf16>
    %cst_83 = arith.constant dense<0.000000e+00> : vector<16x32xf32>
    %127 = tpu.matmul %124, %126, %cst_83 {dimension_numbers = #tpu.dot_dimension_numbers<[1], [0], [0], [1], [0, 0, 1, 1], [], []>} : vector<16x32xbf16>, vector<32x32xbf16>, vector<16x32xf32> -> vector<16x32xf32>
    %128 = arith.addf %123, %127 : vector<16x32xf32>
    %129 = vector.broadcast %110 : vector<1x32xf32> to vector<16x32xf32>
    %130 = arith.addf %128, %129 : vector<16x32xf32>
    %cst_84 = arith.constant 0.000000e+00 : f32
    %131 = vector.broadcast %cst_84 : f32 to vector<16x32xf32>
    %132 = arith.maximumf %130, %131 : vector<16x32xf32>
    %c4_i32_85 = arith.constant 4 : i32
    %133 = tpu.dynamic_rotate %132 by %c4_i32_85 dim 0 : vector<16x32xf32>, i32 -> vector<16x32xf32>
    %c4_i32_86 = arith.constant 4 : i32
    %134 = vector.broadcast %c4_i32_86 : i32 to vector<16x1xi32>
    %135 = arith.cmpi slt, %0, %134 : vector<16x1xi32>
    %cst_87 = arith.constant 0.000000e+00 : f32
    %136 = vector.shape_cast %135 : vector<16x1xi1> to vector<16x1xi1>
    %137 = vector.broadcast %136 : vector<16x1xi1> to vector<16x32xi1>
    %138 = vector.broadcast %cst_87 : f32 to vector<16x32xf32>
    %139 = arith.select %137, %138, %133 : vector<16x32xi1>, vector<16x32xf32>
    %140 = arith.truncf %139 : vector<16x32xf32> to vector<16x32xbf16>
    %c2_88 = arith.constant 2 : index
    %c0_89 = arith.constant 0 : index
    %c0_90 = arith.constant 0 : index
    %141 = vector.load %arg11[%c2_88, %c0_89, %c0_90] : memref<4x32x32xbf16, #tpu.memory_space<vmem>>, vector<1x32x32xbf16>
    %142 = vector.shape_cast %141 : vector<1x32x32xbf16> to vector<32x32xbf16>
    %cst_91 = arith.constant dense<0.000000e+00> : vector<16x32xf32>
    %143 = tpu.matmul %140, %142, %cst_91 {dimension_numbers = #tpu.dot_dimension_numbers<[1], [0], [0], [1], [0, 0, 1, 1], [], []>} : vector<16x32xbf16>, vector<32x32xbf16>, vector<16x32xf32> -> vector<16x32xf32>
    %144 = arith.truncf %132 : vector<16x32xf32> to vector<16x32xbf16>
    %c3_92 = arith.constant 3 : index
    %c0_93 = arith.constant 0 : index
    %c0_94 = arith.constant 0 : index
    %145 = vector.load %arg11[%c3_92, %c0_93, %c0_94] : memref<4x32x32xbf16, #tpu.memory_space<vmem>>, vector<1x32x32xbf16>
    %146 = vector.shape_cast %145 : vector<1x32x32xbf16> to vector<32x32xbf16>
    %cst_95 = arith.constant dense<0.000000e+00> : vector<16x32xf32>
    %147 = tpu.matmul %144, %146, %cst_95 {dimension_numbers = #tpu.dot_dimension_numbers<[1], [0], [0], [1], [0, 0, 1, 1], [], []>} : vector<16x32xbf16>, vector<32x32xbf16>, vector<16x32xf32> -> vector<16x32xf32>
    %148 = arith.addf %143, %147 : vector<16x32xf32>
    %149 = vector.broadcast %112 : vector<1x32xf32> to vector<16x32xf32>
    %150 = arith.addf %148, %149 : vector<16x32xf32>
    %cst_96 = arith.constant 0.000000e+00 : f32
    %151 = vector.broadcast %cst_96 : f32 to vector<16x32xf32>
    %152 = arith.maximumf %150, %151 : vector<16x32xf32>
    %153 = arith.addf %152, %104 : vector<16x32xf32>
    %cst_97 = arith.constant 0.000000e+00 : f32
    %154 = vector.broadcast %cst_97 : f32 to vector<16x32xf32>
    %155 = arith.maximumf %153, %154 : vector<16x32xf32>
    %156 = arith.truncf %155 : vector<16x32xf32> to vector<16x32xbf16>
    %c2_98 = arith.constant 2 : index
    %c0_99 = arith.constant 0 : index
    %c0_100 = arith.constant 0 : index
    %157 = vector.load %arg13[%c2_98, %c0_99, %c0_100] : memref<3x16x32xbf16, #tpu.memory_space<vmem>>, vector<1x16x32xbf16>
    %158 = vector.shape_cast %157 : vector<1x16x32xbf16> to vector<16x32xbf16>
    %159 = vector.shape_cast %156 : vector<16x32xbf16> to vector<1x16x32xbf16>
    tpu.vector_store %arg13[%c2_98, %c0_99, %c0_100], %159 {strides = array<i32>} : memref<3x16x32xbf16, #tpu.memory_space<vmem>>, vector<1x16x32xbf16>,
    return
  }
  func.func @transform_0(%arg0: i32) -> (i32, i32) {
    %c0_i32 = arith.constant 0 : i32
    %c0_i32_0 = arith.constant 0 : i32
    return %arg0, %c0_i32 : i32, i32
  }
  func.func @transform_1(%arg0: i32) -> (i32, i32) {
    %c0_i32 = arith.constant 0 : i32
    %c0_i32_0 = arith.constant 0 : i32
    return %arg0, %c0_i32 : i32, i32
  }
  func.func @transform_2(%arg0: i32) -> (i32, i32, i32) {
    %c0_i32 = arith.constant 0 : i32
    %c0_i32_0 = arith.constant 0 : i32
    %c0_i32_1 = arith.constant 0 : i32
    %c0_i32_2 = arith.constant 0 : i32
    return %c0_i32, %c0_i32_0, %c0_i32_1 : i32, i32, i32
  }
  func.func @transform_3(%arg0: i32) -> (i32, i32) {
    %c0_i32 = arith.constant 0 : i32
    %c0_i32_0 = arith.constant 0 : i32
    %c0_i32_1 = arith.constant 0 : i32
    return %c0_i32, %c0_i32_0 : i32, i32
  }
  func.func @transform_4(%arg0: i32) -> (i32, i32, i32) {
    %c0_i32 = arith.constant 0 : i32
    %c0_i32_0 = arith.constant 0 : i32
    %c0_i32_1 = arith.constant 0 : i32
    %c0_i32_2 = arith.constant 0 : i32
    return %c0_i32, %c0_i32_0, %c0_i32_1 : i32, i32, i32
  }
  func.func @transform_5(%arg0: i32) -> (i32, i32) {
    %c0_i32 = arith.constant 0 : i32
    %c0_i32_0 = arith.constant 0 : i32
    %c0_i32_1 = arith.constant 0 : i32
    return %c0_i32, %c0_i32_0 : i32, i32
  }
  func.func @transform_6(%arg0: i32) -> (i32, i32) {
    %c0_i32 = arith.constant 0 : i32
    %c0_i32_0 = arith.constant 0 : i32
    %c0_i32_1 = arith.constant 0 : i32
    return %c0_i32, %c0_i32_0 : i32, i32
  }
  func.func @transform_7(%arg0: i32) -> (i32, i32) {
    %c0_i32 = arith.constant 0 : i32
    %c0_i32_0 = arith.constant 0 : i32
    %c0_i32_1 = arith.constant 0 : i32
    return %c0_i32, %c0_i32_0 : i32, i32
  }
  func.func @transform_8(%arg0: i32) -> (i32, i32, i32) {
    %c0_i32 = arith.constant 0 : i32
    %c0_i32_0 = arith.constant 0 : i32
    %c0_i32_1 = arith.constant 0 : i32
    %c0_i32_2 = arith.constant 0 : i32
    return %c0_i32, %c0_i32_0, %c0_i32_1 : i32, i32, i32
  }
  func.func @transform_9(%arg0: i32) -> (i32, i32, i32) {
    %c0_i32 = arith.constant 0 : i32
    %c0_i32_0 = arith.constant 0 : i32
    %c0_i32_1 = arith.constant 0 : i32
    %c0_i32_2 = arith.constant 0 : i32
    return %c0_i32, %c0_i32_0, %c0_i32_1 : i32, i32, i32
  }
  func.func @transform_10(%arg0: i32) -> (i32, i32, i32) {
    %c0_i32 = arith.constant 0 : i32
    %c0_i32_0 = arith.constant 0 : i32
    %c0_i32_1 = arith.constant 0 : i32
    %c0_i32_2 = arith.constant 0 : i32
    return %c0_i32, %c0_i32_0, %c0_i32_1 : i32, i32, i32
  }
  func.func @transform_11(%arg0: i32) -> (i32, i32, i32) {
    %c0_i32 = arith.constant 0 : i32
    %c0_i32_0 = arith.constant 0 : i32
    %c0_i32_1 = arith.constant 0 : i32
    %c0_i32_2 = arith.constant 0 : i32
    return %c0_i32, %c0_i32_0, %c0_i32_1 : i32, i32, i32
  }
  func.func @transform_12(%arg0: i32) -> (i32, i32, i32) {
    %c0_i32 = arith.constant 0 : i32
    %c0_i32_0 = arith.constant 0 : i32
    %c0_i32_1 = arith.constant 0 : i32
    return %c0_i32, %arg0, %c0_i32_0 : i32, i32, i32
  }
}

module attributes {stable_mosaic.version = 11 : i64} {
  func.func @_encoders_kl_kernel(%arg0: i32, %arg1: memref<16x1xi32, #tpu.memory_space<vmem>>, %arg2: memref<16x1xi32, #tpu.memory_space<vmem>>, %arg3: memref<3x16x32xbf16, #tpu.memory_space<vmem>>, %arg4: memref<6x16x32xbf16, #tpu.memory_space<vmem>>, %arg5: memref<6x32x32xbf16, #tpu.memory_space<vmem>>, %arg6: memref<6x1x32xf32, #tpu.memory_space<vmem>>, %arg7: memref<6x32x32xbf16, #tpu.memory_space<vmem>>, %arg8: memref<6x1x32xf32, #tpu.memory_space<vmem>>, %arg9: memref<6x32x32xbf16, #tpu.memory_space<vmem>>, %arg10: memref<6x1x32xf32, #tpu.memory_space<vmem>>, %arg11: memref<6x32x32xbf16, #tpu.memory_space<vmem>>, %arg12: memref<6x1x32xf32, #tpu.memory_space<vmem>>, %arg13: memref<3x16x32xbf16, #tpu.memory_space<vmem>>, %arg14: memref<16x1xf32, #tpu.memory_space<vmem>>) attributes {dimension_semantics = [#tpu.dimension_semantics<parallel>], iteration_bounds = array<i64: 1>, scalar_prefetch = 0 : i64, scratch_operands = 0 : i64, tpu.core_type = #tpu.core_type<tc>, window_params = [{transform_indices = @transform_0, window_bounds = array<i64: 16, 1>}, {transform_indices = @transform_1, window_bounds = array<i64: 16, 1>}, {transform_indices = @transform_2, window_bounds = array<i64: 3, 16, 32>}, {transform_indices = @transform_3, window_bounds = array<i64: 6, 16, 32>}, {pipeline_mode = #tpu.pipeline_mode<synchronous>, transform_indices = @transform_4, window_bounds = array<i64: 6, 32, 32>}, {pipeline_mode = #tpu.pipeline_mode<synchronous>, transform_indices = @transform_5, window_bounds = array<i64: 6, 1, 32>}, {pipeline_mode = #tpu.pipeline_mode<synchronous>, transform_indices = @transform_6, window_bounds = array<i64: 6, 32, 32>}, {pipeline_mode = #tpu.pipeline_mode<synchronous>, transform_indices = @transform_7, window_bounds = array<i64: 6, 1, 32>}, {pipeline_mode = #tpu.pipeline_mode<synchronous>, transform_indices = @transform_8, window_bounds = array<i64: 6, 32, 32>}, {pipeline_mode = #tpu.pipeline_mode<synchronous>, transform_indices = @transform_9, window_bounds = array<i64: 6, 1, 32>}, {pipeline_mode = #tpu.pipeline_mode<synchronous>, transform_indices = @transform_10, window_bounds = array<i64: 6, 32, 32>}, {pipeline_mode = #tpu.pipeline_mode<synchronous>, transform_indices = @transform_11, window_bounds = array<i64: 6, 1, 32>}, {transform_indices = @transform_12, window_bounds = array<i64: 3, 16, 32>}, {transform_indices = @transform_13, window_bounds = array<i64: 16, 1>}]} {
    %c0 = arith.constant 0 : index
    %c0_0 = arith.constant 0 : index
    %0 = vector.load %arg1[%c0, %c0_0] : memref<16x1xi32, #tpu.memory_space<vmem>>, vector<16x1xi32>
    %c0_1 = arith.constant 0 : index
    %c0_2 = arith.constant 0 : index
    %1 = vector.load %arg2[%c0_1, %c0_2] : memref<16x1xi32, #tpu.memory_space<vmem>>, vector<16x1xi32>
    %c2 = arith.constant 2 : index
    %c0_3 = arith.constant 0 : index
    %c0_4 = arith.constant 0 : index
    %2 = vector.load %arg3[%c2, %c0_3, %c0_4] : memref<3x16x32xbf16, #tpu.memory_space<vmem>>, vector<1x16x32xbf16>
    %3 = vector.shape_cast %2 : vector<1x16x32xbf16> to vector<16x32xbf16>
    %c0_5 = arith.constant 0 : index
    %c0_6 = arith.constant 0 : index
    %c0_7 = arith.constant 0 : index
    %4 = vector.load %arg5[%c0_5, %c0_6, %c0_7] : memref<6x32x32xbf16, #tpu.memory_space<vmem>>, vector<1x32x32xbf16>
    %5 = vector.shape_cast %4 : vector<1x32x32xbf16> to vector<32x32xbf16>
    %cst = arith.constant dense<0.000000e+00> : vector<16x32xf32>
    %6 = tpu.matmul %3, %5, %cst {dimension_numbers = #tpu.dot_dimension_numbers<[1], [0], [0], [1], [0, 0, 1, 1], [], []>} : vector<16x32xbf16>, vector<32x32xbf16>, vector<16x32xf32> -> vector<16x32xf32>
    %c0_8 = arith.constant 0 : index
    %c0_9 = arith.constant 0 : index
    %c0_10 = arith.constant 0 : index
    %7 = vector.load %arg6[%c0_8, %c0_9, %c0_10] : memref<6x1x32xf32, #tpu.memory_space<vmem>>, vector<1x1x32xf32>
    %8 = vector.shape_cast %7 : vector<1x1x32xf32> to vector<1x32xf32>
    %9 = vector.broadcast %8 : vector<1x32xf32> to vector<16x32xf32>
    %10 = arith.addf %6, %9 : vector<16x32xf32>
    %cst_11 = arith.constant 0.000000e+00 : f32
    %11 = vector.broadcast %cst_11 : f32 to vector<16x32xf32>
    %12 = arith.maximumf %10, %11 : vector<16x32xf32>
    %13 = arith.truncf %12 : vector<16x32xf32> to vector<16x32xbf16>
    %c0_12 = arith.constant 0 : index
    %c0_13 = arith.constant 0 : index
    %c0_14 = arith.constant 0 : index
    %14 = vector.load %arg11[%c0_12, %c0_13, %c0_14] : memref<6x32x32xbf16, #tpu.memory_space<vmem>>, vector<1x32x32xbf16>
    %15 = vector.shape_cast %14 : vector<1x32x32xbf16> to vector<32x32xbf16>
    %cst_15 = arith.constant dense<0.000000e+00> : vector<16x32xf32>
    %16 = tpu.matmul %13, %15, %cst_15 {dimension_numbers = #tpu.dot_dimension_numbers<[1], [0], [0], [1], [0, 0, 1, 1], [], []>} : vector<16x32xbf16>, vector<32x32xbf16>, vector<16x32xf32> -> vector<16x32xf32>
    %c0_16 = arith.constant 0 : index
    %c0_17 = arith.constant 0 : index
    %c0_18 = arith.constant 0 : index
    %17 = vector.load %arg12[%c0_16, %c0_17, %c0_18] : memref<6x1x32xf32, #tpu.memory_space<vmem>>, vector<1x1x32xf32>
    %18 = vector.shape_cast %17 : vector<1x1x32xf32> to vector<1x32xf32>
    %19 = vector.broadcast %18 : vector<1x32xf32> to vector<16x32xf32>
    %20 = arith.addf %16, %19 : vector<16x32xf32>
    %c0_19 = arith.constant 0 : index
    %c0_20 = arith.constant 0 : index
    %c0_21 = arith.constant 0 : index
    %21 = vector.load %arg9[%c0_19, %c0_20, %c0_21] : memref<6x32x32xbf16, #tpu.memory_space<vmem>>, vector<1x32x32xbf16>
    %22 = vector.shape_cast %21 : vector<1x32x32xbf16> to vector<32x32xbf16>
    %cst_22 = arith.constant dense<0.000000e+00> : vector<16x32xf32>
    %23 = tpu.matmul %13, %22, %cst_22 {dimension_numbers = #tpu.dot_dimension_numbers<[1], [0], [0], [1], [0, 0, 1, 1], [], []>} : vector<16x32xbf16>, vector<32x32xbf16>, vector<16x32xf32> -> vector<16x32xf32>
    %c0_23 = arith.constant 0 : index
    %c0_24 = arith.constant 0 : index
    %c0_25 = arith.constant 0 : index
    %24 = vector.load %arg10[%c0_23, %c0_24, %c0_25] : memref<6x1x32xf32, #tpu.memory_space<vmem>>, vector<1x1x32xf32>
    %25 = vector.shape_cast %24 : vector<1x1x32xf32> to vector<1x32xf32>
    %26 = vector.broadcast %25 : vector<1x32xf32> to vector<16x32xf32>
    %27 = arith.addf %23, %26 : vector<16x32xf32>
    %cst_26 = arith.constant 2.000000e+01 : f32
    %28 = vector.broadcast %cst_26 : f32 to vector<16x32xf32>
    %29 = arith.cmpf ogt, %27, %28 : vector<16x32xf32>
    %cst_27 = arith.constant 2.000000e+01 : f32
    %30 = vector.broadcast %cst_27 : f32 to vector<16x32xf32>
    %31 = arith.minimumf %27, %30 : vector<16x32xf32>
    %32 = math.exp %31 : vector<16x32xf32>
    %cst_28 = arith.constant 1.000000e+00 : f32
    %33 = vector.broadcast %cst_28 : f32 to vector<16x32xf32>
    %34 = arith.addf %33, %32 : vector<16x32xf32>
    %35 = math.log %34 : vector<16x32xf32>
    %36 = arith.select %29, %27, %35 : vector<16x32xi1>, vector<16x32xf32>
    %cst_29 = arith.constant 1.000000e-03 : f32
    %cst_30 = arith.constant 5.000000e+00 : f32
    %37 = vector.broadcast %cst_29 : f32 to vector<16x32xf32>
    %38 = arith.maximumf %37, %36 : vector<16x32xf32>
    %39 = vector.broadcast %cst_30 : f32 to vector<16x32xf32>
    %40 = arith.minimumf %39, %38 : vector<16x32xf32>
    %c0_31 = arith.constant 0 : index
    %c0_32 = arith.constant 0 : index
    %c0_33 = arith.constant 0 : index
    %41 = vector.load %arg4[%c0_31, %c0_32, %c0_33] : memref<6x16x32xbf16, #tpu.memory_space<vmem>>, vector<1x16x32xbf16>
    %42 = vector.shape_cast %41 : vector<1x16x32xbf16> to vector<16x32xbf16>
    %43 = arith.extf %42 : vector<16x32xbf16> to vector<16x32xf32>
    %44 = arith.mulf %43, %40 : vector<16x32xf32>
    %45 = arith.addf %44, %20 : vector<16x32xf32>
    %46 = arith.truncf %45 : vector<16x32xf32> to vector<16x32xbf16>
    %c0_34 = arith.constant 0 : index
    %c0_35 = arith.constant 0 : index
    %c0_36 = arith.constant 0 : index
    %47 = vector.load %arg13[%c0_34, %c0_35, %c0_36] : memref<3x16x32xbf16, #tpu.memory_space<vmem>>, vector<1x16x32xbf16>
    %48 = vector.shape_cast %47 : vector<1x16x32xbf16> to vector<16x32xbf16>
    %49 = vector.shape_cast %46 : vector<16x32xbf16> to vector<1x16x32xbf16>
    tpu.vector_store %arg13[%c0_34, %c0_35, %c0_36], %49 {strides = array<i32>} : memref<3x16x32xbf16, #tpu.memory_space<vmem>>, vector<1x16x32xbf16>,
    %c0_37 = arith.constant 0 : index
    %c0_38 = arith.constant 0 : index
    %c0_39 = arith.constant 0 : index
    %50 = vector.load %arg3[%c0_37, %c0_38, %c0_39] : memref<3x16x32xbf16, #tpu.memory_space<vmem>>, vector<1x16x32xbf16>
    %51 = vector.shape_cast %50 : vector<1x16x32xbf16> to vector<16x32xbf16>
    %c1 = arith.constant 1 : index
    %c0_40 = arith.constant 0 : index
    %c0_41 = arith.constant 0 : index
    %52 = vector.load %arg5[%c1, %c0_40, %c0_41] : memref<6x32x32xbf16, #tpu.memory_space<vmem>>, vector<1x32x32xbf16>
    %53 = vector.shape_cast %52 : vector<1x32x32xbf16> to vector<32x32xbf16>
    %cst_42 = arith.constant dense<0.000000e+00> : vector<16x32xf32>
    %54 = tpu.matmul %51, %53, %cst_42 {dimension_numbers = #tpu.dot_dimension_numbers<[1], [0], [0], [1], [0, 0, 1, 1], [], []>} : vector<16x32xbf16>, vector<32x32xbf16>, vector<16x32xf32> -> vector<16x32xf32>
    %c1_43 = arith.constant 1 : index
    %c0_44 = arith.constant 0 : index
    %c0_45 = arith.constant 0 : index
    %55 = vector.load %arg6[%c1_43, %c0_44, %c0_45] : memref<6x1x32xf32, #tpu.memory_space<vmem>>, vector<1x1x32xf32>
    %56 = vector.shape_cast %55 : vector<1x1x32xf32> to vector<1x32xf32>
    %57 = vector.broadcast %56 : vector<1x32xf32> to vector<16x32xf32>
    %58 = arith.addf %54, %57 : vector<16x32xf32>
    %cst_46 = arith.constant 0.000000e+00 : f32
    %59 = vector.broadcast %cst_46 : f32 to vector<16x32xf32>
    %60 = arith.maximumf %58, %59 : vector<16x32xf32>
    %61 = arith.truncf %45 : vector<16x32xf32> to vector<16x32xbf16>
    %c1_47 = arith.constant 1 : index
    %c0_48 = arith.constant 0 : index
    %c0_49 = arith.constant 0 : index
    %62 = vector.load %arg7[%c1_47, %c0_48, %c0_49] : memref<6x32x32xbf16, #tpu.memory_space<vmem>>, vector<1x32x32xbf16>
    %63 = vector.shape_cast %62 : vector<1x32x32xbf16> to vector<32x32xbf16>
    %cst_50 = arith.constant dense<0.000000e+00> : vector<16x32xf32>
    %64 = tpu.matmul %61, %63, %cst_50 {dimension_numbers = #tpu.dot_dimension_numbers<[1], [0], [0], [1], [0, 0, 1, 1], [], []>} : vector<16x32xbf16>, vector<32x32xbf16>, vector<16x32xf32> -> vector<16x32xf32>
    %c1_51 = arith.constant 1 : index
    %c0_52 = arith.constant 0 : index
    %c0_53 = arith.constant 0 : index
    %65 = vector.load %arg8[%c1_51, %c0_52, %c0_53] : memref<6x1x32xf32, #tpu.memory_space<vmem>>, vector<1x1x32xf32>
    %66 = vector.shape_cast %65 : vector<1x1x32xf32> to vector<1x32xf32>
    %67 = vector.broadcast %66 : vector<1x32xf32> to vector<16x32xf32>
    %68 = arith.addf %64, %67 : vector<16x32xf32>
    %cst_54 = arith.constant 0.000000e+00 : f32
    %69 = vector.broadcast %cst_54 : f32 to vector<16x32xf32>
    %70 = arith.maximumf %68, %69 : vector<16x32xf32>
    %71 = arith.addf %60, %70 : vector<16x32xf32>
    %72 = arith.truncf %71 : vector<16x32xf32> to vector<16x32xbf16>
    %c1_55 = arith.constant 1 : index
    %c0_56 = arith.constant 0 : index
    %c0_57 = arith.constant 0 : index
    %73 = vector.load %arg11[%c1_55, %c0_56, %c0_57] : memref<6x32x32xbf16, #tpu.memory_space<vmem>>, vector<1x32x32xbf16>
    %74 = vector.shape_cast %73 : vector<1x32x32xbf16> to vector<32x32xbf16>
    %cst_58 = arith.constant dense<0.000000e+00> : vector<16x32xf32>
    %75 = tpu.matmul %72, %74, %cst_58 {dimension_numbers = #tpu.dot_dimension_numbers<[1], [0], [0], [1], [0, 0, 1, 1], [], []>} : vector<16x32xbf16>, vector<32x32xbf16>, vector<16x32xf32> -> vector<16x32xf32>
    %c1_59 = arith.constant 1 : index
    %c0_60 = arith.constant 0 : index
    %c0_61 = arith.constant 0 : index
    %76 = vector.load %arg12[%c1_59, %c0_60, %c0_61] : memref<6x1x32xf32, #tpu.memory_space<vmem>>, vector<1x1x32xf32>
    %77 = vector.shape_cast %76 : vector<1x1x32xf32> to vector<1x32xf32>
    %78 = vector.broadcast %77 : vector<1x32xf32> to vector<16x32xf32>
    %79 = arith.addf %75, %78 : vector<16x32xf32>
    %c1_62 = arith.constant 1 : index
    %c0_63 = arith.constant 0 : index
    %c0_64 = arith.constant 0 : index
    %80 = vector.load %arg9[%c1_62, %c0_63, %c0_64] : memref<6x32x32xbf16, #tpu.memory_space<vmem>>, vector<1x32x32xbf16>
    %81 = vector.shape_cast %80 : vector<1x32x32xbf16> to vector<32x32xbf16>
    %cst_65 = arith.constant dense<0.000000e+00> : vector<16x32xf32>
    %82 = tpu.matmul %72, %81, %cst_65 {dimension_numbers = #tpu.dot_dimension_numbers<[1], [0], [0], [1], [0, 0, 1, 1], [], []>} : vector<16x32xbf16>, vector<32x32xbf16>, vector<16x32xf32> -> vector<16x32xf32>
    %c1_66 = arith.constant 1 : index
    %c0_67 = arith.constant 0 : index
    %c0_68 = arith.constant 0 : index
    %83 = vector.load %arg10[%c1_66, %c0_67, %c0_68] : memref<6x1x32xf32, #tpu.memory_space<vmem>>, vector<1x1x32xf32>
    %84 = vector.shape_cast %83 : vector<1x1x32xf32> to vector<1x32xf32>
    %85 = vector.broadcast %84 : vector<1x32xf32> to vector<16x32xf32>
    %86 = arith.addf %82, %85 : vector<16x32xf32>
    %cst_69 = arith.constant 2.000000e+01 : f32
    %87 = vector.broadcast %cst_69 : f32 to vector<16x32xf32>
    %88 = arith.cmpf ogt, %86, %87 : vector<16x32xf32>
    %cst_70 = arith.constant 2.000000e+01 : f32
    %89 = vector.broadcast %cst_70 : f32 to vector<16x32xf32>
    %90 = arith.minimumf %86, %89 : vector<16x32xf32>
    %91 = math.exp %90 : vector<16x32xf32>
    %cst_71 = arith.constant 1.000000e+00 : f32
    %92 = vector.broadcast %cst_71 : f32 to vector<16x32xf32>
    %93 = arith.addf %92, %91 : vector<16x32xf32>
    %94 = math.log %93 : vector<16x32xf32>
    %95 = arith.select %88, %86, %94 : vector<16x32xi1>, vector<16x32xf32>
    %cst_72 = arith.constant 1.000000e-03 : f32
    %cst_73 = arith.constant 5.000000e+00 : f32
    %96 = vector.broadcast %cst_72 : f32 to vector<16x32xf32>
    %97 = arith.maximumf %96, %95 : vector<16x32xf32>
    %98 = vector.broadcast %cst_73 : f32 to vector<16x32xf32>
    %99 = arith.minimumf %98, %97 : vector<16x32xf32>
    %c1_74 = arith.constant 1 : index
    %c0_75 = arith.constant 0 : index
    %c0_76 = arith.constant 0 : index
    %100 = vector.load %arg4[%c1_74, %c0_75, %c0_76] : memref<6x16x32xbf16, #tpu.memory_space<vmem>>, vector<1x16x32xbf16>
    %101 = vector.shape_cast %100 : vector<1x16x32xbf16> to vector<16x32xbf16>
    %102 = arith.extf %101 : vector<16x32xbf16> to vector<16x32xf32>
    %103 = arith.mulf %102, %99 : vector<16x32xf32>
    %104 = arith.addf %103, %79 : vector<16x32xf32>
    %105 = arith.truncf %104 : vector<16x32xf32> to vector<16x32xbf16>
    %c1_77 = arith.constant 1 : index
    %c0_78 = arith.constant 0 : index
    %c0_79 = arith.constant 0 : index
    %106 = vector.load %arg13[%c1_77, %c0_78, %c0_79] : memref<3x16x32xbf16, #tpu.memory_space<vmem>>, vector<1x16x32xbf16>
    %107 = vector.shape_cast %106 : vector<1x16x32xbf16> to vector<16x32xbf16>
    %108 = vector.shape_cast %105 : vector<16x32xbf16> to vector<1x16x32xbf16>
    tpu.vector_store %arg13[%c1_77, %c0_78, %c0_79], %108 {strides = array<i32>} : memref<3x16x32xbf16, #tpu.memory_space<vmem>>, vector<1x16x32xbf16>,
    %c1_80 = arith.constant 1 : index
    %c0_81 = arith.constant 0 : index
    %c0_82 = arith.constant 0 : index
    %109 = vector.load %arg3[%c1_80, %c0_81, %c0_82] : memref<3x16x32xbf16, #tpu.memory_space<vmem>>, vector<1x16x32xbf16>
    %110 = vector.shape_cast %109 : vector<1x16x32xbf16> to vector<16x32xbf16>
    %c2_83 = arith.constant 2 : index
    %c0_84 = arith.constant 0 : index
    %c0_85 = arith.constant 0 : index
    %111 = vector.load %arg5[%c2_83, %c0_84, %c0_85] : memref<6x32x32xbf16, #tpu.memory_space<vmem>>, vector<1x32x32xbf16>
    %112 = vector.shape_cast %111 : vector<1x32x32xbf16> to vector<32x32xbf16>
    %cst_86 = arith.constant dense<0.000000e+00> : vector<16x32xf32>
    %113 = tpu.matmul %110, %112, %cst_86 {dimension_numbers = #tpu.dot_dimension_numbers<[1], [0], [0], [1], [0, 0, 1, 1], [], []>} : vector<16x32xbf16>, vector<32x32xbf16>, vector<16x32xf32> -> vector<16x32xf32>
    %c2_87 = arith.constant 2 : index
    %c0_88 = arith.constant 0 : index
    %c0_89 = arith.constant 0 : index
    %114 = vector.load %arg6[%c2_87, %c0_88, %c0_89] : memref<6x1x32xf32, #tpu.memory_space<vmem>>, vector<1x1x32xf32>
    %115 = vector.shape_cast %114 : vector<1x1x32xf32> to vector<1x32xf32>
    %116 = vector.broadcast %115 : vector<1x32xf32> to vector<16x32xf32>
    %117 = arith.addf %113, %116 : vector<16x32xf32>
    %cst_90 = arith.constant 0.000000e+00 : f32
    %118 = vector.broadcast %cst_90 : f32 to vector<16x32xf32>
    %119 = arith.maximumf %117, %118 : vector<16x32xf32>
    %120 = arith.truncf %104 : vector<16x32xf32> to vector<16x32xbf16>
    %c2_91 = arith.constant 2 : index
    %c0_92 = arith.constant 0 : index
    %c0_93 = arith.constant 0 : index
    %121 = vector.load %arg7[%c2_91, %c0_92, %c0_93] : memref<6x32x32xbf16, #tpu.memory_space<vmem>>, vector<1x32x32xbf16>
    %122 = vector.shape_cast %121 : vector<1x32x32xbf16> to vector<32x32xbf16>
    %cst_94 = arith.constant dense<0.000000e+00> : vector<16x32xf32>
    %123 = tpu.matmul %120, %122, %cst_94 {dimension_numbers = #tpu.dot_dimension_numbers<[1], [0], [0], [1], [0, 0, 1, 1], [], []>} : vector<16x32xbf16>, vector<32x32xbf16>, vector<16x32xf32> -> vector<16x32xf32>
    %c2_95 = arith.constant 2 : index
    %c0_96 = arith.constant 0 : index
    %c0_97 = arith.constant 0 : index
    %124 = vector.load %arg8[%c2_95, %c0_96, %c0_97] : memref<6x1x32xf32, #tpu.memory_space<vmem>>, vector<1x1x32xf32>
    %125 = vector.shape_cast %124 : vector<1x1x32xf32> to vector<1x32xf32>
    %126 = vector.broadcast %125 : vector<1x32xf32> to vector<16x32xf32>
    %127 = arith.addf %123, %126 : vector<16x32xf32>
    %cst_98 = arith.constant 0.000000e+00 : f32
    %128 = vector.broadcast %cst_98 : f32 to vector<16x32xf32>
    %129 = arith.maximumf %127, %128 : vector<16x32xf32>
    %130 = arith.addf %119, %129 : vector<16x32xf32>
    %131 = arith.truncf %130 : vector<16x32xf32> to vector<16x32xbf16>
    %c2_99 = arith.constant 2 : index
    %c0_100 = arith.constant 0 : index
    %c0_101 = arith.constant 0 : index
    %132 = vector.load %arg11[%c2_99, %c0_100, %c0_101] : memref<6x32x32xbf16, #tpu.memory_space<vmem>>, vector<1x32x32xbf16>
    %133 = vector.shape_cast %132 : vector<1x32x32xbf16> to vector<32x32xbf16>
    %cst_102 = arith.constant dense<0.000000e+00> : vector<16x32xf32>
    %134 = tpu.matmul %131, %133, %cst_102 {dimension_numbers = #tpu.dot_dimension_numbers<[1], [0], [0], [1], [0, 0, 1, 1], [], []>} : vector<16x32xbf16>, vector<32x32xbf16>, vector<16x32xf32> -> vector<16x32xf32>
    %c2_103 = arith.constant 2 : index
    %c0_104 = arith.constant 0 : index
    %c0_105 = arith.constant 0 : index
    %135 = vector.load %arg12[%c2_103, %c0_104, %c0_105] : memref<6x1x32xf32, #tpu.memory_space<vmem>>, vector<1x1x32xf32>
    %136 = vector.shape_cast %135 : vector<1x1x32xf32> to vector<1x32xf32>
    %137 = vector.broadcast %136 : vector<1x32xf32> to vector<16x32xf32>
    %138 = arith.addf %134, %137 : vector<16x32xf32>
    %c2_106 = arith.constant 2 : index
    %c0_107 = arith.constant 0 : index
    %c0_108 = arith.constant 0 : index
    %139 = vector.load %arg9[%c2_106, %c0_107, %c0_108] : memref<6x32x32xbf16, #tpu.memory_space<vmem>>, vector<1x32x32xbf16>
    %140 = vector.shape_cast %139 : vector<1x32x32xbf16> to vector<32x32xbf16>
    %cst_109 = arith.constant dense<0.000000e+00> : vector<16x32xf32>
    %141 = tpu.matmul %131, %140, %cst_109 {dimension_numbers = #tpu.dot_dimension_numbers<[1], [0], [0], [1], [0, 0, 1, 1], [], []>} : vector<16x32xbf16>, vector<32x32xbf16>, vector<16x32xf32> -> vector<16x32xf32>
    %c2_110 = arith.constant 2 : index
    %c0_111 = arith.constant 0 : index
    %c0_112 = arith.constant 0 : index
    %142 = vector.load %arg10[%c2_110, %c0_111, %c0_112] : memref<6x1x32xf32, #tpu.memory_space<vmem>>, vector<1x1x32xf32>
    %143 = vector.shape_cast %142 : vector<1x1x32xf32> to vector<1x32xf32>
    %144 = vector.broadcast %143 : vector<1x32xf32> to vector<16x32xf32>
    %145 = arith.addf %141, %144 : vector<16x32xf32>
    %cst_113 = arith.constant 2.000000e+01 : f32
    %146 = vector.broadcast %cst_113 : f32 to vector<16x32xf32>
    %147 = arith.cmpf ogt, %145, %146 : vector<16x32xf32>
    %cst_114 = arith.constant 2.000000e+01 : f32
    %148 = vector.broadcast %cst_114 : f32 to vector<16x32xf32>
    %149 = arith.minimumf %145, %148 : vector<16x32xf32>
    %150 = math.exp %149 : vector<16x32xf32>
    %cst_115 = arith.constant 1.000000e+00 : f32
    %151 = vector.broadcast %cst_115 : f32 to vector<16x32xf32>
    %152 = arith.addf %151, %150 : vector<16x32xf32>
    %153 = math.log %152 : vector<16x32xf32>
    %154 = arith.select %147, %145, %153 : vector<16x32xi1>, vector<16x32xf32>
    %cst_116 = arith.constant 1.000000e-03 : f32
    %cst_117 = arith.constant 5.000000e+00 : f32
    %155 = vector.broadcast %cst_116 : f32 to vector<16x32xf32>
    %156 = arith.maximumf %155, %154 : vector<16x32xf32>
    %157 = vector.broadcast %cst_117 : f32 to vector<16x32xf32>
    %158 = arith.minimumf %157, %156 : vector<16x32xf32>
    %c2_118 = arith.constant 2 : index
    %c0_119 = arith.constant 0 : index
    %c0_120 = arith.constant 0 : index
    %159 = vector.load %arg4[%c2_118, %c0_119, %c0_120] : memref<6x16x32xbf16, #tpu.memory_space<vmem>>, vector<1x16x32xbf16>
    %160 = vector.shape_cast %159 : vector<1x16x32xbf16> to vector<16x32xbf16>
    %161 = arith.extf %160 : vector<16x32xbf16> to vector<16x32xf32>
    %162 = arith.mulf %161, %158 : vector<16x32xf32>
    %163 = arith.addf %162, %138 : vector<16x32xf32>
    %164 = arith.truncf %163 : vector<16x32xf32> to vector<16x32xbf16>
    %c2_121 = arith.constant 2 : index
    %c0_122 = arith.constant 0 : index
    %c0_123 = arith.constant 0 : index
    %165 = vector.load %arg13[%c2_121, %c0_122, %c0_123] : memref<3x16x32xbf16, #tpu.memory_space<vmem>>, vector<1x16x32xbf16>
    %166 = vector.shape_cast %165 : vector<1x16x32xbf16> to vector<16x32xbf16>
    %167 = vector.shape_cast %164 : vector<16x32xbf16> to vector<1x16x32xbf16>
    tpu.vector_store %arg13[%c2_121, %c0_122, %c0_123], %167 {strides = array<i32>} : memref<3x16x32xbf16, #tpu.memory_space<vmem>>, vector<1x16x32xbf16>,
    %c2_124 = arith.constant 2 : index
    %c0_125 = arith.constant 0 : index
    %c0_126 = arith.constant 0 : index
    %168 = vector.load %arg3[%c2_124, %c0_125, %c0_126] : memref<3x16x32xbf16, #tpu.memory_space<vmem>>, vector<1x16x32xbf16>
    %169 = vector.shape_cast %168 : vector<1x16x32xbf16> to vector<16x32xbf16>
    %c3 = arith.constant 3 : index
    %c0_127 = arith.constant 0 : index
    %c0_128 = arith.constant 0 : index
    %170 = vector.load %arg5[%c3, %c0_127, %c0_128] : memref<6x32x32xbf16, #tpu.memory_space<vmem>>, vector<1x32x32xbf16>
    %171 = vector.shape_cast %170 : vector<1x32x32xbf16> to vector<32x32xbf16>
    %cst_129 = arith.constant dense<0.000000e+00> : vector<16x32xf32>
    %172 = tpu.matmul %169, %171, %cst_129 {dimension_numbers = #tpu.dot_dimension_numbers<[1], [0], [0], [1], [0, 0, 1, 1], [], []>} : vector<16x32xbf16>, vector<32x32xbf16>, vector<16x32xf32> -> vector<16x32xf32>
    %c3_130 = arith.constant 3 : index
    %c0_131 = arith.constant 0 : index
    %c0_132 = arith.constant 0 : index
    %173 = vector.load %arg6[%c3_130, %c0_131, %c0_132] : memref<6x1x32xf32, #tpu.memory_space<vmem>>, vector<1x1x32xf32>
    %174 = vector.shape_cast %173 : vector<1x1x32xf32> to vector<1x32xf32>
    %175 = vector.broadcast %174 : vector<1x32xf32> to vector<16x32xf32>
    %176 = arith.addf %172, %175 : vector<16x32xf32>
    %cst_133 = arith.constant 0.000000e+00 : f32
    %177 = vector.broadcast %cst_133 : f32 to vector<16x32xf32>
    %178 = arith.maximumf %176, %177 : vector<16x32xf32>
    %179 = arith.truncf %178 : vector<16x32xf32> to vector<16x32xbf16>
    %c3_134 = arith.constant 3 : index
    %c0_135 = arith.constant 0 : index
    %c0_136 = arith.constant 0 : index
    %180 = vector.load %arg11[%c3_134, %c0_135, %c0_136] : memref<6x32x32xbf16, #tpu.memory_space<vmem>>, vector<1x32x32xbf16>
    %181 = vector.shape_cast %180 : vector<1x32x32xbf16> to vector<32x32xbf16>
    %cst_137 = arith.constant dense<0.000000e+00> : vector<16x32xf32>
    %182 = tpu.matmul %179, %181, %cst_137 {dimension_numbers = #tpu.dot_dimension_numbers<[1], [0], [0], [1], [0, 0, 1, 1], [], []>} : vector<16x32xbf16>, vector<32x32xbf16>, vector<16x32xf32> -> vector<16x32xf32>
    %c3_138 = arith.constant 3 : index
    %c0_139 = arith.constant 0 : index
    %c0_140 = arith.constant 0 : index
    %183 = vector.load %arg12[%c3_138, %c0_139, %c0_140] : memref<6x1x32xf32, #tpu.memory_space<vmem>>, vector<1x1x32xf32>
    %184 = vector.shape_cast %183 : vector<1x1x32xf32> to vector<1x32xf32>
    %185 = vector.broadcast %184 : vector<1x32xf32> to vector<16x32xf32>
    %186 = arith.addf %182, %185 : vector<16x32xf32>
    %c3_141 = arith.constant 3 : index
    %c0_142 = arith.constant 0 : index
    %c0_143 = arith.constant 0 : index
    %187 = vector.load %arg9[%c3_141, %c0_142, %c0_143] : memref<6x32x32xbf16, #tpu.memory_space<vmem>>, vector<1x32x32xbf16>
    %188 = vector.shape_cast %187 : vector<1x32x32xbf16> to vector<32x32xbf16>
    %cst_144 = arith.constant dense<0.000000e+00> : vector<16x32xf32>
    %189 = tpu.matmul %179, %188, %cst_144 {dimension_numbers = #tpu.dot_dimension_numbers<[1], [0], [0], [1], [0, 0, 1, 1], [], []>} : vector<16x32xbf16>, vector<32x32xbf16>, vector<16x32xf32> -> vector<16x32xf32>
    %c3_145 = arith.constant 3 : index
    %c0_146 = arith.constant 0 : index
    %c0_147 = arith.constant 0 : index
    %190 = vector.load %arg10[%c3_145, %c0_146, %c0_147] : memref<6x1x32xf32, #tpu.memory_space<vmem>>, vector<1x1x32xf32>
    %191 = vector.shape_cast %190 : vector<1x1x32xf32> to vector<1x32xf32>
    %192 = vector.broadcast %191 : vector<1x32xf32> to vector<16x32xf32>
    %193 = arith.addf %189, %192 : vector<16x32xf32>
    %cst_148 = arith.constant 2.000000e+01 : f32
    %194 = vector.broadcast %cst_148 : f32 to vector<16x32xf32>
    %195 = arith.cmpf ogt, %193, %194 : vector<16x32xf32>
    %cst_149 = arith.constant 2.000000e+01 : f32
    %196 = vector.broadcast %cst_149 : f32 to vector<16x32xf32>
    %197 = arith.minimumf %193, %196 : vector<16x32xf32>
    %198 = math.exp %197 : vector<16x32xf32>
    %cst_150 = arith.constant 1.000000e+00 : f32
    %199 = vector.broadcast %cst_150 : f32 to vector<16x32xf32>
    %200 = arith.addf %199, %198 : vector<16x32xf32>
    %201 = math.log %200 : vector<16x32xf32>
    %202 = arith.select %195, %193, %201 : vector<16x32xi1>, vector<16x32xf32>
    %cst_151 = arith.constant 1.000000e-03 : f32
    %cst_152 = arith.constant 5.000000e+00 : f32
    %203 = vector.broadcast %cst_151 : f32 to vector<16x32xf32>
    %204 = arith.maximumf %203, %202 : vector<16x32xf32>
    %205 = vector.broadcast %cst_152 : f32 to vector<16x32xf32>
    %206 = arith.minimumf %205, %204 : vector<16x32xf32>
    %c3_153 = arith.constant 3 : index
    %c0_154 = arith.constant 0 : index
    %c0_155 = arith.constant 0 : index
    %207 = vector.load %arg4[%c3_153, %c0_154, %c0_155] : memref<6x16x32xbf16, #tpu.memory_space<vmem>>, vector<1x16x32xbf16>
    %208 = vector.shape_cast %207 : vector<1x16x32xbf16> to vector<16x32xbf16>
    %209 = arith.extf %208 : vector<16x32xbf16> to vector<16x32xf32>
    %210 = arith.mulf %209, %206 : vector<16x32xf32>
    %211 = arith.addf %210, %186 : vector<16x32xf32>
    %c0_156 = arith.constant 0 : index
    %c0_157 = arith.constant 0 : index
    %c0_158 = arith.constant 0 : index
    %212 = vector.load %arg3[%c0_156, %c0_157, %c0_158] : memref<3x16x32xbf16, #tpu.memory_space<vmem>>, vector<1x16x32xbf16>
    %213 = vector.shape_cast %212 : vector<1x16x32xbf16> to vector<16x32xbf16>
    %c4 = arith.constant 4 : index
    %c0_159 = arith.constant 0 : index
    %c0_160 = arith.constant 0 : index
    %214 = vector.load %arg5[%c4, %c0_159, %c0_160] : memref<6x32x32xbf16, #tpu.memory_space<vmem>>, vector<1x32x32xbf16>
    %215 = vector.shape_cast %214 : vector<1x32x32xbf16> to vector<32x32xbf16>
    %cst_161 = arith.constant dense<0.000000e+00> : vector<16x32xf32>
    %216 = tpu.matmul %213, %215, %cst_161 {dimension_numbers = #tpu.dot_dimension_numbers<[1], [0], [0], [1], [0, 0, 1, 1], [], []>} : vector<16x32xbf16>, vector<32x32xbf16>, vector<16x32xf32> -> vector<16x32xf32>
    %c4_162 = arith.constant 4 : index
    %c0_163 = arith.constant 0 : index
    %c0_164 = arith.constant 0 : index
    %217 = vector.load %arg6[%c4_162, %c0_163, %c0_164] : memref<6x1x32xf32, #tpu.memory_space<vmem>>, vector<1x1x32xf32>
    %218 = vector.shape_cast %217 : vector<1x1x32xf32> to vector<1x32xf32>
    %219 = vector.broadcast %218 : vector<1x32xf32> to vector<16x32xf32>
    %220 = arith.addf %216, %219 : vector<16x32xf32>
    %cst_165 = arith.constant 0.000000e+00 : f32
    %221 = vector.broadcast %cst_165 : f32 to vector<16x32xf32>
    %222 = arith.maximumf %220, %221 : vector<16x32xf32>
    %223 = arith.truncf %211 : vector<16x32xf32> to vector<16x32xbf16>
    %c4_166 = arith.constant 4 : index
    %c0_167 = arith.constant 0 : index
    %c0_168 = arith.constant 0 : index
    %224 = vector.load %arg7[%c4_166, %c0_167, %c0_168] : memref<6x32x32xbf16, #tpu.memory_space<vmem>>, vector<1x32x32xbf16>
    %225 = vector.shape_cast %224 : vector<1x32x32xbf16> to vector<32x32xbf16>
    %cst_169 = arith.constant dense<0.000000e+00> : vector<16x32xf32>
    %226 = tpu.matmul %223, %225, %cst_169 {dimension_numbers = #tpu.dot_dimension_numbers<[1], [0], [0], [1], [0, 0, 1, 1], [], []>} : vector<16x32xbf16>, vector<32x32xbf16>, vector<16x32xf32> -> vector<16x32xf32>
    %c4_170 = arith.constant 4 : index
    %c0_171 = arith.constant 0 : index
    %c0_172 = arith.constant 0 : index
    %227 = vector.load %arg8[%c4_170, %c0_171, %c0_172] : memref<6x1x32xf32, #tpu.memory_space<vmem>>, vector<1x1x32xf32>
    %228 = vector.shape_cast %227 : vector<1x1x32xf32> to vector<1x32xf32>
    %229 = vector.broadcast %228 : vector<1x32xf32> to vector<16x32xf32>
    %230 = arith.addf %226, %229 : vector<16x32xf32>
    %cst_173 = arith.constant 0.000000e+00 : f32
    %231 = vector.broadcast %cst_173 : f32 to vector<16x32xf32>
    %232 = arith.maximumf %230, %231 : vector<16x32xf32>
    %233 = arith.addf %222, %232 : vector<16x32xf32>
    %234 = arith.truncf %233 : vector<16x32xf32> to vector<16x32xbf16>
    %c4_174 = arith.constant 4 : index
    %c0_175 = arith.constant 0 : index
    %c0_176 = arith.constant 0 : index
    %235 = vector.load %arg11[%c4_174, %c0_175, %c0_176] : memref<6x32x32xbf16, #tpu.memory_space<vmem>>, vector<1x32x32xbf16>
    %236 = vector.shape_cast %235 : vector<1x32x32xbf16> to vector<32x32xbf16>
    %cst_177 = arith.constant dense<0.000000e+00> : vector<16x32xf32>
    %237 = tpu.matmul %234, %236, %cst_177 {dimension_numbers = #tpu.dot_dimension_numbers<[1], [0], [0], [1], [0, 0, 1, 1], [], []>} : vector<16x32xbf16>, vector<32x32xbf16>, vector<16x32xf32> -> vector<16x32xf32>
    %c4_178 = arith.constant 4 : index
    %c0_179 = arith.constant 0 : index
    %c0_180 = arith.constant 0 : index
    %238 = vector.load %arg12[%c4_178, %c0_179, %c0_180] : memref<6x1x32xf32, #tpu.memory_space<vmem>>, vector<1x1x32xf32>
    %239 = vector.shape_cast %238 : vector<1x1x32xf32> to vector<1x32xf32>
    %240 = vector.broadcast %239 : vector<1x32xf32> to vector<16x32xf32>
    %241 = arith.addf %237, %240 : vector<16x32xf32>
    %c4_181 = arith.constant 4 : index
    %c0_182 = arith.constant 0 : index
    %c0_183 = arith.constant 0 : index
    %242 = vector.load %arg9[%c4_181, %c0_182, %c0_183] : memref<6x32x32xbf16, #tpu.memory_space<vmem>>, vector<1x32x32xbf16>
    %243 = vector.shape_cast %242 : vector<1x32x32xbf16> to vector<32x32xbf16>
    %cst_184 = arith.constant dense<0.000000e+00> : vector<16x32xf32>
    %244 = tpu.matmul %234, %243, %cst_184 {dimension_numbers = #tpu.dot_dimension_numbers<[1], [0], [0], [1], [0, 0, 1, 1], [], []>} : vector<16x32xbf16>, vector<32x32xbf16>, vector<16x32xf32> -> vector<16x32xf32>
    %c4_185 = arith.constant 4 : index
    %c0_186 = arith.constant 0 : index
    %c0_187 = arith.constant 0 : index
    %245 = vector.load %arg10[%c4_185, %c0_186, %c0_187] : memref<6x1x32xf32, #tpu.memory_space<vmem>>, vector<1x1x32xf32>
    %246 = vector.shape_cast %245 : vector<1x1x32xf32> to vector<1x32xf32>
    %247 = vector.broadcast %246 : vector<1x32xf32> to vector<16x32xf32>
    %248 = arith.addf %244, %247 : vector<16x32xf32>
    %cst_188 = arith.constant 2.000000e+01 : f32
    %249 = vector.broadcast %cst_188 : f32 to vector<16x32xf32>
    %250 = arith.cmpf ogt, %248, %249 : vector<16x32xf32>
    %cst_189 = arith.constant 2.000000e+01 : f32
    %251 = vector.broadcast %cst_189 : f32 to vector<16x32xf32>
    %252 = arith.minimumf %248, %251 : vector<16x32xf32>
    %253 = math.exp %252 : vector<16x32xf32>
    %cst_190 = arith.constant 1.000000e+00 : f32
    %254 = vector.broadcast %cst_190 : f32 to vector<16x32xf32>
    %255 = arith.addf %254, %253 : vector<16x32xf32>
    %256 = math.log %255 : vector<16x32xf32>
    %257 = arith.select %250, %248, %256 : vector<16x32xi1>, vector<16x32xf32>
    %cst_191 = arith.constant 1.000000e-03 : f32
    %cst_192 = arith.constant 5.000000e+00 : f32
    %258 = vector.broadcast %cst_191 : f32 to vector<16x32xf32>
    %259 = arith.maximumf %258, %257 : vector<16x32xf32>
    %260 = vector.broadcast %cst_192 : f32 to vector<16x32xf32>
    %261 = arith.minimumf %260, %259 : vector<16x32xf32>
    %c4_193 = arith.constant 4 : index
    %c0_194 = arith.constant 0 : index
    %c0_195 = arith.constant 0 : index
    %262 = vector.load %arg4[%c4_193, %c0_194, %c0_195] : memref<6x16x32xbf16, #tpu.memory_space<vmem>>, vector<1x16x32xbf16>
    %263 = vector.shape_cast %262 : vector<1x16x32xbf16> to vector<16x32xbf16>
    %264 = arith.extf %263 : vector<16x32xbf16> to vector<16x32xf32>
    %265 = arith.mulf %264, %261 : vector<16x32xf32>
    %266 = arith.addf %265, %241 : vector<16x32xf32>
    %c1_196 = arith.constant 1 : index
    %c0_197 = arith.constant 0 : index
    %c0_198 = arith.constant 0 : index
    %267 = vector.load %arg3[%c1_196, %c0_197, %c0_198] : memref<3x16x32xbf16, #tpu.memory_space<vmem>>, vector<1x16x32xbf16>
    %268 = vector.shape_cast %267 : vector<1x16x32xbf16> to vector<16x32xbf16>
    %c5 = arith.constant 5 : index
    %c0_199 = arith.constant 0 : index
    %c0_200 = arith.constant 0 : index
    %269 = vector.load %arg5[%c5, %c0_199, %c0_200] : memref<6x32x32xbf16, #tpu.memory_space<vmem>>, vector<1x32x32xbf16>
    %270 = vector.shape_cast %269 : vector<1x32x32xbf16> to vector<32x32xbf16>
    %cst_201 = arith.constant dense<0.000000e+00> : vector<16x32xf32>
    %271 = tpu.matmul %268, %270, %cst_201 {dimension_numbers = #tpu.dot_dimension_numbers<[1], [0], [0], [1], [0, 0, 1, 1], [], []>} : vector<16x32xbf16>, vector<32x32xbf16>, vector<16x32xf32> -> vector<16x32xf32>
    %c5_202 = arith.constant 5 : index
    %c0_203 = arith.constant 0 : index
    %c0_204 = arith.constant 0 : index
    %272 = vector.load %arg6[%c5_202, %c0_203, %c0_204] : memref<6x1x32xf32, #tpu.memory_space<vmem>>, vector<1x1x32xf32>
    %273 = vector.shape_cast %272 : vector<1x1x32xf32> to vector<1x32xf32>
    %274 = vector.broadcast %273 : vector<1x32xf32> to vector<16x32xf32>
    %275 = arith.addf %271, %274 : vector<16x32xf32>
    %cst_205 = arith.constant 0.000000e+00 : f32
    %276 = vector.broadcast %cst_205 : f32 to vector<16x32xf32>
    %277 = arith.maximumf %275, %276 : vector<16x32xf32>
    %278 = arith.truncf %266 : vector<16x32xf32> to vector<16x32xbf16>
    %c5_206 = arith.constant 5 : index
    %c0_207 = arith.constant 0 : index
    %c0_208 = arith.constant 0 : index
    %279 = vector.load %arg7[%c5_206, %c0_207, %c0_208] : memref<6x32x32xbf16, #tpu.memory_space<vmem>>, vector<1x32x32xbf16>
    %280 = vector.shape_cast %279 : vector<1x32x32xbf16> to vector<32x32xbf16>
    %cst_209 = arith.constant dense<0.000000e+00> : vector<16x32xf32>
    %281 = tpu.matmul %278, %280, %cst_209 {dimension_numbers = #tpu.dot_dimension_numbers<[1], [0], [0], [1], [0, 0, 1, 1], [], []>} : vector<16x32xbf16>, vector<32x32xbf16>, vector<16x32xf32> -> vector<16x32xf32>
    %c5_210 = arith.constant 5 : index
    %c0_211 = arith.constant 0 : index
    %c0_212 = arith.constant 0 : index
    %282 = vector.load %arg8[%c5_210, %c0_211, %c0_212] : memref<6x1x32xf32, #tpu.memory_space<vmem>>, vector<1x1x32xf32>
    %283 = vector.shape_cast %282 : vector<1x1x32xf32> to vector<1x32xf32>
    %284 = vector.broadcast %283 : vector<1x32xf32> to vector<16x32xf32>
    %285 = arith.addf %281, %284 : vector<16x32xf32>
    %cst_213 = arith.constant 0.000000e+00 : f32
    %286 = vector.broadcast %cst_213 : f32 to vector<16x32xf32>
    %287 = arith.maximumf %285, %286 : vector<16x32xf32>
    %288 = arith.addf %277, %287 : vector<16x32xf32>
    %289 = arith.truncf %288 : vector<16x32xf32> to vector<16x32xbf16>
    %c5_214 = arith.constant 5 : index
    %c0_215 = arith.constant 0 : index
    %c0_216 = arith.constant 0 : index
    %290 = vector.load %arg11[%c5_214, %c0_215, %c0_216] : memref<6x32x32xbf16, #tpu.memory_space<vmem>>, vector<1x32x32xbf16>
    %291 = vector.shape_cast %290 : vector<1x32x32xbf16> to vector<32x32xbf16>
    %cst_217 = arith.constant dense<0.000000e+00> : vector<16x32xf32>
    %292 = tpu.matmul %289, %291, %cst_217 {dimension_numbers = #tpu.dot_dimension_numbers<[1], [0], [0], [1], [0, 0, 1, 1], [], []>} : vector<16x32xbf16>, vector<32x32xbf16>, vector<16x32xf32> -> vector<16x32xf32>
    %c5_218 = arith.constant 5 : index
    %c0_219 = arith.constant 0 : index
    %c0_220 = arith.constant 0 : index
    %293 = vector.load %arg12[%c5_218, %c0_219, %c0_220] : memref<6x1x32xf32, #tpu.memory_space<vmem>>, vector<1x1x32xf32>
    %294 = vector.shape_cast %293 : vector<1x1x32xf32> to vector<1x32xf32>
    %295 = vector.broadcast %294 : vector<1x32xf32> to vector<16x32xf32>
    %296 = arith.addf %292, %295 : vector<16x32xf32>
    %c5_221 = arith.constant 5 : index
    %c0_222 = arith.constant 0 : index
    %c0_223 = arith.constant 0 : index
    %297 = vector.load %arg9[%c5_221, %c0_222, %c0_223] : memref<6x32x32xbf16, #tpu.memory_space<vmem>>, vector<1x32x32xbf16>
    %298 = vector.shape_cast %297 : vector<1x32x32xbf16> to vector<32x32xbf16>
    %cst_224 = arith.constant dense<0.000000e+00> : vector<16x32xf32>
    %299 = tpu.matmul %289, %298, %cst_224 {dimension_numbers = #tpu.dot_dimension_numbers<[1], [0], [0], [1], [0, 0, 1, 1], [], []>} : vector<16x32xbf16>, vector<32x32xbf16>, vector<16x32xf32> -> vector<16x32xf32>
    %c5_225 = arith.constant 5 : index
    %c0_226 = arith.constant 0 : index
    %c0_227 = arith.constant 0 : index
    %300 = vector.load %arg10[%c5_225, %c0_226, %c0_227] : memref<6x1x32xf32, #tpu.memory_space<vmem>>, vector<1x1x32xf32>
    %301 = vector.shape_cast %300 : vector<1x1x32xf32> to vector<1x32xf32>
    %302 = vector.broadcast %301 : vector<1x32xf32> to vector<16x32xf32>
    %303 = arith.addf %299, %302 : vector<16x32xf32>
    %cst_228 = arith.constant 2.000000e+01 : f32
    %304 = vector.broadcast %cst_228 : f32 to vector<16x32xf32>
    %305 = arith.cmpf ogt, %303, %304 : vector<16x32xf32>
    %cst_229 = arith.constant 2.000000e+01 : f32
    %306 = vector.broadcast %cst_229 : f32 to vector<16x32xf32>
    %307 = arith.minimumf %303, %306 : vector<16x32xf32>
    %308 = math.exp %307 : vector<16x32xf32>
    %cst_230 = arith.constant 1.000000e+00 : f32
    %309 = vector.broadcast %cst_230 : f32 to vector<16x32xf32>
    %310 = arith.addf %309, %308 : vector<16x32xf32>
    %311 = math.log %310 : vector<16x32xf32>
    %312 = arith.select %305, %303, %311 : vector<16x32xi1>, vector<16x32xf32>
    %cst_231 = arith.constant 1.000000e-03 : f32
    %cst_232 = arith.constant 5.000000e+00 : f32
    %313 = vector.broadcast %cst_231 : f32 to vector<16x32xf32>
    %314 = arith.maximumf %313, %312 : vector<16x32xf32>
    %315 = vector.broadcast %cst_232 : f32 to vector<16x32xf32>
    %316 = arith.minimumf %315, %314 : vector<16x32xf32>
    %cst_233 = arith.constant 0.000000e+00 : f32
    %317 = vector.broadcast %cst_233 : f32 to vector<16x1xf32>
    %c15_i32 = arith.constant 15 : i32
    %318 = tpu.dynamic_rotate %186 by %c15_i32 dim 0 : vector<16x32xf32>, i32 -> vector<16x32xf32>
    %c15_i32_234 = arith.constant 15 : i32
    %319 = tpu.dynamic_rotate %206 by %c15_i32_234 dim 0 : vector<16x32xf32>, i32 -> vector<16x32xf32>
    %320 = arith.mulf %319, %319 : vector<16x32xf32>
    %321 = tpu.reciprocal %320 {approx = true} : vector<16x32xf32> -> vector<16x32xf32>
    %322 = tpu.reciprocal %40 {approx = true} : vector<16x32xf32> -> vector<16x32xf32>
    %323 = arith.mulf %319, %322 : vector<16x32xf32>
    %324 = math.log %323 : vector<16x32xf32>
    %cst_235 = arith.constant 2.000000e+00 : f32
    %325 = vector.broadcast %cst_235 : f32 to vector<16x32xf32>
    %326 = arith.mulf %325, %324 : vector<16x32xf32>
    %327 = arith.mulf %40, %40 : vector<16x32xf32>
    %328 = arith.subf %20, %318 : vector<16x32xf32>
    %329 = arith.mulf %328, %328 : vector<16x32xf32>
    %330 = arith.addf %327, %329 : vector<16x32xf32>
    %331 = arith.mulf %330, %321 : vector<16x32xf32>
    %332 = arith.addf %326, %331 : vector<16x32xf32>
    %cst_236 = arith.constant 1.000000e+00 : f32
    %333 = vector.broadcast %cst_236 : f32 to vector<16x32xf32>
    %334 = arith.subf %332, %333 : vector<16x32xf32>
    %cst_237 = arith.constant dense<0.000000e+00> : vector<16xf32>
    %335 = vector.multi_reduction <add>, %334, %cst_237 [1] : vector<16x32xf32> to vector<16xf32>
    %336 = vector.shape_cast %335 : vector<16xf32> to vector<16x1xf32>
    %337 = arith.addf %317, %336 : vector<16x1xf32>
    %c15_i32_238 = arith.constant 15 : i32
    %338 = tpu.dynamic_rotate %241 by %c15_i32_238 dim 0 : vector<16x32xf32>, i32 -> vector<16x32xf32>
    %c15_i32_239 = arith.constant 15 : i32
    %339 = tpu.dynamic_rotate %261 by %c15_i32_239 dim 0 : vector<16x32xf32>, i32 -> vector<16x32xf32>
    %340 = arith.mulf %339, %339 : vector<16x32xf32>
    %341 = tpu.reciprocal %340 {approx = true} : vector<16x32xf32> -> vector<16x32xf32>
    %342 = tpu.reciprocal %99 {approx = true} : vector<16x32xf32> -> vector<16x32xf32>
    %343 = arith.mulf %339, %342 : vector<16x32xf32>
    %344 = math.log %343 : vector<16x32xf32>
    %cst_240 = arith.constant 2.000000e+00 : f32
    %345 = vector.broadcast %cst_240 : f32 to vector<16x32xf32>
    %346 = arith.mulf %345, %344 : vector<16x32xf32>
    %347 = arith.mulf %99, %99 : vector<16x32xf32>
    %348 = arith.subf %79, %338 : vector<16x32xf32>
    %349 = arith.mulf %348, %348 : vector<16x32xf32>
    %350 = arith.addf %347, %349 : vector<16x32xf32>
    %351 = arith.mulf %350, %341 : vector<16x32xf32>
    %352 = arith.addf %346, %351 : vector<16x32xf32>
    %cst_241 = arith.constant 1.000000e+00 : f32
    %353 = vector.broadcast %cst_241 : f32 to vector<16x32xf32>
    %354 = arith.subf %352, %353 : vector<16x32xf32>
    %cst_242 = arith.constant dense<0.000000e+00> : vector<16xf32>
    %355 = vector.multi_reduction <add>, %354, %cst_242 [1] : vector<16x32xf32> to vector<16xf32>
    %356 = vector.shape_cast %355 : vector<16xf32> to vector<16x1xf32>
    %357 = arith.addf %337, %356 : vector<16x1xf32>
    %c15_i32_243 = arith.constant 15 : i32
    %358 = tpu.dynamic_rotate %296 by %c15_i32_243 dim 0 : vector<16x32xf32>, i32 -> vector<16x32xf32>
    %c15_i32_244 = arith.constant 15 : i32
    %359 = tpu.dynamic_rotate %316 by %c15_i32_244 dim 0 : vector<16x32xf32>, i32 -> vector<16x32xf32>
    %360 = arith.mulf %359, %359 : vector<16x32xf32>
    %361 = tpu.reciprocal %360 {approx = true} : vector<16x32xf32> -> vector<16x32xf32>
    %362 = tpu.reciprocal %158 {approx = true} : vector<16x32xf32> -> vector<16x32xf32>
    %363 = arith.mulf %359, %362 : vector<16x32xf32>
    %364 = math.log %363 : vector<16x32xf32>
    %cst_245 = arith.constant 2.000000e+00 : f32
    %365 = vector.broadcast %cst_245 : f32 to vector<16x32xf32>
    %366 = arith.mulf %365, %364 : vector<16x32xf32>
    %367 = arith.mulf %158, %158 : vector<16x32xf32>
    %368 = arith.subf %138, %358 : vector<16x32xf32>
    %369 = arith.mulf %368, %368 : vector<16x32xf32>
    %370 = arith.addf %367, %369 : vector<16x32xf32>
    %371 = arith.mulf %370, %361 : vector<16x32xf32>
    %372 = arith.addf %366, %371 : vector<16x32xf32>
    %cst_246 = arith.constant 1.000000e+00 : f32
    %373 = vector.broadcast %cst_246 : f32 to vector<16x32xf32>
    %374 = arith.subf %372, %373 : vector<16x32xf32>
    %cst_247 = arith.constant dense<0.000000e+00> : vector<16xf32>
    %375 = vector.multi_reduction <add>, %374, %cst_247 [1] : vector<16x32xf32> to vector<16xf32>
    %376 = vector.shape_cast %375 : vector<16xf32> to vector<16x1xf32>
    %377 = arith.addf %357, %376 : vector<16x1xf32>
    %c1_i32 = arith.constant 1 : i32
    %378 = vector.broadcast %c1_i32 : i32 to vector<16x1xi32>
    %379 = arith.subi %1, %378 : vector<16x1xi32>
    %380 = arith.cmpi slt, %0, %379 : vector<16x1xi32>
    %c1_i32_248 = arith.constant 1 : i32
    %381 = vector.broadcast %c1_i32_248 : i32 to vector<16x1xi32>
    %382 = arith.subi %1, %381 : vector<16x1xi32>
    %c1_i32_249 = arith.constant 1 : i32
    %383 = vector.broadcast %c1_i32_249 : i32 to vector<16x1xi32>
    %384 = arith.maxsi %382, %383 : vector<16x1xi32>
    %c96_i32 = arith.constant 96 : i32
    %385 = vector.broadcast %c96_i32 : i32 to vector<16x1xi32>
    %386 = arith.muli %385, %384 : vector<16x1xi32>
    %387 = arith.sitofp %386 : vector<16x1xi32> to vector<16x1xf32>
    %388 = arith.divf %377, %387 : vector<16x1xf32>
    %cst_250 = arith.constant 0.000000e+00 : f32
    %389 = vector.broadcast %cst_250 : f32 to vector<16x1xf32>
    %390 = arith.select %380, %388, %389 : vector<16x1xi1>, vector<16x1xf32>
    %c0_251 = arith.constant 0 : index
    %c0_252 = arith.constant 0 : index
    %391 = vector.load %arg14[%c0_251, %c0_252] : memref<16x1xf32, #tpu.memory_space<vmem>>, vector<16x1xf32>
    tpu.vector_store %arg14[%c0_251, %c0_252], %390 {strides = array<i32>} : memref<16x1xf32, #tpu.memory_space<vmem>>, vector<16x1xf32>,
    return
  }
  func.func @transform_0(%arg0: i32) -> (i32, i32) {
    %c0_i32 = arith.constant 0 : i32
    %c0_i32_0 = arith.constant 0 : i32
    return %arg0, %c0_i32 : i32, i32
  }
  func.func @transform_1(%arg0: i32) -> (i32, i32) {
    %c0_i32 = arith.constant 0 : i32
    %c0_i32_0 = arith.constant 0 : i32
    return %arg0, %c0_i32 : i32, i32
  }
  func.func @transform_2(%arg0: i32) -> (i32, i32, i32) {
    %c0_i32 = arith.constant 0 : i32
    %c0_i32_0 = arith.constant 0 : i32
    %c0_i32_1 = arith.constant 0 : i32
    return %c0_i32, %arg0, %c0_i32_0 : i32, i32, i32
  }
  func.func @transform_3(%arg0: i32) -> (i32, i32, i32) {
    %c0_i32 = arith.constant 0 : i32
    %c0_i32_0 = arith.constant 0 : i32
    %c0_i32_1 = arith.constant 0 : i32
    return %c0_i32, %arg0, %c0_i32_0 : i32, i32, i32
  }
  func.func @transform_4(%arg0: i32) -> (i32, i32, i32) {
    %c0_i32 = arith.constant 0 : i32
    %c0_i32_0 = arith.constant 0 : i32
    %c0_i32_1 = arith.constant 0 : i32
    %c0_i32_2 = arith.constant 0 : i32
    return %c0_i32, %c0_i32_0, %c0_i32_1 : i32, i32, i32
  }
  func.func @transform_5(%arg0: i32) -> (i32, i32, i32) {
    %c0_i32 = arith.constant 0 : i32
    %c0_i32_0 = arith.constant 0 : i32
    %c0_i32_1 = arith.constant 0 : i32
    %c0_i32_2 = arith.constant 0 : i32
    return %c0_i32, %c0_i32_0, %c0_i32_1 : i32, i32, i32
  }
  func.func @transform_6(%arg0: i32) -> (i32, i32, i32) {
    %c0_i32 = arith.constant 0 : i32
    %c0_i32_0 = arith.constant 0 : i32
    %c0_i32_1 = arith.constant 0 : i32
    %c0_i32_2 = arith.constant 0 : i32
    return %c0_i32, %c0_i32_0, %c0_i32_1 : i32, i32, i32
  }
  func.func @transform_7(%arg0: i32) -> (i32, i32, i32) {
    %c0_i32 = arith.constant 0 : i32
    %c0_i32_0 = arith.constant 0 : i32
    %c0_i32_1 = arith.constant 0 : i32
    %c0_i32_2 = arith.constant 0 : i32
    return %c0_i32, %c0_i32_0, %c0_i32_1 : i32, i32, i32
  }
  func.func @transform_8(%arg0: i32) -> (i32, i32, i32) {
    %c0_i32 = arith.constant 0 : i32
    %c0_i32_0 = arith.constant 0 : i32
    %c0_i32_1 = arith.constant 0 : i32
    %c0_i32_2 = arith.constant 0 : i32
    return %c0_i32, %c0_i32_0, %c0_i32_1 : i32, i32, i32
  }
  func.func @transform_9(%arg0: i32) -> (i32, i32, i32) {
    %c0_i32 = arith.constant 0 : i32
    %c0_i32_0 = arith.constant 0 : i32
    %c0_i32_1 = arith.constant 0 : i32
    %c0_i32_2 = arith.constant 0 : i32
    return %c0_i32, %c0_i32_0, %c0_i32_1 : i32, i32, i32
  }
  func.func @transform_10(%arg0: i32) -> (i32, i32, i32) {
    %c0_i32 = arith.constant 0 : i32
    %c0_i32_0 = arith.constant 0 : i32
    %c0_i32_1 = arith.constant 0 : i32
    %c0_i32_2 = arith.constant 0 : i32
    return %c0_i32, %c0_i32_0, %c0_i32_1 : i32, i32, i32
  }
  func.func @transform_11(%arg0: i32) -> (i32, i32, i32) {
    %c0_i32 = arith.constant 0 : i32
    %c0_i32_0 = arith.constant 0 : i32
    %c0_i32_1 = arith.constant 0 : i32
    %c0_i32_2 = arith.constant 0 : i32
    return %c0_i32, %c0_i32_0, %c0_i32_1 : i32, i32, i32
  }
  func.func @transform_12(%arg0: i32) -> (i32, i32, i32) {
    %c0_i32 = arith.constant 0 : i32
    %c0_i32_0 = arith.constant 0 : i32
    %c0_i32_1 = arith.constant 0 : i32
    return %c0_i32, %arg0, %c0_i32_0 : i32, i32, i32
  }
  func.func @transform_13(%arg0: i32) -> (i32, i32) {
    %c0_i32 = arith.constant 0 : i32
    %c0_i32_0 = arith.constant 0 : i32
    return %arg0, %c0_i32 : i32, i32
  }
}

module attributes {stable_mosaic.version = 11 : i64} {
  func.func @_decoder_nll_kernel(%arg0: i32, %arg1: i32, %arg2: memref<16x1xi32, #tpu.memory_space<vmem>>, %arg3: memref<1xi32, #tpu.memory_space<smem>>, %arg4: memref<3x16x32xbf16, #tpu.memory_space<vmem>>, %arg5: memref<3x32x32xbf16, #tpu.memory_space<vmem>>, %arg6: memref<1x32xf32, #tpu.memory_space<vmem>>, %arg7: memref<16x1xi32, #tpu.memory_space<vmem>>, %arg8: memref<16x32xf32, #tpu.memory_space<vmem>>, %arg9: memref<16x1xf32, #tpu.memory_space<vmem>>, %arg10: memref<16x1xf32, #tpu.memory_space<vmem>>, %arg11: memref<16x1xf32, #tpu.memory_space<vmem>>, %arg12: memref<16x1xf32, #tpu.memory_space<vmem>>) attributes {dimension_semantics = [#tpu.dimension_semantics<parallel>, #tpu.dimension_semantics<arbitrary>], iteration_bounds = array<i64: 1, 1>, scalar_prefetch = 0 : i64, scratch_operands = 3 : i64, tpu.core_type = #tpu.core_type<tc>, window_params = [{transform_indices = @transform_0, window_bounds = array<i64: 16, 1>}, {transform_indices = @transform_1, window_bounds = array<i64: 1>}, {transform_indices = @transform_2, window_bounds = array<i64: 3, 16, 32>}, {transform_indices = @transform_3, window_bounds = array<i64: 3, 32, 32>}, {transform_indices = @transform_4, window_bounds = array<i64: 1, 32>}, {transform_indices = @transform_5, window_bounds = array<i64: 16, 1>}, {transform_indices = @transform_6, window_bounds = array<i64: 16, 32>}, {transform_indices = @transform_7, window_bounds = array<i64: 16, 1>}]} {
    %c0_i32 = arith.constant 0 : i32
    %0 = arith.cmpi eq, %arg1, %c0_i32 : i32
    %1 = arith.extui %0 : i1 to i32
    %c0_i32_0 = arith.constant 0 : i32
    %2 = arith.cmpi ne, %1, %c0_i32_0 : i32
    scf.if %2 {
      %cst_43 = arith.constant 0xFF800000 : f32
      %59 = vector.broadcast %cst_43 : f32 to vector<16x1xf32>
      %c0_44 = arith.constant 0 : index
      %c0_45 = arith.constant 0 : index
      %60 = vector.load %arg10[%c0_44, %c0_45] : memref<16x1xf32, #tpu.memory_space<vmem>>, vector<16x1xf32>
      tpu.vector_store %arg10[%c0_44, %c0_45], %59 {strides = array<i32>} : memref<16x1xf32, #tpu.memory_space<vmem>>, vector<16x1xf32>,
      %cst_46 = arith.constant 0.000000e+00 : f32
      %61 = vector.broadcast %cst_46 : f32 to vector<16x1xf32>
      %c0_47 = arith.constant 0 : index
      %c0_48 = arith.constant 0 : index
      %62 = vector.load %arg11[%c0_47, %c0_48] : memref<16x1xf32, #tpu.memory_space<vmem>>, vector<16x1xf32>
      tpu.vector_store %arg11[%c0_47, %c0_48], %61 {strides = array<i32>} : memref<16x1xf32, #tpu.memory_space<vmem>>, vector<16x1xf32>,
      %cst_49 = arith.constant 0.000000e+00 : f32
      %63 = vector.broadcast %cst_49 : f32 to vector<16x1xf32>
      %c0_50 = arith.constant 0 : index
      %c0_51 = arith.constant 0 : index
      %64 = vector.load %arg12[%c0_50, %c0_51] : memref<16x1xf32, #tpu.memory_space<vmem>>, vector<16x1xf32>
      tpu.vector_store %arg12[%c0_50, %c0_51], %63 {strides = array<i32>} : memref<16x1xf32, #tpu.memory_space<vmem>>, vector<16x1xf32>,
    } else {
    }
    %cst = arith.constant 0.000000e+00 : f32
    %3 = vector.broadcast %cst : f32 to vector<16x32xf32>
    %c0 = arith.constant 0 : index
    %c0_1 = arith.constant 0 : index
    %c0_2 = arith.constant 0 : index
    %4 = vector.load %arg4[%c0, %c0_1, %c0_2] : memref<3x16x32xbf16, #tpu.memory_space<vmem>>, vector<1x16x32xbf16>
    %5 = vector.shape_cast %4 : vector<1x16x32xbf16> to vector<16x32xbf16>
    %c0_3 = arith.constant 0 : index
    %c0_4 = arith.constant 0 : index
    %c0_5 = arith.constant 0 : index
    %6 = vector.load %arg5[%c0_3, %c0_4, %c0_5] : memref<3x32x32xbf16, #tpu.memory_space<vmem>>, vector<1x32x32xbf16>
    %7 = vector.shape_cast %6 : vector<1x32x32xbf16> to vector<32x32xbf16>
    %cst_6 = arith.constant dense<0.000000e+00> : vector<16x32xf32>
    %8 = tpu.matmul %5, %7, %cst_6 {dimension_numbers = #tpu.dot_dimension_numbers<[1], [0], [0], [1], [0, 0, 1, 1], [], []>} : vector<16x32xbf16>, vector<32x32xbf16>, vector<16x32xf32> -> vector<16x32xf32>
    %9 = arith.addf %3, %8 : vector<16x32xf32>
    %c1 = arith.constant 1 : index
    %c0_7 = arith.constant 0 : index
    %c0_8 = arith.constant 0 : index
    %10 = vector.load %arg4[%c1, %c0_7, %c0_8] : memref<3x16x32xbf16, #tpu.memory_space<vmem>>, vector<1x16x32xbf16>
    %11 = vector.shape_cast %10 : vector<1x16x32xbf16> to vector<16x32xbf16>
    %c1_9 = arith.constant 1 : index
    %c0_10 = arith.constant 0 : index
    %c0_11 = arith.constant 0 : index
    %12 = vector.load %arg5[%c1_9, %c0_10, %c0_11] : memref<3x32x32xbf16, #tpu.memory_space<vmem>>, vector<1x32x32xbf16>
    %13 = vector.shape_cast %12 : vector<1x32x32xbf16> to vector<32x32xbf16>
    %cst_12 = arith.constant dense<0.000000e+00> : vector<16x32xf32>
    %14 = tpu.matmul %11, %13, %cst_12 {dimension_numbers = #tpu.dot_dimension_numbers<[1], [0], [0], [1], [0, 0, 1, 1], [], []>} : vector<16x32xbf16>, vector<32x32xbf16>, vector<16x32xf32> -> vector<16x32xf32>
    %15 = arith.addf %9, %14 : vector<16x32xf32>
    %c2 = arith.constant 2 : index
    %c0_13 = arith.constant 0 : index
    %c0_14 = arith.constant 0 : index
    %16 = vector.load %arg4[%c2, %c0_13, %c0_14] : memref<3x16x32xbf16, #tpu.memory_space<vmem>>, vector<1x16x32xbf16>
    %17 = vector.shape_cast %16 : vector<1x16x32xbf16> to vector<16x32xbf16>
    %c2_15 = arith.constant 2 : index
    %c0_16 = arith.constant 0 : index
    %c0_17 = arith.constant 0 : index
    %18 = vector.load %arg5[%c2_15, %c0_16, %c0_17] : memref<3x32x32xbf16, #tpu.memory_space<vmem>>, vector<1x32x32xbf16>
    %19 = vector.shape_cast %18 : vector<1x32x32xbf16> to vector<32x32xbf16>
    %cst_18 = arith.constant dense<0.000000e+00> : vector<16x32xf32>
    %20 = tpu.matmul %17, %19, %cst_18 {dimension_numbers = #tpu.dot_dimension_numbers<[1], [0], [0], [1], [0, 0, 1, 1], [], []>} : vector<16x32xbf16>, vector<32x32xbf16>, vector<16x32xf32> -> vector<16x32xf32>
    %21 = arith.addf %15, %20 : vector<16x32xf32>
    %c0_19 = arith.constant 0 : index
    %c0_20 = arith.constant 0 : index
    %22 = vector.load %arg6[%c0_19, %c0_20] : memref<1x32xf32, #tpu.memory_space<vmem>>, vector<1x32xf32>
    %23 = vector.broadcast %22 : vector<1x32xf32> to vector<16x32xf32>
    %24 = arith.addf %21, %23 : vector<16x32xf32>
    %c0_21 = arith.constant 0 : index
    %c0_22 = arith.constant 0 : index
    %25 = vector.load %arg8[%c0_21, %c0_22] : memref<16x32xf32, #tpu.memory_space<vmem>>, vector<16x32xf32>
    tpu.vector_store %arg8[%c0_21, %c0_22], %24 {strides = array<i32>} : memref<16x32xf32, #tpu.memory_space<vmem>>, vector<16x32xf32>,
    %c0_23 = arith.constant 0 : index
    %c0_24 = arith.constant 0 : index
    %26 = vector.load %arg7[%c0_23, %c0_24] : memref<16x1xi32, #tpu.memory_space<vmem>>, vector<16x1xi32>
    %27 = tpu.iota {dimensions = array<i32: 1>} : vector<16x32xi32>
    %c32_i32 = arith.constant 32 : i32
    %28 = arith.muli %arg1, %c32_i32 : i32
    %29 = vector.broadcast %28 : i32 to vector<16x32xi32>
    %30 = arith.addi %27, %29 : vector<16x32xi32>
    %c0_25 = arith.constant 0 : index
    %c0_26 = arith.constant 0 : index
    %31 = vector.load %arg12[%c0_25, %c0_26] : memref<16x1xf32, #tpu.memory_space<vmem>>, vector<16x1xf32>
    %32 = vector.broadcast %26 : vector<16x1xi32> to vector<16x32xi32>
    %33 = arith.cmpi eq, %30, %32 : vector<16x32xi32>
    %cst_27 = arith.constant 0.000000e+00 : f32
    %34 = vector.broadcast %cst_27 : f32 to vector<16x32xf32>
    %35 = arith.select %33, %24, %34 : vector<16x32xi1>, vector<16x32xf32>
    %cst_28 = arith.constant dense<0.000000e+00> : vector<16xf32>
    %36 = vector.multi_reduction <add>, %35, %cst_28 [1] : vector<16x32xf32> to vector<16xf32>
    %37 = vector.shape_cast %36 : vector<16xf32> to vector<16x1xf32>
    %38 = arith.addf %31, %37 : vector<16x1xf32>
    %c0_29 = arith.constant 0 : index
    %c0_30 = arith.constant 0 : index
    %39 = vector.load %arg12[%c0_29, %c0_30] : memref<16x1xf32, #tpu.memory_space<vmem>>, vector<16x1xf32>
    tpu.vector_store %arg12[%c0_29, %c0_30], %38 {strides = array<i32>} : memref<16x1xf32, #tpu.memory_space<vmem>>, vector<16x1xf32>,
    %c0_31 = arith.constant 0 : index
    %c0_32 = arith.constant 0 : index
    %40 = vector.load %arg10[%c0_31, %c0_32] : memref<16x1xf32, #tpu.memory_space<vmem>>, vector<16x1xf32>
    %cst_33 = arith.constant dense<0xFF800000> : vector<16xf32>
    %41 = vector.multi_reduction <maximumf>, %24, %cst_33 [1] : vector<16x32xf32> to vector<16xf32>
    %42 = vector.shape_cast %41 : vector<16xf32> to vector<16x1xf32>
    %43 = arith.maximumf %40, %42 : vector<16x1xf32>
    %c0_34 = arith.constant 0 : index
    %c0_35 = arith.constant 0 : index
    %44 = vector.load %arg11[%c0_34, %c0_35] : memref<16x1xf32, #tpu.memory_space<vmem>>, vector<16x1xf32>
    %45 = arith.subf %40, %43 : vector<16x1xf32>
    %46 = math.exp %45 : vector<16x1xf32>
    %47 = arith.mulf %44, %46 : vector<16x1xf32>
    %48 = vector.broadcast %43 : vector<16x1xf32> to vector<16x32xf32>
    %49 = arith.subf %24, %48 : vector<16x32xf32>
    %50 = math.exp %49 : vector<16x32xf32>
    %cst_36 = arith.constant dense<0.000000e+00> : vector<16xf32>
    %51 = vector.multi_reduction <add>, %50, %cst_36 [1] : vector<16x32xf32> to vector<16xf32>
    %52 = vector.shape_cast %51 : vector<16xf32> to vector<16x1xf32>
    %53 = arith.addf %47, %52 : vector<16x1xf32>
    %c0_37 = arith.constant 0 : index
    %c0_38 = arith.constant 0 : index
    %54 = vector.load %arg11[%c0_37, %c0_38] : memref<16x1xf32, #tpu.memory_space<vmem>>, vector<16x1xf32>
    tpu.vector_store %arg11[%c0_37, %c0_38], %53 {strides = array<i32>} : memref<16x1xf32, #tpu.memory_space<vmem>>, vector<16x1xf32>,
    %c0_39 = arith.constant 0 : index
    %c0_40 = arith.constant 0 : index
    %55 = vector.load %arg10[%c0_39, %c0_40] : memref<16x1xf32, #tpu.memory_space<vmem>>, vector<16x1xf32>
    tpu.vector_store %arg10[%c0_39, %c0_40], %43 {strides = array<i32>} : memref<16x1xf32, #tpu.memory_space<vmem>>, vector<16x1xf32>,
    %c0_i32_41 = arith.constant 0 : i32
    %56 = arith.cmpi eq, %arg1, %c0_i32_41 : i32
    %57 = arith.extui %56 : i1 to i32
    %c0_i32_42 = arith.constant 0 : i32
    %58 = arith.cmpi ne, %57, %c0_i32_42 : i32
    scf.if %58 {
      %c0_43 = arith.constant 0 : index
      %c0_44 = arith.constant 0 : index
      %59 = vector.load %arg10[%c0_43, %c0_44] : memref<16x1xf32, #tpu.memory_space<vmem>>, vector<16x1xf32>
      %c0_45 = arith.constant 0 : index
      %c0_46 = arith.constant 0 : index
      %60 = vector.load %arg11[%c0_45, %c0_46] : memref<16x1xf32, #tpu.memory_space<vmem>>, vector<16x1xf32>
      %61 = math.log %60 : vector<16x1xf32>
      %62 = arith.addf %59, %61 : vector<16x1xf32>
      %c0_i32_47 = arith.constant 0 : i32
      %63 = vector.broadcast %c0_i32_47 : i32 to vector<16x1xi32>
      %64 = arith.cmpi ne, %26, %63 : vector<16x1xi32>
      %c0_48 = arith.constant 0 : index
      %c0_49 = arith.constant 0 : index
      %65 = vector.load %arg2[%c0_48, %c0_49] : memref<16x1xi32, #tpu.memory_space<vmem>>, vector<16x1xi32>
      %c0_50 = arith.constant 0 : index
      %66 = memref.load %arg3[%c0_50] : memref<1xi32, #tpu.memory_space<smem>>
      %67 = vector.broadcast %66 : i32 to vector<16x1xi32>
      %68 = arith.cmpi slt, %65, %67 : vector<16x1xi32>
      %69 = arith.andi %64, %68 : vector<16x1xi1>
      %c0_51 = arith.constant 0 : index
      %c0_52 = arith.constant 0 : index
      %70 = vector.load %arg12[%c0_51, %c0_52] : memref<16x1xf32, #tpu.memory_space<vmem>>, vector<16x1xf32>
      %71 = arith.subf %62, %70 : vector<16x1xf32>
      %cst_53 = arith.constant 0.000000e+00 : f32
      %72 = vector.broadcast %cst_53 : f32 to vector<16x1xf32>
      %73 = arith.select %69, %71, %72 : vector<16x1xi1>, vector<16x1xf32>
      %c0_54 = arith.constant 0 : index
      %c0_55 = arith.constant 0 : index
      %74 = vector.load %arg9[%c0_54, %c0_55] : memref<16x1xf32, #tpu.memory_space<vmem>>, vector<16x1xf32>
      tpu.vector_store %arg9[%c0_54, %c0_55], %73 {strides = array<i32>} : memref<16x1xf32, #tpu.memory_space<vmem>>, vector<16x1xf32>,
    } else {
    }
    return
  }
  func.func @transform_0(%arg0: i32, %arg1: i32) -> (i32, i32) {
    %c0_i32 = arith.constant 0 : i32
    %c0_i32_0 = arith.constant 0 : i32
    return %arg0, %c0_i32 : i32, i32
  }
  func.func @transform_1(%arg0: i32, %arg1: i32) -> i32 {
    %c0_i32 = arith.constant 0 : i32
    %c0_i32_0 = arith.constant 0 : i32
    return %c0_i32 : i32
  }
  func.func @transform_2(%arg0: i32, %arg1: i32) -> (i32, i32, i32) {
    %c0_i32 = arith.constant 0 : i32
    %c0_i32_0 = arith.constant 0 : i32
    %c0_i32_1 = arith.constant 0 : i32
    return %c0_i32, %arg0, %c0_i32_0 : i32, i32, i32
  }
  func.func @transform_3(%arg0: i32, %arg1: i32) -> (i32, i32, i32) {
    %c0_i32 = arith.constant 0 : i32
    %c0_i32_0 = arith.constant 0 : i32
    %c0_i32_1 = arith.constant 0 : i32
    return %c0_i32, %c0_i32_0, %arg1 : i32, i32, i32
  }
  func.func @transform_4(%arg0: i32, %arg1: i32) -> (i32, i32) {
    %c0_i32 = arith.constant 0 : i32
    %c0_i32_0 = arith.constant 0 : i32
    return %c0_i32, %arg1 : i32, i32
  }
  func.func @transform_5(%arg0: i32, %arg1: i32) -> (i32, i32) {
    %c0_i32 = arith.constant 0 : i32
    %c0_i32_0 = arith.constant 0 : i32
    return %arg0, %c0_i32 : i32, i32
  }
  func.func @transform_6(%arg0: i32, %arg1: i32) -> (i32, i32) {
    %c0_i32 = arith.constant 0 : i32
    return %arg0, %arg1 : i32, i32
  }
  func.func @transform_7(%arg0: i32, %arg1: i32) -> (i32, i32) {
    %c0_i32 = arith.constant 0 : i32
    %c0_i32_0 = arith.constant 0 : i32
    return %arg0, %c0_i32 : i32, i32
  }
}

</mosaic_0001>

<bundles_post_ra>
// kernel: tile.0
= control target key start
LH: loop header
LB: loop body
LE: loop exit
PB: predicated region body
PF: predicated region fallthrough
CT: control target
= control target key end

     0   :  { %s66_s8 = smov 125   ;;  %s67_s9 = smov 123   ;;  %vm7_vm0 = vcmask 7168   ;;  %s117_s0 = inlined_call_operand.vmem [shape: s32[2,8], index: 0, kind: input, shape index: {}]   ;;  %s118_s1 = inlined_call_operand.vmem [shape: s32[16,1], index: 1, kind: output, shape index: {}]  }
   0x1   :  { %v4_v0 = vld [vmem:[%s117_s0] sm:$0x3]  ;;  %s65_s0 = smov 127   ;;  %s68_s10 = smov 126  }
   0x2   :  { %5 = vst [vmem:[#allocation0] sm:$0x3] %v4_v0  ;;  %s69_s11 = smov 124   ;;  %s70_s12 = smov 122  }
   0x3   :  { %s71_s13 = smov 121  }
   0x9   :  { %v9_v1 = vld [vmem:[#allocation0] sm:$0x3]  }
   0xa   :  { %v21_v2 = vld [vmem:[#allocation0] sm:$0x3]   ;;  %10 = vrot.lane.b32.xlu0 %v9_v1, %s65_s0 }
   0xb   :  { %22 = vrot.lane.b32.xlu1 %v21_v2, %s66_s8  ;;  %v33_v3 = vld [vmem:[#allocation0] sm:$0x3]  }
   0xc   :  { %34 = vrot.lane.b32.xlu2 %v33_v3, %s67_s9  ;;  %v15_v4 = vld [vmem:[#allocation0] sm:$0x3]  }
   0xd   :  { %v27_v5 = vld [vmem:[#allocation0] sm:$0x3]  }
   0xe   :  { %v39_v6 = vld [vmem:[#allocation0] sm:$0x3]  }
   0xf   :  { %v45_v7 = vld [vmem:[#allocation0] sm:$0x3]  }
  0x10   :  { %v6_v8 = vld [vmem:[#allocation0] sm:$0x3]  }
  0x11   :  { %8 = vst.msk [vmem:[%s118_s1] ss:$8 sm:$0x3] %vm7_vm0, %v6_v8  }
  0x12   :  { %16 = vrot.lane.b32.xlu0 %v15_v4, %s68_s10 }
  0x13   :  { %28 = vrot.lane.b32.xlu1 %v27_v5, %s69_s11 }
  0x14   :  { %40 = vrot.lane.b32.xlu2 %v39_v6, %s70_s12 }
  0x1a   :  { %46 = vrot.lane.b32.xlu0 %v45_v7, %s71_s13 }
  0x66   :  { %v35_v9 = vpop.permute.xlu2 %34  }
  0x67   :  { %55 = vst.msk [vmem:[%s118_s1 + $0x5] ss:$8 sm:$0x3] %vm7_vm0, %v35_v9  }
  0x6e   :  { %v41_v10 = vpop.permute.xlu2 %40  }
  0x6f   :  { %56 = vst.msk [vmem:[%s118_s1 + $0x6] ss:$8 sm:$0x3] %vm7_vm0, %v41_v10  }
  0x7c   :  { %v11_v11 = vpop.permute.xlu0 %10  }
  0x7d   :  { %v23_v12 = vpop.permute.xlu1 %22   ;;  %51 = vst.msk [vmem:[%s118_s1 + $0x1] ss:$8 sm:$0x3] %vm7_vm0, %v11_v11  }
  0x7e   :  { %53 = vst.msk [vmem:[%s118_s1 + $0x3] ss:$8 sm:$0x3] %vm7_vm0, %v23_v12  }
  0x84   :  { %v17_v13 = vpop.permute.xlu0 %16  }
  0x85   :  { %v29_v14 = vpop.permute.xlu1 %28   ;;  %52 = vst.msk [vmem:[%s118_s1 + $0x2] ss:$8 sm:$0x3] %vm7_vm0, %v17_v13  }
  0x86   :  { %54 = vst.msk [vmem:[%s118_s1 + $0x4] ss:$8 sm:$0x3] %vm7_vm0, %v29_v14  }
  0x8c   :  { %v47_v15 = vpop.permute.xlu0 %46  }
  0x8d   :  { %57 = vst.msk [vmem:[%s118_s1 + $0x7] ss:$8 sm:$0x3] %vm7_vm0, %v47_v15  }

// kernel: stcn_forward.5
= control target key start
LH: loop header
LB: loop body
LE: loop exit
PB: predicated region body
PF: predicated region fallthrough
CT: control target
= control target key end

     0   :  { %v413_v3 = vmov 0   ;;  %vm70_vm0 = vcmask 261120   ;;  %s546_s0 = inlined_call_operand.vmem [shape: s32[16,1], index: 0, kind: input, shape index: {}]   ;;  %s547_s1 = inlined_call_operand.<no memory space> [shape: s32[1], index: 1, kind: input, shape index: {}]   ;;  %s548_s2 = inlined_call_operand.vmem [shape: bf16[3,16,32], index: 2, kind: input, shape index: {}]   ;;  %s549_s3 = inlined_call_operand.vmem [shape: bf16[3,32,32], index: 3, kind: input, shape index: {}]   ;;  %s550_s4 = inlined_call_operand.vmem [shape: f32[1,32], index: 4, kind: input, shape index: {}]   ;;  %s551_s5 = inlined_call_operand.vmem [shape: s32[16,1], index: 5, kind: input, shape index: {}]   ;;  %s552_s6 = inlined_call_operand.hbm [shape: f32[16,32], index: 6, kind: output, shape index: {0}]   ;;  %s553_s7 = inlined_call_operand.vmem [shape: f32[16,1], index: 7, kind: output, shape index: {1}]  }
   0x1   :  { %v361_v0 = vld [vmem:[%s549_s3 + $0x18] sm:$0xff]  ;;  %v358_v1 = vld [vmem:[%s549_s3 + $0x8] sm:$0xff]  ;;  %372 = vset.pattern.permute.xlu2 %v413_v3  ;;  %371 = vset.pattern.permute.xlu1 %v413_v3  ;;  %v360_v4 = vld [vmem:[%s549_s3 + $0x10] sm:$0xff] }
   0x2   :  { %v364_v2 = vld [vmem:[%s549_s3 + $0x28] sm:$0xff]  ;;  %80 = vmatpush.bf16.msra.mxu0 %v361_v0  ;;  %114 = vmatpush.bf16.msra.mxu1 %v358_v1  ;;  %v357_v5 = vld [vmem:[%s549_s3] sm:$0xff]  ;;  %v362_v10 = vld [vmem:[%s548_s2 + $0x10] sm:$0xff] }
   0x3   :  { %156 = vmatpush.bf16.msra.mxu2 %v364_v2  ;;  %v363_v6 = vld [vmem:[%s549_s3 + $0x20] sm:$0xff]  ;;  %373 = vset.pattern.permute.xlu0 %v413_v3  ;;  %v359_v8 = vld [vmem:[%s548_s2 + $0x8] sm:$0xff] }
   0x4   :  { %v480_v7 = vld [vmem:[%s551_s5] sm:$0xff] }
   0x5   :  { %184 = vperm.xlu2 %372, %v480_v7   ;;  %v356_v9 = vld [vmem:[%s548_s2] sm:$0xff] }
   0x6   :  { %81 = vmatpush.bf16.msra.mxu0 %v360_v4  ;;  %115 = vmatpush.bf16.msra.mxu1 %v357_v5 }
   0x7   :  { %157 = vmatpush.bf16.msra.mxu2 %v363_v6 }
   0x8   :  { %14 = vsyncpa [#allocation7], 0  ;;  %v497_v11 = vld [vmem:[%s551_s5 + $0x8] sm:$0xff]  ;;  %v176_v14 = vlaneseq  ;;  %v374_v17 = vld [vmem:[%s550_s4] ss:$0 sm:$0xff]  ;;  %vm32_vm2 = vcmask 7168  }
   0x9   :  { %323 = vmatmul.msk.bf16.vlgmr.msra.gmra.mxu0 %vm70_vm0, %v359_v8  ;;  %336 = vmatmul.msk.bf16.vlgmr.msra.gmra.mxu1 %vm70_vm0, %v356_v9  ;;  %v414_v32 = vmov -inf   ;;  %v415_v33 = vmov 0.0   ;;  %s416_s4 = smov [#allocation6]   ;;  %s289_s25 = sshll.u32 %s552_s6, 4  ;;  %vm265_vm5 = vcmp.ne.s32.totalorder %v480_v7, 0  ;;  %vm266_vm7 = vcmp.ne.s32.totalorder %v497_v11, 0  ;;  %s290_s25 = int_to_ptr.hbm [resolvable:$true] %s289_s25 }
   0xa   :  { %355 = vmatmul.msk.bf16.vlgmr.msra.gmra.mxu2 %vm70_vm0, %v362_v10  ;;  %v177_v16 = vand.u32 127, %v176_v14  ;;  %33 = vst.msk [vmem:[#allocation2] sm:$0xff] %vm32_vm2, %v414_v32  ;;  %s287_s5 = sshll.u32 %s416_s4, 4  ;;  %s417_s26 = smov 128   ;;  %s288_s5 = int_to_ptr.vmem [resolvable:$true] %s287_s5 }
   0xb   :  { %34 = vst.msk [vmem:[#allocation2 + $0x8] sm:$0xff] %vm32_vm2, %v414_v32  ;;  %s418_s27 = smov 8  }
   0xc   :  { %37 = vst.msk [vmem:[#allocation4] sm:$0xff] %vm32_vm2, %v415_v33 }
   0xd   :  { %187 = vperm.xlu2 %372, %v497_v11   ;;  %35 = vst.msk [vmem:[#allocation3] sm:$0xff] %vm32_vm2, %v415_v33 }
   0xe   :  { %36 = vst.msk [vmem:[#allocation3 + $0x8] sm:$0xff] %vm32_vm2, %v415_v33 }
   0xf   :  { %38 = vst.msk [vmem:[#allocation4 + $0x8] sm:$0xff] %vm32_vm2, %v415_v33 }
  0x11   :  { %v204_v35 = vld [vmem:[#allocation2] sm:$0xff] }
  0x12   :  { %v205_v42 = vld [vmem:[#allocation2 + $0x8] sm:$0xff] }
  0x13   :  { %v181_v36 = vld [vmem:[#allocation4] sm:$0xff] }
  0x14   :  { %v214_v61 = vld [vmem:[#allocation3] sm:$0xff] }
  0x15   :  { %v215_v2 = vld [vmem:[#allocation3 + $0x8] sm:$0xff] }
  0x16   :  { %v182_v3 = vld [vmem:[#allocation4 + $0x8] sm:$0xff] }
  0x5f   :  { %v185_v18 = vpop.permute.xlu2 %184 }
  0x60   :  { %vm189_vm1 = vcmp.eq.s32.totalorder %v177_v16, %v185_v18 }
  0x67   :  { %v188_v34 = vpop.permute.xlu2 %187 }
  0x68   :  { %vm190_vm3 = vcmp.eq.s32.totalorder %v177_v16, %v188_v34 }
  0x86   :  { %v83_v12 = vpop.f32.mrf.mxu0  ;;  %v117_v13 = vpop.f32.mrf.mxu1 }
  0x87   :  { %v118_v15 = vadd.f32 %v117_v13, %v83_v12  ;;  %v267_v12 = vld [vmem:[%s546_s0] sm:$0xff]  ;;  %v270_v13 = vstv %s547_s1 }
  0x88   :  { %vm271_vm4 = vcmp.lt.s32.totalorder %v267_v12, %v270_v13 }
  0x89   :  { %vm273_vm6 = vmand %vm265_vm5, %vm271_vm4 }
  0x8d   :  { %v159_v19 = vpop.f32.mrf.mxu2 }
  0x8e   :  { %v164_v20 = vadd.f32 %v159_v19, %v118_v15  ;;  %v85_v22 = vpop.f32.mrf.mxu0  ;;  %v119_v23 = vpop.f32.mrf.mxu1 }
  0x8f   :  { %v120_v27 = vadd.f32 %v119_v23, %v85_v22 }
  0x90   :  { %v170_v21 = vadd.f32 %v374_v17, %v164_v20 }
  0x92   :  { %172 = vst.msk [vmem:[#allocation6] sm:$0xff] %vm70_vm0, %v170_v21  ;;  %v206_v24 = vsel %vm70_vm0, %v170_v21, -inf  ;;  %v191_v25 = vsel %vm189_vm1, %v170_v21, 0.0 }
  0x93   :  { %207 = vmax.xlane.f32.xlu0 %v206_v24  ;;  %v193_v26 = vsel %vm70_vm0, %v191_v25, 0.0 }
  0x94   :  { %194 = vadd.xlane.f32.xlu2 %v193_v26 }
  0x95   :  { %v161_v28 = vpop.f32.mrf.mxu2 }
  0x96   :  { %v165_v29 = vadd.f32 %v161_v28, %v120_v27 }
  0x98   :  { %v171_v30 = vadd.f32 %v374_v17, %v165_v29 }
  0x9a   :  { %173 = vst.msk [vmem:[#allocation6 + $0x8] sm:$0xff] %vm70_vm0, %v171_v30  ;;  %v209_v31 = vsel %vm70_vm0, %v171_v30, -inf  ;;  %v192_v54 = vsel %vm190_vm3, %v171_v30, 0.0 }
  0x9b   :  { %210 = vmax.xlane.f32.xlu0 %v209_v31  ;;  %v196_v56 = vsel %vm70_vm0, %v192_v54, 0.0  ;;  %295 = dma.vmem_to_hbm [thread:$0]  %s288_s5, 256, %s290_s25, [#allocation7], %s417_s26, %s417_s26, %s418_s27  }
 0x106   :  { %v208_v37 = vpop.xlane.xlu0 %207 }
 0x107   :  { %v212_v38 = vmax.f32 %v204_v35, %v208_v37  ;;  %v195_v39 = vpop.xlane.xlu2 %194 }
 0x108   :  { %v199_v40 = vadd.f32 %v195_v39, %v181_v36 }
 0x109   :  { %v216_v41 = vsub.f32 %v204_v35, %v212_v38  ;;  %250 = vst.msk [vmem:[#allocation2] sm:$0xff] %vm32_vm2, %v212_v38  ;;  %226 = vperm.xlu1 %371, %v212_v38  }
 0x10a   :  { %202 = vst.msk [vmem:[#allocation4] sm:$0xff] %vm32_vm2, %v199_v40 }
 0x10b   :  { %v218_v58 = vmul.f32 1.442695, %v216_v41 }
 0x10e   :  { %v211_v43 = vpop.xlane.xlu0 %210 }
 0x10f   :  { %v213_v44 = vmax.f32 %v205_v42, %v211_v43 }
 0x110   :  { %v255_v16 = vld [vmem:[#allocation2] sm:$0xff] }
 0x111   :  { %v217_v45 = vsub.f32 %v205_v42, %v213_v44  ;;  %251 = vst.msk [vmem:[#allocation2 + $0x8] sm:$0xff] %vm32_vm2, %v213_v44  ;;  %231 = vperm.xlu1 %371, %v213_v44   ;;  %v275_v19 = vld [vmem:[#allocation4] sm:$0xff] }
 0x113   :  { %v220_v59 = vmul.f32 1.442695, %v217_v45 }
 0x118   :  { %v256_v24 = vld [vmem:[#allocation2 + $0x8] sm:$0xff] }
 0x17b   :  { %v227_v46 = vpop.permute.xlu1 %226 }
 0x17c   :  { %v234_v47 = vsub.f32 %v170_v21, %v227_v46  ;;  %v268_v21 = vld [vmem:[%s546_s0 + $0x8] sm:$0xff] }
 0x17d   :  { %vm272_vm8 = vcmp.lt.s32.totalorder %v268_v21, %v270_v13 }
 0x17e   :  { %v236_v48 = vmul.f32 1.442695, %v234_v47  ;;  %vm274_vm9 = vmand %vm266_vm7, %vm272_vm8 }
 0x180   :  { %375 = vpow2.f32 %v236_v48 }
 0x183   :  { %v232_v49 = vpop.permute.xlu1 %231 }
 0x184   :  { %v235_v50 = vsub.f32 %v171_v30, %v232_v49 }
 0x186   :  { %v376_v51 = vpop.eup %375  ;;  %v238_v52 = vmul.f32 1.442695, %v235_v50 }
 0x187   :  { %v240_v53 = vsel %vm70_vm0, %v376_v51, 0.0 }
 0x188   :  { %377 = vpow2.f32 %v238_v52  ;;  %241 = vadd.xlane.f32.xlu0 %v240_v53 }
 0x189   :  { %379 = vpow2.f32 %v218_v58 }
 0x18a   :  { %381 = vpow2.f32 %v220_v59 }
 0x18e   :  { %v378_v55 = vpop.eup %377 }
 0x18f   :  { %v243_v57 = vsel %vm70_vm0, %v378_v55, 0.0  ;;  %v380_v60 = vpop.eup %379 }
 0x190   :  { %197 = vadd.xlane.f32.xlu0 %v196_v56  ;;  %244 = vadd.xlane.f32.xlu1 %v243_v57  ;;  %v222_v62 = vmul.f32 %v380_v60, %v214_v61  ;;  %v382_v1 = vpop.eup %381 }
 0x191   :  { %v223_v4 = vmul.f32 %v382_v1, %v215_v2 }
 0x1fb   :  { %v242_v63 = vpop.xlane.xlu0 %241 }
 0x1fc   :  { %v246_v0 = vadd.f32 %v242_v63, %v222_v62 }
 0x1fe   :  { %248 = vst.msk [vmem:[#allocation3] sm:$0xff] %vm32_vm2, %v246_v0 }
 0x203   :  { %v198_v5 = vpop.xlane.xlu0 %197  ;;  %v245_v6 = vpop.xlane.xlu1 %244 }
 0x204   :  { %v200_v8 = vadd.f32 %v198_v5, %v182_v3  ;;  %v247_v9 = vadd.f32 %v245_v6, %v223_v4 }
 0x205   :  { %v257_v10 = vld [vmem:[#allocation3] sm:$0xff] }
 0x206   :  { %383 = vlog2.f32 %v257_v10  ;;  %203 = vst.msk [vmem:[#allocation4 + $0x8] sm:$0xff] %vm32_vm2, %v200_v8 }
 0x207   :  { %249 = vst.msk [vmem:[#allocation3 + $0x8] sm:$0xff] %vm32_vm2, %v247_v9 }
 0x20c   :  { %v384_v14 = vpop.eup %383 }
 0x20d   :  { %v260_v15 = vmul.f32 0.6931472, %v384_v14  ;;  %v276_v26 = vld [vmem:[#allocation4 + $0x8] sm:$0xff] }
 0x20e   :  { %v258_v17 = vld [vmem:[#allocation3 + $0x8] sm:$0xff] }
 0x20f   :  { %v263_v18 = vadd.f32 %v260_v15, %v255_v16  ;;  %385 = vlog2.f32 %v258_v17 }
 0x211   :  { %v277_v20 = vsub.f32 %v263_v18, %v275_v19 }
 0x213   :  { %v279_v22 = vsel %vm273_vm6, %v277_v20, 0.0 }
 0x214   :  { %281 = vst.msk [vmem:[%s553_s7] sm:$0xff] %vm32_vm2, %v279_v22 }
 0x215   :  { %v386_v23 = vpop.eup %385 }
 0x216   :  { %v262_v7 = vmul.f32 0.6931472, %v386_v23 }
 0x218   :  { %v264_v25 = vadd.f32 %v262_v7, %v256_v24 }
 0x21a   :  { %v278_v27 = vsub.f32 %v264_v25, %v276_v26 }
 0x21c   :  { %v280_v28 = vsel %vm274_vm9, %v278_v27, 0.0 }
 0x21d   :  { %282 = vst.msk [vmem:[%s553_s7 + $0x8] sm:$0xff] %vm32_vm2, %v280_v28 }
 0x21e   :  { %411 = dma.done.wait [#allocation7], 256  }
 0x21f   :  { %412 = vsyncadd [#allocation7], 4294967040 }
 0x220   :  { %304 = vsyncpa [#allocation7], 1 }

// kernel: stcn_forward.3
= control target key start
LH: loop header
LB: loop body
LE: loop exit
PB: predicated region body
PF: predicated region fallthrough
CT: control target
= control target key end

     0   :  { %17 = vsyncpa [#allocation3], 0  ;;  %s1178_s0 = inlined_call_operand.vmem [shape: s32[16,1], index: 0, kind: input, shape index: {}]   ;;  %s1179_s1 = inlined_call_operand.vmem [shape: bf16[16,16], index: 1, kind: input, shape index: {}]   ;;  %s1180_s2 = inlined_call_operand.hbm [shape: bf16[2,16,32], index: 2, kind: input, shape index: {}]   ;;  %s1181_s3 = inlined_call_operand.vmem [shape: f32[1,32], index: 3, kind: input, shape index: {}]   ;;  %s1182_s4 = inlined_call_operand.vmem [shape: bf16[2,32,32], index: 4, kind: input, shape index: {}]   ;;  %s1183_s5 = inlined_call_operand.vmem [shape: f32[1,32], index: 5, kind: input, shape index: {}]   ;;  %s1184_s6 = inlined_call_operand.vmem [shape: bf16[16,32], index: 6, kind: input, shape index: {}]   ;;  %s1185_s7 = inlined_call_operand.vmem [shape: f32[1,32], index: 7, kind: input, shape index: {}]   ;;  %s1186_s8 = inlined_call_operand.hbm [shape: bf16[4,32,32], index: 8, kind: input, shape index: {}]   ;;  %s1187_s9 = inlined_call_operand.vmem [shape: f32[2,1,32], index: 9, kind: input, shape index: {}]   ;;  %s1188_s10 = inlined_call_operand.hbm [shape: bf16[4,32,32], index: 10, kind: input, shape index: {}]   ;;  %s1189_s11 = inlined_call_operand.vmem [shape: f32[2,1,32], index: 11, kind: input, shape index: {}]   ;;  %s1190_s12 = inlined_call_operand.vmem [shape: bf16[3,16,32], index: 12, kind: output, shape index: {}]  }
   0x1   :  { %18 = vsyncpa [#allocation5], 0  ;;  %s50_s23 = sshll.u32 %s1186_s8, 4  ;;  %s930_s24 = smov [#allocation4]   ;;  %s51_s23 = int_to_ptr.hbm [resolvable:$true] %s50_s23 }
   0x2   :  { %s52_s25 = sshll.u32 %s930_s24, 4  ;;  %s27_s28 = sshll.u32 %s1180_s2, 4  ;;  %s53_s25 = int_to_ptr.vmem [resolvable:$true] %s52_s25  ;;  %s28_s28 = int_to_ptr.hbm [resolvable:$true] %s27_s28 }
   0x3   :  { %s931_s29 = smov 64   ;;  %s932_s30 = smov 4  }
   0x4   :  { %58 = dma.hbm_to_vmem [thread:$0]  %s51_s23, 1024, %s53_s25, [#allocation5], %s931_s29, %s931_s29, %s932_s30  }
   0x5   :  { %s933_s13 = smov [#allocation2]   ;;  %s65_s17 = sshll.u32 %s1188_s10, 4  ;;  %s66_s17 = int_to_ptr.hbm [resolvable:$true] %s65_s17 }
   0x6   :  { %s29_s14 = sshll.u32 %s933_s13, 4  ;;  %s934_s8 = smov [#allocation6]   ;;  %s30_s14 = int_to_ptr.vmem [resolvable:$true] %s29_s14 }
   0x7   :  { %35 = dma.hbm_to_vmem [thread:$0]  %s28_s28, 256, %s30_s14, [#allocation3], %s931_s29, %s931_s29, %s932_s30  }
   0x8   :  { %s67_s18 = sshll.u32 %s934_s8, 4  ;;  %s68_s18 = int_to_ptr.vmem [resolvable:$true] %s67_s18 }
   0x9   :  { %73 = dma.hbm_to_vmem [thread:$0]  %s66_s17, 1024, %s68_s18, [#allocation5], %s931_s29, %s931_s29, %s932_s30  }
   0xa   :  { %926 = dma.done.wait [#allocation3], 256  }
   0xb   :  { %927 = vsyncadd [#allocation3], 4294967040 }
   0xc   :  { %928 = dma.done.wait [#allocation5], 2048  }
   0xd   :  { %929 = vsyncadd [#allocation5], 4294965248  ;;  %v935_v0 = vmov 0   ;;  %v1016_v1 = vld [vmem:[%s1178_s0] sm:$0xff]  ;;  %v1023_v3 = vld [vmem:[%s1178_s0 + $0x8] sm:$0xff]  ;;  %vm135_vm2 = vcmask 130048   ;;  %v99_v9 = vlaneseq }
   0xe   :  { %844 = vset.pattern.permute.xlu0 %v935_v0  ;;  %845 = vset.pattern.permute.xlu1 %v935_v0  ;;  %vm104_vm0 = vcmp.lt.s32.totalorder %v1016_v1, 1  ;;  %vm105_vm1 = vcmp.lt.s32.totalorder %v1023_v3, 1  ;;  %v816_v5 = vld [vmem:[#allocation2 + $0x8] sm:$0xff]  ;;  %v814_v6 = vld [vmem:[%s1179_s1] sm:$0xff]  ;;  %v820_v22 = vld [vmem:[%s1182_s4 + $0x18] sm:$0xff]  ;;  %vm308_vm6 = vcmp.lt.s32.totalorder %v1016_v1, 2 }
   0xf   :  { %846 = vset.pattern.permute.xlu2 %v935_v0  ;;  %v106_v2 = vsel %vm104_vm0, 1, %v935_v0  ;;  %v107_v4 = vsel %vm105_vm1, 1, %v935_v0  ;;  %146 = vmatpush.bf16.msra.mxu0 %v816_v5  ;;  %v815_v7 = vld [vmem:[#allocation2] sm:$0xff]  ;;  %v1034_v12 = vshrl.u32 %v99_v9, 7  ;;  %v819_v23 = vld [vmem:[%s1182_s4 + $0x10] sm:$0xff]  ;;  %v818_v24 = vld [vmem:[%s1182_s4 + $0x8] sm:$0xff] }
  0x10   :  { %109 = vperm.xlu0 %844, %v106_v2   ;;  %169 = vmatpush.bf16.msra.mxu1 %v815_v7  ;;  %v91_v8 = vld [vmem:[%s1179_s1] sm:$0xff]   ;;  %v310_v27 = vsel %vm308_vm6, 1, %v935_v0  ;;  %vm309_vm7 = vcmp.lt.s32.totalorder %v1023_v3, 2  ;;  %vm212_vm8 = vcmask 261120   ;;  %v823_v48 = vld [vmem:[#allocation4 + $0x8] sm:$0xff]  ;;  %v825_v49 = vld [vmem:[#allocation4 + $0x18] sm:$0xff] }
  0x11   :  { %v93_v10 = vunpack.c.l.bf16 %v91_v8  ;;  %v94_v11 = vunpack.c.h.bf16 %v91_v8  ;;  %vm101_vm3 = vcmp.lt.s32.totalorder %v1034_v12, 1  ;;  %222 = vmatpush.bf16.msra.mxu2 %v820_v22  ;;  %251 = vmatpush.bf16.msra.mxu3 %v818_v24  ;;  %v821_v25 = vld [vmem:[%s1184_s6] sm:$0xff]  ;;  %v311_v28 = vsel %vm309_vm7, 1, %v935_v0  ;;  %v822_v50 = vld [vmem:[#allocation4] sm:$0xff] }
  0x12   :  { %703 = vmatmul.msk.bf16.vlgmr.msra.gmra.mxu0 %vm135_vm2, %v814_v6  ;;  %v817_v26 = vld [vmem:[%s1182_s4] sm:$0xff]  ;;  %313 = vperm.xlu1 %845, %v310_v27   ;;  %vm298_vm9 = vcmask 257024   ;;  %vm305_vm10 = vcmp.lt.s32.totalorder %v1034_v12, 2  ;;  %v827_v27 = vld [vmem:[#allocation6 + $0x8] sm:$0xff]  ;;  %vm502_vm13 = vcmp.lt.s32.totalorder %v1016_v1, 4  ;;  %vm503_vm14 = vcmp.lt.s32.totalorder %v1023_v3, 4 }
  0x13   :  { %v97_v14 = vrot.slane %v93_v10, 7  ;;  %v98_v15 = vrot.slane %v94_v11, 7  ;;  %285 = vmatpush.bf16.msrb.mxu0 %v821_v25  ;;  %v847_v32 = vld [vmem:[%s1181_s3] ss:$0 sm:$0xff]  ;;  %vm499_vm15 = vcmp.lt.s32.totalorder %v1034_v12, 4 }
  0x14   :  { %358 = vmatpush.bf16.msrb.mxu1 %v825_v49  ;;  %v824_v51 = vld [vmem:[#allocation4 + $0x10] sm:$0xff]  ;;  %v833_v49 = vld [vmem:[#allocation4 + $0x38] sm:$0xff] }
  0x15   :  { %v103_v16 = vsel %vm101_vm3, %v98_v15, %v97_v14  ;;  %v102_v17 = vsel %vm101_vm3, %v97_v14, %v98_v15  ;;  %223 = vmatpush.bf16.msra.mxu2 %v819_v23  ;;  %252 = vmatpush.bf16.msra.mxu3 %v817_v26  ;;  %v848_v53 = vld [vmem:[%s1185_s7] ss:$0 sm:$0xff]  ;;  %v829_v26 = vld [vmem:[#allocation6 + $0x18] sm:$0xff] }
  0x16   :  { %v849_v54 = vld [vmem:[%s1183_s5] ss:$0 sm:$0xff] }
  0x17   :  { %469 = vmatpush.bf16.msra.mxu0 %v827_v27 }
  0x18   :  { %112 = vperm.xlu0 %844, %v107_v4   ;;  %359 = vmatpush.bf16.msrb.mxu1 %v824_v51  ;;  %v832_v51 = vld [vmem:[#allocation4 + $0x30] sm:$0xff] }
  0x19   :  { %387 = vmatpush.bf16.msrb.mxu2 %v823_v48  ;;  %440 = vmatpush.bf16.msrb.mxu3 %v829_v26  ;;  %v831_v48 = vld [vmem:[#allocation4 + $0x28] sm:$0xff] }
  0x1a   :  { %316 = vperm.xlu1 %845, %v311_v28   ;;  %v828_v28 = vld [vmem:[#allocation6 + $0x10] sm:$0xff] }
  0x1d   :  { %388 = vmatpush.bf16.msrb.mxu2 %v822_v50  ;;  %441 = vmatpush.bf16.msrb.mxu3 %v828_v28  ;;  %v830_v50 = vld [vmem:[#allocation4 + $0x20] sm:$0xff]  ;;  %v852_v28 = vld [vmem:[%s1187_s9 + $0x1] ss:$0 sm:$0xff] }
  0x22   :  { %735 = vmatmul.msk.bf16.vlgmr.msrb.gmra.mxu0 %vm135_vm2, %v814_v6 }
  0x82   :  { %v110_v13 = vpop.permute.xlu0 %109 }
  0x83   :  { %vm114_vm4 = vcmp.eq.s32.totalorder %v110_v13, 1 }
  0x84   :  { %v116_v19 = vsel %vm114_vm4, 0.0, %v103_v16  ;;  %v1081_v62 = vpop.permute.xlu1 %313 }
  0x85   :  { %vm318_vm11 = vcmp.eq.s32.totalorder %v1081_v62, 1 }
  0x8a   :  { %v113_v18 = vpop.permute.xlu0 %112 }
  0x8b   :  { %vm115_vm5 = vcmp.eq.s32.totalorder %v113_v18, 1 }
  0x8c   :  { %v117_v20 = vsel %vm115_vm5, 0.0, %v102_v17  ;;  %v317_v14 = vpop.permute.xlu1 %316 }
  0x8d   :  { %v118_v21 = vpack.c.bf16 %v117_v20, %v116_v19  ;;  %vm319_vm12 = vcmp.eq.s32.totalorder %v317_v14, 1 }
  0x8f   :  { %708 = vmatmul.msk.bf16.vlgmr.msra.gmra.mxu1 %vm135_vm2, %v118_v21  ;;  %v148_v29 = vpop.f32.mrf.mxu0 }
  0x90   :  { %553 = vmatpush.bf16.msra.mxu1 %v833_v49 }
  0x94   :  { %554 = vmatpush.bf16.msra.mxu1 %v832_v51 }
  0x97   :  { %v150_v34 = vpop.f32.mrf.mxu0 }
  0x9f   :  { %v287_v55 = vpop.f32.mrf.mxu0 }
  0xa0   :  { %v288_v58 = vadd.f32 %v848_v53, %v287_v55 }
  0xa7   :  { %v289_v6 = vpop.f32.mrf.mxu0 }
  0xa8   :  { %v290_v9 = vadd.f32 %v848_v53, %v289_v6  ;;  %v851_v53 = vld [vmem:[%s1189_s11] ss:$0 sm:$0xff] }
 0x10c   :  { %v171_v30 = vpop.f32.mrf.mxu1 }
 0x10d   :  { %v172_v31 = vadd.f32 %v171_v30, %v148_v29  ;;  %v826_v29 = vld [vmem:[#allocation6] sm:$0xff]  ;;  %v504_v30 = vsel %vm502_vm13, 1, %v935_v0 }
 0x10e   :  { %470 = vmatpush.bf16.msra.mxu0 %v826_v29  ;;  %507 = vperm.xlu2 %846, %v504_v30  }
 0x10f   :  { %v179_v33 = vadd.f32 %v847_v32, %v172_v31  ;;  %v505_v31 = vsel %vm503_vm14, 1, %v935_v0 }
 0x111   :  { %v181_v37 = vmax.f32 %v179_v33, 0.0 }
 0x113   :  { %v183_v40 = vrot.slane %v181_v37, 7 }
 0x114   :  { %v173_v35 = vpop.f32.mrf.mxu1 }
 0x115   :  { %v174_v36 = vadd.f32 %v173_v35, %v150_v34  ;;  %v850_v35 = vld [vmem:[%s1187_s9] ss:$0 sm:$0xff] }
 0x116   :  { %510 = vperm.xlu2 %846, %v505_v31  }
 0x117   :  { %v180_v38 = vadd.f32 %v847_v32, %v174_v36 }
 0x119   :  { %v182_v39 = vmax.f32 %v180_v38, 0.0 }
 0x11b   :  { %v184_v41 = vrot.slane %v182_v39, 7  ;;  %v194_v42 = vpack.c.bf16 %v182_v39, %v181_v37 }
 0x11d   :  { %721 = vmatmul.msk.bf16.vlgmr.msra.gmra.mxu2 %vm212_vm8, %v194_v42  ;;  %v185_v43 = vsel %vm101_vm3, %v183_v40, %v184_v41  ;;  %v186_v44 = vsel %vm101_vm3, %v184_v41, %v183_v40 }
 0x11e   :  { %v187_v45 = vsel %vm114_vm4, 0.0, %v186_v44  ;;  %v188_v46 = vsel %vm115_vm5, 0.0, %v185_v43  ;;  %582 = vmatpush.bf16.msra.mxu2 %v831_v48 }
 0x11f   :  { %v189_v47 = vpack.c.bf16 %v188_v46, %v187_v45 }
 0x121   :  { %730 = vmatmul.msk.bf16.vlgmr.msra.gmra.mxu3 %vm212_vm8, %v189_v47 }
 0x122   :  { %583 = vmatpush.bf16.msra.mxu2 %v830_v50 }
 0x1a0   :  { %v225_v52 = vpop.f32.mrf.mxu2 }
 0x1a4   :  { %v254_v56 = vpop.f32.mrf.mxu3 }
 0x1a5   :  { %v255_v57 = vadd.f32 %v254_v56, %v225_v52 }
 0x1a7   :  { %v262_v59 = vadd.f32 %v849_v54, %v255_v57 }
 0x1a8   :  { %v227_v63 = vpop.f32.mrf.mxu2 }
 0x1a9   :  { %v264_v60 = vmax.f32 %v262_v59, 0.0  ;;  %v508_v59 = vpop.permute.xlu2 %507 }
 0x1aa   :  { %vm512_vm0 = vcmp.eq.s32.totalorder %v508_v59, 1 }
 0x1ab   :  { %v292_v61 = vadd.f32 %v288_v58, %v264_v60 }
 0x1ac   :  { %v256_v2 = vpop.f32.mrf.mxu3 }
 0x1ad   :  { %v1083_v4 = vmax.f32 %v292_v61, 0.0  ;;  %v257_v5 = vadd.f32 %v256_v2, %v227_v63 }
 0x1af   :  { %v296_v7 = vpack.c.bf16 %v1083_v4, %v1083_v4  ;;  %v263_v8 = vadd.f32 %v849_v54, %v257_v5  ;;  %v303_v16 = vrot.slane %v1083_v4, 6 }
 0x1b1   :  { %299 = vst.msk [vmem:[%s1190_s12] sm:$0xf] %vm298_vm9, %v296_v7  ;;  %v265_v10 = vmax.f32 %v263_v8, 0.0  ;;  %v334_v20 = vunpack.c.l.b16 %v296_v7 }
 0x1b3   :  { %v293_v11 = vadd.f32 %v290_v9, %v265_v10  ;;  %v511_v9 = vpop.permute.xlu2 %510 }
 0x1b4   :  { %vm513_vm1 = vcmp.eq.s32.totalorder %v511_v9, 1 }
 0x1b5   :  { %v1091_v13 = vmax.f32 %v293_v11, 0.0 }
 0x1b7   :  { %v297_v15 = vpack.c.bf16 %v1091_v13, %v1091_v13  ;;  %v304_v17 = vrot.slane %v1091_v13, 6 }
 0x1b9   :  { %300 = vst.msk [vmem:[%s1190_s12 + $0x4] sm:$0xf] %vm298_vm9, %v297_v15  ;;  %v306_v18 = vsel %vm305_vm10, %v303_v16, %v304_v17  ;;  %v307_v19 = vsel %vm305_vm10, %v304_v17, %v303_v16  ;;  %v335_v21 = vunpack.c.l.b16 %v297_v15 }
 0x1ba   :  { %v320_v22 = vsel %vm318_vm11, 0.0, %v307_v19  ;;  %v321_v23 = vsel %vm319_vm12, 0.0, %v306_v18 }
 0x1bb   :  { %v322_v24 = vpack.c.bf16 %v321_v23, %v320_v22  ;;  %v336_v25 = vpack.c.b16 %v335_v21, %v334_v20  ;;  %v837_v21 = vld [vmem:[#allocation6 + $0x38] sm:$0xff]  ;;  %v835_v22 = vld [vmem:[#allocation6 + $0x28] sm:$0xff]  ;;  %v836_v23 = vld [vmem:[#allocation6 + $0x30] sm:$0xff] }
 0x1bc   :  { %636 = vmatpush.bf16.msra.mxu3 %v837_v21  ;;  %665 = vmatpush.bf16.msrb.mxu0 %v835_v22 }
 0x1bd   :  { %744 = vmatmul.msk.bf16.vlgmr.msrb.gmra.mxu1 %vm212_vm8, %v336_v25  ;;  %753 = vmatmul.msk.bf16.vlgmr.msrb.gmra.mxu2 %vm212_vm8, %v322_v24  ;;  %v834_v24 = vld [vmem:[#allocation6 + $0x20] sm:$0xff] }
 0x1c0   :  { %637 = vmatpush.bf16.msra.mxu3 %v836_v23  ;;  %666 = vmatpush.bf16.msrb.mxu0 %v834_v24 }
 0x23a   :  { %v361_v32 = vpop.f32.mrf.mxu1 }
 0x240   :  { %v390_v33 = vpop.f32.mrf.mxu2 }
 0x241   :  { %v391_v34 = vadd.f32 %v390_v33, %v361_v32 }
 0x242   :  { %v363_v37 = vpop.f32.mrf.mxu1 }
 0x243   :  { %v398_v36 = vadd.f32 %v850_v35, %v391_v34 }
 0x245   :  { %v400_v1 = vmax.f32 %v398_v36, 0.0 }
 0x247   :  { %v402_v42 = vrot.slane %v400_v1, 6 }
 0x248   :  { %v392_v38 = vpop.f32.mrf.mxu2 }
 0x249   :  { %v393_v39 = vadd.f32 %v392_v38, %v363_v37 }
 0x24b   :  { %v399_v40 = vadd.f32 %v850_v35, %v393_v39 }
 0x24d   :  { %v401_v41 = vmax.f32 %v399_v40, 0.0 }
 0x24f   :  { %v403_v43 = vrot.slane %v401_v41, 6  ;;  %v413_v3 = vpack.c.bf16 %v401_v41, %v400_v1 }
 0x251   :  { %v404_v0 = vsel %vm305_vm10, %v402_v42, %v403_v43  ;;  %v405_v44 = vsel %vm305_vm10, %v403_v43, %v402_v42  ;;  %762 = vmatmul.msk.bf16.vlgmr.msrb.gmra.mxu3 %vm212_vm8, %v413_v3  ;;  %v853_v3 = vld [vmem:[%s1189_s11 + $0x1] ss:$0 sm:$0xff] }
 0x252   :  { %v406_v45 = vsel %vm318_vm11, 0.0, %v405_v44  ;;  %v407_v46 = vsel %vm319_vm12, 0.0, %v404_v0 }
 0x253   :  { %v408_v47 = vpack.c.bf16 %v407_v46, %v406_v45 }
 0x255   :  { %771 = vmatmul.msk.bf16.vlgmr.msra.gmra.mxu0 %vm212_vm8, %v408_v47 }
 0x2d2   :  { %v472_v52 = vpop.f32.mrf.mxu0 }
 0x2d4   :  { %v443_v54 = vpop.f32.mrf.mxu3 }
 0x2d5   :  { %v473_v55 = vadd.f32 %v472_v52, %v443_v54 }
 0x2d7   :  { %v480_v56 = vadd.f32 %v851_v53, %v473_v55 }
 0x2d9   :  { %v482_v57 = vmax.f32 %v480_v56, 0.0 }
 0x2da   :  { %v474_v60 = vpop.f32.mrf.mxu0 }
 0x2db   :  { %v484_v58 = vadd.f32 %v482_v57, %v1083_v4 }
 0x2dc   :  { %v445_v61 = vpop.f32.mrf.mxu3 }
 0x2dd   :  { %v486_v62 = vmax.f32 %v484_v58, 0.0  ;;  %v475_v63 = vadd.f32 %v474_v60, %v445_v61 }
 0x2df   :  { %v488_v2 = vpack.c.bf16 %v486_v62, %v486_v62  ;;  %v481_v5 = vadd.f32 %v851_v53, %v475_v63  ;;  %v497_v10 = vrot.slane %v486_v62, 4 }
 0x2e1   :  { %772 = vst.msk [vmem:[%s1190_s12 + $0x8] sm:$0xf] %vm298_vm9, %v488_v2  ;;  %v483_v6 = vmax.f32 %v481_v5, 0.0  ;;  %v529_v14 = vunpack.c.l.b16 %v488_v2 }
 0x2e3   :  { %v485_v7 = vadd.f32 %v483_v6, %v1091_v13 }
 0x2e5   :  { %v1137_v8 = vmax.f32 %v485_v7, 0.0 }
 0x2e7   :  { %v489_v4 = vpack.c.bf16 %v1137_v8, %v1137_v8  ;;  %v498_v11 = vrot.slane %v1137_v8, 4 }
 0x2e9   :  { %773 = vst.msk [vmem:[%s1190_s12 + $0xc] sm:$0xf] %vm298_vm9, %v489_v4  ;;  %v530_v13 = vunpack.c.l.b16 %v489_v4  ;;  %v500_v15 = vsel %vm499_vm15, %v497_v10, %v498_v11  ;;  %v501_v16 = vsel %vm499_vm15, %v498_v11, %v497_v10 }
 0x2ea   :  { %v514_v17 = vsel %vm512_vm0, 0.0, %v501_v16  ;;  %v515_v18 = vsel %vm513_vm1, 0.0, %v500_v15 }
 0x2eb   :  { %v516_v19 = vpack.c.bf16 %v515_v18, %v514_v17  ;;  %v531_v20 = vpack.c.b16 %v530_v13, %v529_v14 }
 0x2ed   :  { %784 = vmatmul.msk.bf16.vlgmr.msra.gmra.mxu1 %vm212_vm8, %v531_v20  ;;  %793 = vmatmul.msk.bf16.vlgmr.msra.gmra.mxu2 %vm212_vm8, %v516_v19 }
 0x36a   :  { %v556_v25 = vpop.f32.mrf.mxu1 }
 0x370   :  { %v585_v26 = vpop.f32.mrf.mxu2 }
 0x371   :  { %v586_v27 = vadd.f32 %v585_v26, %v556_v25 }
 0x372   :  { %v558_v30 = vpop.f32.mrf.mxu1 }
 0x373   :  { %v593_v29 = vadd.f32 %v852_v28, %v586_v27 }
 0x375   :  { %v595_v33 = vmax.f32 %v593_v29, 0.0 }
 0x377   :  { %v597_v36 = vrot.slane %v595_v33, 4 }
 0x378   :  { %v587_v31 = vpop.f32.mrf.mxu2 }
 0x379   :  { %v588_v32 = vadd.f32 %v587_v31, %v558_v30 }
 0x37b   :  { %v594_v34 = vadd.f32 %v852_v28, %v588_v32 }
 0x37d   :  { %v596_v35 = vmax.f32 %v594_v34, 0.0 }
 0x37f   :  { %v598_v37 = vrot.slane %v596_v35, 4  ;;  %v609_v38 = vpack.c.bf16 %v596_v35, %v595_v33 }
 0x381   :  { %v599_v39 = vsel %vm499_vm15, %v597_v36, %v598_v37  ;;  %v600_v1 = vsel %vm499_vm15, %v598_v37, %v597_v36  ;;  %802 = vmatmul.msk.bf16.vlgmr.msra.gmra.mxu3 %vm212_vm8, %v609_v38 }
 0x382   :  { %v601_v40 = vsel %vm512_vm0, 0.0, %v600_v1  ;;  %v602_v41 = vsel %vm513_vm1, 0.0, %v599_v39 }
 0x383   :  { %v603_v42 = vpack.c.bf16 %v602_v41, %v601_v40 }
 0x385   :  { %811 = vmatmul.msk.bf16.vlgmr.msrb.gmra.mxu0 %vm212_vm8, %v603_v42 }
 0x402   :  { %v668_v43 = vpop.f32.mrf.mxu0 }
 0x404   :  { %v639_v0 = vpop.f32.mrf.mxu3 }
 0x405   :  { %v669_v44 = vadd.f32 %v668_v43, %v639_v0 }
 0x407   :  { %v676_v45 = vadd.f32 %v853_v3, %v669_v44 }
 0x409   :  { %v678_v46 = vmax.f32 %v676_v45, 0.0 }
 0x40a   :  { %v670_v47 = vpop.f32.mrf.mxu0 }
 0x40b   :  { %v680_v12 = vadd.f32 %v678_v46, %v486_v62 }
 0x40c   :  { %v641_v48 = vpop.f32.mrf.mxu3 }
 0x40d   :  { %v682_v49 = vmax.f32 %v680_v12, 0.0  ;;  %v671_v50 = vadd.f32 %v670_v47, %v641_v48 }
 0x40f   :  { %v684_v51 = vpack.c.bf16 %v682_v49, %v682_v49  ;;  %v677_v52 = vadd.f32 %v853_v3, %v671_v50 }
 0x411   :  { %812 = vst.msk [vmem:[%s1190_s12 + $0x10] sm:$0xf] %vm298_vm9, %v684_v51  ;;  %v679_v53 = vmax.f32 %v677_v52, 0.0 }
 0x413   :  { %v681_v54 = vadd.f32 %v679_v53, %v1137_v8 }
 0x415   :  { %v683_v55 = vmax.f32 %v681_v54, 0.0 }
 0x417   :  { %v685_v56 = vpack.c.bf16 %v683_v55, %v683_v55 }
 0x419   :  { %813 = vst.msk [vmem:[%s1190_s12 + $0x14] sm:$0xf] %vm298_vm9, %v685_v56 }
 0x41a   :  { %693 = vsyncpa [#allocation3], 1 }
 0x41b   :  { %694 = vsyncpa [#allocation5], 1 }

// kernel: stcn_forward.4
= control target key start
LH: loop header
LB: loop body
LE: loop exit
PB: predicated region body
PF: predicated region fallthrough
CT: control target
= control target key end

     0   :  { %19 = vsyncpa [#allocation3], 0  ;;  %s2462_s0 = inlined_call_operand.vmem [shape: s32[16,1], index: 0, kind: input, shape index: {}]   ;;  %s2463_s1 = inlined_call_operand.vmem [shape: s32[16,1], index: 1, kind: input, shape index: {}]   ;;  %s2464_s2 = inlined_call_operand.vmem [shape: bf16[3,16,32], index: 2, kind: input, shape index: {}]   ;;  %s2465_s3 = inlined_call_operand.hbm [shape: bf16[6,16,32], index: 3, kind: input, shape index: {}]   ;;  %s2466_s4 = inlined_call_operand.vmem [shape: bf16[6,32,32], index: 4, kind: input, shape index: {}]   ;;  %s2467_s5 = inlined_call_operand.hbm [shape: f32[6,1,32], index: 5, kind: input, shape index: {}]   ;;  %s2468_s6 = inlined_call_operand.hbm [shape: bf16[6,32,32], index: 6, kind: input, shape index: {}]   ;;  %s2469_s7 = inlined_call_operand.hbm [shape: f32[6,1,32], index: 7, kind: input, shape index: {}]   ;;  %s2470_s8 = inlined_call_operand.hbm [shape: bf16[6,32,32], index: 8, kind: input, shape index: {}]   ;;  %s2471_s9 = inlined_call_operand.hbm [shape: f32[6,1,32], index: 9, kind: input, shape index: {}]   ;;  %s2472_s10 = inlined_call_operand.hbm [shape: bf16[6,32,32], index: 10, kind: input, shape index: {}]   ;;  %s2473_s11 = inlined_call_operand.hbm [shape: f32[6,1,32], index: 11, kind: input, shape index: {}]   ;;  %s2474_s12 = inlined_call_operand.vmem [shape: bf16[3,16,32], index: 12, kind: output, shape index: {0}]   ;;  %s2475_s13 = inlined_call_operand.vmem [shape: f32[16,1], index: 13, kind: output, shape index: {1}]  }
   0x1   :  { %20 = vsyncpa [#allocation5], 0 }
   0x2   :  { %21 = vsyncpa [#allocation8], 0 }
   0x3   :  { %22 = vsyncpa [#allocation11], 0  ;;  %s49_s27 = sshll.u32 %s2467_s5, 4  ;;  %s50_s27 = int_to_ptr.hbm [resolvable:$true] %s49_s27 }
   0x4   :  { %23 = vsyncpa [#allocation14], 0  ;;  %s2128_s28 = smov [#allocation4]   ;;  %s75_s15 = sshll.u32 %s2469_s7, 4  ;;  %s76_s15 = int_to_ptr.hbm [resolvable:$true] %s75_s15 }
   0x5   :  { %s51_s29 = sshll.u32 %s2128_s28, 4  ;;  %s2129_s16 = smov 16   ;;  %s52_s29 = int_to_ptr.vmem [resolvable:$true] %s51_s29 }
   0x6   :  { %s2130_s17 = smov 1   ;;  %s2131_s18 = smov [#allocation7]  }
   0x7   :  { %57 = dma.hbm_to_vmem [thread:$0]  %s50_s27, 96, %s52_s29, [#allocation5], %s2129_s16, %s2129_s16, %s2130_s17  }
   0x8   :  { %s77_s19 = sshll.u32 %s2131_s18, 4  ;;  %s101_s21 = sshll.u32 %s2471_s9, 4  ;;  %s78_s19 = int_to_ptr.vmem [resolvable:$true] %s77_s19  ;;  %s102_s21 = int_to_ptr.hbm [resolvable:$true] %s101_s21 }
   0x9   :  { %83 = dma.hbm_to_vmem [thread:$0]  %s76_s15, 96, %s78_s19, [#allocation8], %s2129_s16, %s2129_s16, %s2130_s17  }
   0xa   :  { %s34_s23 = sshll.u32 %s2465_s3, 4  ;;  %s2132_s24 = smov [#allocation10]   ;;  %s35_s23 = int_to_ptr.hbm [resolvable:$true] %s34_s23 }
   0xb   :  { %s103_s25 = sshll.u32 %s2132_s24, 4  ;;  %s2133_s26 = smov [#allocation2]   ;;  %s104_s25 = int_to_ptr.vmem [resolvable:$true] %s103_s25 }
   0xc   :  { %109 = dma.hbm_to_vmem [thread:$0]  %s102_s21, 96, %s104_s25, [#allocation11], %s2129_s16, %s2129_s16, %s2130_s17  }
   0xd   :  { %s36_s9 = sshll.u32 %s2133_s26, 4  ;;  %s2134_s27 = smov 64   ;;  %s37_s9 = int_to_ptr.vmem [resolvable:$true] %s36_s9 }
   0xe   :  { %s2135_s28 = smov 4   ;;  %s62_s14 = sshll.u32 %s2468_s6, 4  ;;  %s63_s14 = int_to_ptr.hbm [resolvable:$true] %s62_s14 }
   0xf   :  { %42 = dma.hbm_to_vmem [thread:$0]  %s35_s23, 768, %s37_s9, [#allocation3], %s2134_s27, %s2134_s27, %s2135_s28  }
  0x10   :  { %s2136_s3 = smov [#allocation6]   ;;  %s88_s20 = sshll.u32 %s2470_s8, 4  ;;  %s89_s20 = int_to_ptr.hbm [resolvable:$true] %s88_s20 }
  0x11   :  { %s64_s15 = sshll.u32 %s2136_s3, 4  ;;  %s2137_s5 = smov [#allocation9]   ;;  %s65_s15 = int_to_ptr.vmem [resolvable:$true] %s64_s15 }
  0x12   :  { %70 = dma.hbm_to_vmem [thread:$0]  %s63_s14, 1536, %s65_s15, [#allocation5], %s2134_s27, %s2134_s27, %s2135_s28  }
  0x13   :  { %s90_s21 = sshll.u32 %s2137_s5, 4  ;;  %s114_s23 = sshll.u32 %s2472_s10, 4  ;;  %s91_s21 = int_to_ptr.vmem [resolvable:$true] %s90_s21  ;;  %s115_s23 = int_to_ptr.hbm [resolvable:$true] %s114_s23 }
  0x14   :  { %96 = dma.hbm_to_vmem [thread:$0]  %s89_s20, 1536, %s91_s21, [#allocation8], %s2134_s27, %s2134_s27, %s2135_s28  }
  0x15   :  { %s127_s25 = sshll.u32 %s2473_s11, 4  ;;  %s2138_s26 = smov [#allocation12]   ;;  %s128_s25 = int_to_ptr.hbm [resolvable:$true] %s127_s25 }
  0x16   :  { %s116_s9 = sshll.u32 %s2138_s26, 4  ;;  %s2139_s8 = smov [#allocation13]   ;;  %s117_s9 = int_to_ptr.vmem [resolvable:$true] %s116_s9 }
  0x17   :  { %122 = dma.hbm_to_vmem [thread:$0]  %s115_s23, 1536, %s117_s9, [#allocation11], %s2134_s27, %s2134_s27, %s2135_s28  }
  0x18   :  { %s129_s29 = sshll.u32 %s2139_s8, 4  ;;  %s130_s29 = int_to_ptr.vmem [resolvable:$true] %s129_s29 }
  0x19   :  { %135 = dma.hbm_to_vmem [thread:$0]  %s128_s25, 96, %s130_s29, [#allocation14], %s2129_s16, %s2129_s16, %s2130_s17  }
  0x1a   :  { %2118 = dma.done.wait [#allocation3], 768  }
  0x1b   :  { %2119 = vsyncadd [#allocation3], 4294966528 }
  0x1c   :  { %2120 = dma.done.wait [#allocation5], 1632  }
  0x1d   :  { %2121 = vsyncadd [#allocation5], 4294965664 }
  0x1e   :  { %2122 = dma.done.wait [#allocation8], 1632  }
  0x1f   :  { %2123 = vsyncadd [#allocation8], 4294965664 }
  0x20   :  { %2124 = dma.done.wait [#allocation11], 1632  }
  0x21   :  { %2125 = vsyncadd [#allocation11], 4294965664 }
  0x22   :  { %2126 = dma.done.wait [#allocation14], 96  }
  0x23   :  { %2127 = vsyncadd [#allocation14], 4294967200  ;;  %v1736_v0 = vld [vmem:[%s2466_s4 + $0x8] sm:$0xff]  ;;  %v1735_v1 = vld [vmem:[%s2466_s4] sm:$0xff]  ;;  %vm201_vm0 = vcmask 261120   ;;  %vm323_vm3 = vcmask 257024  }
  0x24   :  { %211 = vmatpush.bf16.msra.mxu0 %v1736_v0  ;;  %v1734_v2 = vld [vmem:[%s2464_s2 + $0x10] sm:$0xff]  ;;  %v1740_v4 = vld [vmem:[#allocation9 + $0x8] sm:$0xff]  ;;  %v1739_v6 = vld [vmem:[#allocation9] sm:$0xff] }
  0x25   :  { %v1738_v3 = vld [vmem:[#allocation12 + $0x8] sm:$0xff]  ;;  %285 = vmatpush.bf16.msra.mxu2 %v1740_v4  ;;  %v1737_v5 = vld [vmem:[#allocation12] sm:$0xff]  ;;  %v1743_v15 = vld [vmem:[%s2466_s4 + $0x18] sm:$0xff] }
  0x26   :  { %251 = vmatpush.bf16.msra.mxu1 %v1738_v3  ;;  %v1816_v8 = vld [vmem:[#allocation4] ss:$0 sm:$0xff]  ;;  %364 = vmatpush.bf16.msra.mxu3 %v1743_v15  ;;  %v1818_v16 = vld [vmem:[#allocation10] ss:$0 sm:$0xff]  ;;  %v1741_v19 = vld [vmem:[%s2464_s2] sm:$0xff] }
  0x27   :  { %v1742_v17 = vld [vmem:[%s2466_s4 + $0x10] sm:$0xff]  ;;  %v1744_v25 = vld [vmem:[#allocation6 + $0x10] sm:$0xff]  ;;  %v1817_v38 = vld [vmem:[#allocation13] ss:$0 sm:$0xff] }
  0x28   :  { %212 = vmatpush.bf16.msra.mxu0 %v1735_v1  ;;  %v1745_v23 = vld [vmem:[#allocation6 + $0x18] sm:$0xff]  ;;  %v1785_v35 = vld [vmem:[#allocation2] sm:$0xff]  }
  0x29   :  { %286 = vmatpush.bf16.msra.mxu2 %v1739_v6  ;;  %v1786_v40 = vunpack.c.l.bf16 %v1785_v35  ;;  %v1787_v49 = vunpack.c.h.bf16 %v1785_v35  ;;  %v1749_v60 = vld [vmem:[#allocation9 + $0x18] sm:$0xff]  ;;  %v1748_v62 = vld [vmem:[#allocation9 + $0x10] sm:$0xff]  ;;  %v1751_v1 = vld [vmem:[%s2466_s4 + $0x20] sm:$0xff] }
  0x2a   :  { %252 = vmatpush.bf16.msra.mxu1 %v1737_v5  ;;  %365 = vmatpush.bf16.msra.mxu3 %v1742_v17  ;;  %v1747_v61 = vld [vmem:[#allocation12 + $0x18] sm:$0xff]  ;;  %v1746_v63 = vld [vmem:[#allocation12 + $0x10] sm:$0xff]  ;;  %v1752_v0 = vld [vmem:[%s2466_s4 + $0x28] sm:$0xff] }
  0x2b   :  { %1486 = vmatmul.msk.bf16.vlgmr.msra.gmra.mxu0 %vm201_vm0, %v1734_v2  ;;  %v1761_v2 = vld [vmem:[%s2466_s4 + $0x38] sm:$0xff]  ;;  %v1750_v3 = vld [vmem:[%s2464_s2 + $0x8] sm:$0xff]  ;;  %v1760_v4 = vld [vmem:[%s2466_s4 + $0x30] sm:$0xff] }
  0x2c   :  { %410 = vmatpush.bf16.msrb.mxu0 %v1745_v23  ;;  %v1822_v23 = vld [vmem:[#allocation10 + $0x1] ss:$0 sm:$0xff] }
  0x2d   :  { %1521 = vmatmul.msk.bf16.vlgmr.msra.gmra.mxu3 %vm201_vm0, %v1741_v19  ;;  %490 = vmatpush.bf16.msrb.mxu2 %v1749_v60 }
  0x2e   :  { %454 = vmatpush.bf16.msrb.mxu1 %v1747_v61  ;;  %571 = vmatpush.bf16.msrb.mxu3 %v1752_v0 }
  0x30   :  { %411 = vmatpush.bf16.msrb.mxu0 %v1744_v25 }
  0x31   :  { %491 = vmatpush.bf16.msrb.mxu2 %v1748_v62 }
  0x32   :  { %455 = vmatpush.bf16.msrb.mxu1 %v1746_v63  ;;  %572 = vmatpush.bf16.msrb.mxu3 %v1751_v1 }
  0x36   :  { %777 = vmatpush.bf16.msra.mxu3 %v1761_v2 }
  0x3a   :  { %778 = vmatpush.bf16.msra.mxu3 %v1760_v4 }
  0x3d   :  { %1569 = vmatmul.msk.bf16.vlgmr.msrb.gmra.mxu3 %vm201_vm0, %v1750_v3 }
  0xa8   :  { %v214_v7 = vpop.f32.mrf.mxu0 }
  0xa9   :  { %v215_v9 = vadd.f32 %v1816_v8, %v214_v7  ;;  %v1819_v7 = vld [vmem:[#allocation4 + $0x1] ss:$0 sm:$0xff] }
  0xab   :  { %v219_v12 = vmax.f32 %v215_v9, 0.0 }
  0xb0   :  { %v216_v10 = vpop.f32.mrf.mxu0  ;;  %v367_v5 = vpop.f32.mrf.mxu3 }
  0xb1   :  { %v217_v11 = vadd.f32 %v1816_v8, %v216_v10  ;;  %v1820_v8 = vld [vmem:[#allocation7 + $0x1] ss:$0 sm:$0xff]  ;;  %v368_v10 = vadd.f32 %v1819_v7, %v367_v5 }
  0xb3   :  { %v220_v13 = vmax.f32 %v217_v11, 0.0  ;;  %v372_v15 = vmax.f32 %v368_v10, 0.0  ;;  %v1824_v10 = vld [vmem:[#allocation4 + $0x3] ss:$0 sm:$0xff] }
  0xb5   :  { %v221_v14 = vpack.c.bf16 %v220_v13, %v219_v12  ;;  %v1759_v12 = vld [vmem:[%s2464_s2 + $0x10] sm:$0xff] }
  0xb6   :  { %1617 = vmatmul.msk.bf16.vlgmr.msra.gmra.mxu3 %vm201_vm0, %v1759_v12 }
  0xb7   :  { %1495 = vmatmul.msk.bf16.vlgmr.msra.gmra.mxu1 %vm201_vm0, %v221_v14  ;;  %1504 = vmatmul.msk.bf16.vlgmr.msra.gmra.mxu2 %vm201_vm0, %v221_v14 }
  0xb8   :  { %v369_v9 = vpop.f32.mrf.mxu3 }
  0xb9   :  { %v370_v13 = vadd.f32 %v1819_v7, %v369_v9 }
 0x134   :  { %v254_v36 = vpop.f32.mrf.mxu1 }
 0x135   :  { %v2270_v43 = vadd.f32 %v1817_v38, %v254_v36  ;;  %v1763_v36 = vld [vmem:[#allocation12 + $0x38] sm:$0xff] }
 0x13a   :  { %v288_v18 = vpop.f32.mrf.mxu2 }
 0x13b   :  { %v289_v20 = vadd.f32 %v1818_v16, %v288_v18  ;;  %v373_v18 = vmax.f32 %v370_v13, 0.0 }
 0x13c   :  { %v256_v51 = vpop.f32.mrf.mxu1 }
 0x13d   :  { %v295_v21 = vmin.f32 %v289_v20, 20.0  ;;  %vm293_vm1 = vcmp.gt.f32.partialorder %v289_v20, 20.0  ;;  %v2280_v53 = vadd.f32 %v1817_v38, %v256_v51  ;;  %v574_v38 = vpop.f32.mrf.mxu3 }
 0x13f   :  { %v297_v22 = vmul.f32 1.442695, %v295_v21 }
 0x141   :  { %1838 = vpow2.f32 %v297_v22 }
 0x142   :  { %v290_v24 = vpop.f32.mrf.mxu2 }
 0x143   :  { %v291_v26 = vadd.f32 %v1818_v16, %v290_v24 }
 0x145   :  { %v296_v27 = vmin.f32 %v291_v26, 20.0  ;;  %vm294_vm2 = vcmp.gt.f32.partialorder %v291_v26, 20.0 }
 0x147   :  { %v1839_v28 = vpop.eup %1838  ;;  %v299_v29 = vmul.f32 1.442695, %v296_v27 }
 0x148   :  { %v301_v30 = vadd.f32 1.0, %v1839_v28  ;;  %v1754_v28 = vld [vmem:[#allocation6 + $0x28] sm:$0xff] }
 0x149   :  { %1840 = vpow2.f32 %v299_v29  ;;  %617 = vmatpush.bf16.msra.mxu0 %v1754_v28 }
 0x14a   :  { %1842 = vlog2.f32 %v301_v30 }
 0x14f   :  { %v1841_v31 = vpop.eup %1840 }
 0x150   :  { %v1843_v32 = vpop.eup %1842  ;;  %v302_v33 = vadd.f32 1.0, %v1841_v31 }
 0x151   :  { %v304_v34 = vmul.f32 0.6931472, %v1843_v32  ;;  %v1753_v32 = vld [vmem:[#allocation6 + $0x20] sm:$0xff] }
 0x152   :  { %1844 = vlog2.f32 %v302_v33  ;;  %618 = vmatpush.bf16.msra.mxu0 %v1753_v32 }
 0x153   :  { %v307_v37 = vsel %vm293_vm1, %v289_v20, %v304_v34 }
 0x154   :  { %v309_v39 = vmax.f32 %v307_v37, 0.001  ;;  %v1762_v37 = vld [vmem:[#allocation12 + $0x30] sm:$0xff] }
 0x156   :  { %v2268_v41 = vmin.f32 %v309_v39, 5.0 }
 0x158   :  { %v1845_v42 = vpop.eup %1844  ;;  %v317_v44 = vmul.f32 %v1786_v40, %v2268_v41 }
 0x159   :  { %v306_v45 = vmul.f32 0.6931472, %v1845_v42 }
 0x15a   :  { %v319_v46 = vadd.f32 %v317_v44, %v2270_v43 }
 0x15b   :  { %v308_v47 = vsel %vm294_vm2, %v291_v26, %v306_v45  ;;  %v1789_v45 = vld [vmem:[#allocation2 + $0x8] sm:$0xff]  }
 0x15c   :  { %v310_v48 = vmax.f32 %v308_v47, 0.001  ;;  %v321_v50 = vpack.c.bf16 %v319_v46, %v319_v46  ;;  %v1791_v63 = vunpack.c.h.bf16 %v1789_v45 }
 0x15e   :  { %v2274_v52 = vmin.f32 %v310_v48, 5.0  ;;  %324 = vst.msk [vmem:[%s2474_s12] sm:$0xf] %vm323_vm3, %v321_v50  ;;  %v386_v57 = vunpack.c.l.b16 %v321_v50  ;;  %v1821_v48 = vld [vmem:[#allocation13 + $0x1] ss:$0 sm:$0xff]  ;;  %v1790_v50 = vunpack.c.l.bf16 %v1789_v45 }
 0x160   :  { %v318_v54 = vmul.f32 %v1787_v49, %v2274_v52 }
 0x162   :  { %v320_v55 = vadd.f32 %v318_v54, %v2280_v53  ;;  %v576_v54 = vpop.f32.mrf.mxu3 }
 0x164   :  { %v322_v56 = vpack.c.bf16 %v320_v55, %v320_v55 }
 0x166   :  { %325 = vst.msk [vmem:[%s2474_s12 + $0x4] sm:$0xf] %vm323_vm3, %v322_v56  ;;  %v387_v58 = vunpack.c.l.b16 %v322_v56 }
 0x168   :  { %v388_v59 = vpack.c.b16 %v387_v58, %v386_v57 }
 0x16a   :  { %1530 = vmatmul.msk.bf16.vlgmr.msrb.gmra.mxu0 %vm201_vm0, %v388_v59  ;;  %v780_v4 = vpop.f32.mrf.mxu3 }
 0x16b   :  { %819 = vmatpush.bf16.msrb.mxu0 %v1763_v36  ;;  %v781_v12 = vadd.f32 %v1824_v10, %v780_v4  ;;  %v1769_v4 = vld [vmem:[#allocation6 + $0x40] sm:$0xff] }
 0x16f   :  { %820 = vmatpush.bf16.msrb.mxu0 %v1762_v37 }
 0x1e7   :  { %v413_v6 = vpop.f32.mrf.mxu0 }
 0x1e8   :  { %v414_v11 = vadd.f32 %v1820_v8, %v413_v6 }
 0x1ea   :  { %v418_v16 = vmax.f32 %v414_v11, 0.0  ;;  %v782_v11 = vpop.f32.mrf.mxu3 }
 0x1eb   :  { %v783_v13 = vadd.f32 %v1824_v10, %v782_v11 }
 0x1ec   :  { %v420_v20 = vadd.f32 %v418_v16, %v372_v15 }
 0x1ed   :  { %v786_v15 = vmax.f32 %v783_v13, 0.0  ;;  %v1793_v13 = vld [vmem:[#allocation2 + $0x10] sm:$0xff]  }
 0x1ef   :  { %v415_v14 = vpop.f32.mrf.mxu0 }
 0x1f0   :  { %v416_v17 = vadd.f32 %v1820_v8, %v415_v14  ;;  %v785_v14 = vmax.f32 %v781_v12, 0.0 }
 0x1f2   :  { %v419_v19 = vmax.f32 %v416_v17, 0.0  ;;  %v787_v16 = vpack.c.bf16 %v786_v15, %v785_v14  ;;  %v1756_v17 = vld [vmem:[#allocation12 + $0x28] sm:$0xff] }
 0x1f3   :  { %661 = vmatpush.bf16.msra.mxu1 %v1756_v17  ;;  %v1827_v17 = vld [vmem:[#allocation13 + $0x2] ss:$0 sm:$0xff] }
 0x1f4   :  { %v421_v21 = vadd.f32 %v419_v19, %v373_v18  ;;  %v1758_v18 = vld [vmem:[#allocation9 + $0x28] sm:$0xff] }
 0x1f5   :  { %697 = vmatpush.bf16.msra.mxu2 %v1758_v18  ;;  %v1755_v19 = vld [vmem:[#allocation12 + $0x20] sm:$0xff] }
 0x1f6   :  { %v422_v22 = vpack.c.bf16 %v421_v21, %v420_v20  ;;  %v1757_v20 = vld [vmem:[#allocation9 + $0x20] sm:$0xff]  ;;  %v1765_v21 = vld [vmem:[#allocation9 + $0x38] sm:$0xff] }
 0x1f7   :  { %662 = vmatpush.bf16.msra.mxu1 %v1755_v19  ;;  %v1794_v19 = vunpack.c.l.bf16 %v1793_v13 }
 0x1f8   :  { %1539 = vmatmul.msk.bf16.vlgmr.msrb.gmra.mxu1 %vm201_vm0, %v422_v22  ;;  %1548 = vmatmul.msk.bf16.vlgmr.msrb.gmra.mxu2 %vm201_vm0, %v422_v22  ;;  %v1764_v22 = vld [vmem:[#allocation9 + $0x30] sm:$0xff] }
 0x1f9   :  { %698 = vmatpush.bf16.msra.mxu2 %v1757_v20 }
 0x1fb   :  { %855 = vmatpush.bf16.msrb.mxu1 %v1765_v21 }
 0x1ff   :  { %856 = vmatpush.bf16.msrb.mxu1 %v1764_v22 }
 0x275   :  { %v457_v46 = vpop.f32.mrf.mxu1 }
 0x276   :  { %v2313_v56 = vadd.f32 %v1821_v48, %v457_v46 }
 0x27b   :  { %v493_v24 = vpop.f32.mrf.mxu2 }
 0x27c   :  { %v494_v25 = vadd.f32 %v1822_v23, %v493_v24  ;;  %v1823_v24 = vld [vmem:[#allocation4 + $0x2] ss:$0 sm:$0xff] }
 0x27d   :  { %v459_v0 = vpop.f32.mrf.mxu1  ;;  %v577_v28 = vadd.f32 %v1823_v24, %v576_v54  ;;  %v1767_v54 = vld [vmem:[%s2466_s4 + $0x40] sm:$0xff] }
 0x27e   :  { %v500_v26 = vmin.f32 %v494_v25, 20.0  ;;  %vm498_vm4 = vcmp.gt.f32.partialorder %v494_v25, 20.0  ;;  %v2323_v2 = vadd.f32 %v1821_v48, %v459_v0  ;;  %v1829_v48 = vld [vmem:[#allocation10 + $0x3] ss:$0 sm:$0xff] }
 0x280   :  { %v502_v27 = vmul.f32 1.442695, %v500_v26  ;;  %v575_v26 = vadd.f32 %v1823_v24, %v574_v38 }
 0x282   :  { %1846 = vpow2.f32 %v502_v27 }
 0x283   :  { %v495_v29 = vpop.f32.mrf.mxu2 }
 0x284   :  { %v496_v30 = vadd.f32 %v1822_v23, %v495_v29 }
 0x286   :  { %v501_v31 = vmin.f32 %v496_v30, 20.0  ;;  %vm499_vm5 = vcmp.gt.f32.partialorder %v496_v30, 20.0 }
 0x288   :  { %v1847_v33 = vpop.eup %1846  ;;  %v504_v34 = vmul.f32 1.442695, %v501_v31 }
 0x289   :  { %v506_v35 = vadd.f32 1.0, %v1847_v33  ;;  %v580_v33 = vmax.f32 %v577_v28, 0.0 }
 0x28a   :  { %1848 = vpow2.f32 %v504_v34 }
 0x28b   :  { %1850 = vlog2.f32 %v506_v35 }
 0x290   :  { %v1849_v39 = vpop.eup %1848 }
 0x291   :  { %v1851_v40 = vpop.eup %1850  ;;  %v507_v42 = vadd.f32 1.0, %v1849_v39 }
 0x292   :  { %v509_v44 = vmul.f32 0.6931472, %v1851_v40  ;;  %v1828_v40 = vld [vmem:[#allocation10 + $0x2] ss:$0 sm:$0xff] }
 0x293   :  { %1852 = vlog2.f32 %v507_v42 }
 0x294   :  { %v512_v47 = vsel %vm498_vm4, %v494_v25, %v509_v44  ;;  %v1825_v25 = vld [vmem:[#allocation7 + $0x2] ss:$0 sm:$0xff] }
 0x295   :  { %v514_v49 = vmax.f32 %v512_v47, 0.001  ;;  %v1768_v47 = vld [vmem:[%s2466_s4 + $0x48] sm:$0xff] }
 0x296   :  { %930 = vmatpush.bf16.msrb.mxu2 %v1768_v47 }
 0x297   :  { %v2311_v51 = vmin.f32 %v514_v49, 5.0 }
 0x299   :  { %v1853_v55 = vpop.eup %1852  ;;  %v523_v57 = vmul.f32 %v1790_v50, %v2311_v51 }
 0x29a   :  { %v511_v58 = vmul.f32 0.6931472, %v1853_v55  ;;  %931 = vmatpush.bf16.msrb.mxu2 %v1767_v54 }
 0x29b   :  { %v525_v59 = vadd.f32 %v523_v57, %v2313_v56 }
 0x29c   :  { %v513_v60 = vsel %vm499_vm5, %v496_v30, %v511_v58  ;;  %v579_v30 = vmax.f32 %v575_v26, 0.0 }
 0x29d   :  { %v527_v61 = vpack.c.bf16 %v525_v59, %v525_v59  ;;  %v515_v62 = vmax.f32 %v513_v60, 0.001  ;;  %v1766_v59 = vld [vmem:[%s2464_s2] sm:$0xff] }
 0x29f   :  { %1549 = vst.msk [vmem:[%s2474_s12 + $0x8] sm:$0xf] %vm323_vm3, %v527_v61  ;;  %v2321_v1 = vmin.f32 %v515_v62, 5.0  ;;  %v593_v7 = vunpack.c.l.b16 %v527_v61 }
 0x2a1   :  { %v524_v3 = vmul.f32 %v1791_v63, %v2321_v1  ;;  %v1770_v63 = vld [vmem:[#allocation6 + $0x48] sm:$0xff] }
 0x2a2   :  { %972 = vmatpush.bf16.msrb.mxu3 %v1770_v63 }
 0x2a3   :  { %v526_v5 = vadd.f32 %v524_v3, %v2323_v2 }
 0x2a5   :  { %v528_v6 = vpack.c.bf16 %v526_v5, %v526_v5 }
 0x2a6   :  { %973 = vmatpush.bf16.msrb.mxu3 %v1769_v4 }
 0x2a7   :  { %1550 = vst.msk [vmem:[%s2474_s12 + $0xc] sm:$0xf] %vm323_vm3, %v528_v6  ;;  %v594_v8 = vunpack.c.l.b16 %v528_v6 }
 0x2a9   :  { %v595_v9 = vpack.c.b16 %v594_v8, %v593_v7 }
 0x2ab   :  { %1578 = vmatmul.msk.bf16.vlgmr.msra.gmra.mxu0 %vm201_vm0, %v595_v9 }
 0x2bb   :  { %1626 = vmatmul.msk.bf16.vlgmr.msrb.gmra.mxu0 %vm201_vm0, %v787_v16 }
 0x328   :  { %v620_v23 = vpop.f32.mrf.mxu0 }
 0x329   :  { %v621_v27 = vadd.f32 %v1825_v25, %v620_v23 }
 0x32b   :  { %v625_v31 = vmax.f32 %v621_v27, 0.0 }
 0x32d   :  { %v627_v35 = vadd.f32 %v625_v31, %v579_v30  ;;  %v1795_v31 = vunpack.c.h.bf16 %v1793_v13 }
 0x330   :  { %v622_v29 = vpop.f32.mrf.mxu0 }
 0x331   :  { %v623_v32 = vadd.f32 %v1825_v25, %v622_v29 }
 0x333   :  { %v626_v34 = vmax.f32 %v623_v32, 0.0 }
 0x335   :  { %v628_v36 = vadd.f32 %v626_v34, %v580_v33 }
 0x337   :  { %v629_v37 = vpack.c.bf16 %v628_v36, %v627_v35 }
 0x338   :  { %v822_v20 = vpop.f32.mrf.mxu0 }
 0x339   :  { %1587 = vmatmul.msk.bf16.vlgmr.msra.gmra.mxu1 %vm201_vm0, %v629_v37  ;;  %1596 = vmatmul.msk.bf16.vlgmr.msra.gmra.mxu2 %vm201_vm0, %v629_v37  ;;  %v1826_v37 = vld [vmem:[#allocation13 + $0x3] ss:$0 sm:$0xff] }
 0x349   :  { %1635 = vmatmul.msk.bf16.vlgmr.msrb.gmra.mxu1 %vm201_vm0, %v787_v16  ;;  %1652 = vmatmul.msk.bf16.vlgmr.msrb.gmra.mxu2 %vm201_vm0, %v1766_v59 }
 0x3b6   :  { %v664_v39 = vpop.f32.mrf.mxu1 }
 0x3b7   :  { %v2350_v23 = vadd.f32 %v1827_v17, %v664_v39  ;;  %v1279_v39 = vlaneseq }
 0x3b9   :  { %v2365_v54 = vshrl.u32 %v1279_v39, 7 }
 0x3bb   :  { %vm1281_vm10 = vcmp.lt.s32.totalorder %v2365_v54, 7 }
 0x3bc   :  { %v700_v38 = vpop.f32.mrf.mxu2 }
 0x3bd   :  { %v701_v42 = vadd.f32 %v1828_v40, %v700_v38 }
 0x3be   :  { %v2336_v44 = vpop.f32.mrf.mxu1 }
 0x3bf   :  { %v707_v45 = vmin.f32 %v701_v42, 20.0  ;;  %vm705_vm6 = vcmp.gt.f32.partialorder %v701_v42, 20.0  ;;  %v2361_v38 = vadd.f32 %v1827_v17, %v2336_v44 }
 0x3c1   :  { %v709_v46 = vmul.f32 1.442695, %v707_v45 }
 0x3c3   :  { %1854 = vpow2.f32 %v709_v46  ;;  %v1797_v46 = vld [vmem:[#allocation2 + $0x18] sm:$0xff]  }
 0x3c4   :  { %v702_v49 = vpop.f32.mrf.mxu2  ;;  %v1798_v59 = vunpack.c.l.bf16 %v1797_v46 }
 0x3c5   :  { %v703_v50 = vadd.f32 %v1828_v40, %v702_v49  ;;  %v824_v40 = vpop.f32.mrf.mxu0  ;;  %v823_v49 = vadd.f32 %v1826_v37, %v822_v20 }
 0x3c6   :  { %v858_v55 = vpop.f32.mrf.mxu1 }
 0x3c7   :  { %v708_v57 = vmin.f32 %v703_v50, 20.0  ;;  %v859_v58 = vadd.f32 %v1829_v48, %v858_v55  ;;  %vm706_vm7 = vcmp.gt.f32.partialorder %v703_v50, 20.0 }
 0x3c9   :  { %v1855_v60 = vpop.eup %1854  ;;  %v711_v61 = vmul.f32 1.442695, %v708_v57  ;;  %v865_v62 = vmin.f32 %v859_v58, 20.0  ;;  %vm863_vm8 = vcmp.gt.f32.partialorder %v859_v58, 20.0 }
 0x3ca   :  { %v713_v0 = vadd.f32 1.0, %v1855_v60 }
 0x3cb   :  { %1856 = vpow2.f32 %v711_v61  ;;  %v867_v3 = vmul.f32 1.442695, %v865_v62  ;;  %v1799_v61 = vunpack.c.h.bf16 %v1797_v46  ;;  %v1277_v62 = vrot.slane %v823_v49, 1 }
 0x3cc   :  { %1858 = vlog2.f32 %v713_v0 }
 0x3cd   :  { %1860 = vpow2.f32 %v867_v3 }
 0x3ce   :  { %v860_v5 = vpop.f32.mrf.mxu1 }
 0x3cf   :  { %v861_v6 = vadd.f32 %v1829_v48, %v860_v5 }
 0x3d1   :  { %v1857_v7 = vpop.eup %1856  ;;  %v866_v8 = vmin.f32 %v861_v6, 20.0  ;;  %vm864_vm9 = vcmp.gt.f32.partialorder %v861_v6, 20.0 }
 0x3d2   :  { %v1859_v9 = vpop.eup %1858  ;;  %v714_v10 = vadd.f32 1.0, %v1857_v7 }
 0x3d3   :  { %v1861_v11 = vpop.eup %1860  ;;  %v716_v12 = vmul.f32 0.6931472, %v1859_v9  ;;  %v869_v14 = vmul.f32 1.442695, %v866_v8 }
 0x3d4   :  { %1862 = vlog2.f32 %v714_v10  ;;  %v871_v15 = vadd.f32 1.0, %v1861_v11 }
 0x3d5   :  { %v719_v16 = vsel %vm705_vm6, %v701_v42, %v716_v12  ;;  %1864 = vpow2.f32 %v869_v14 }
 0x3d6   :  { %v721_v18 = vmax.f32 %v719_v16, 0.001  ;;  %1866 = vlog2.f32 %v871_v15 }
 0x3d8   :  { %v2348_v21 = vmin.f32 %v721_v18, 5.0 }
 0x3da   :  { %v1863_v22 = vpop.eup %1862  ;;  %v730_v24 = vmul.f32 %v1794_v19, %v2348_v21 }
 0x3db   :  { %v1865_v25 = vpop.eup %1864  ;;  %v718_v26 = vmul.f32 0.6931472, %v1863_v22 }
 0x3dc   :  { %v1867_v27 = vpop.eup %1866  ;;  %v732_v28 = vadd.f32 %v730_v24, %v2350_v23  ;;  %v872_v29 = vadd.f32 1.0, %v1865_v25 }
 0x3dd   :  { %v720_v30 = vsel %vm706_vm7, %v703_v50, %v718_v26  ;;  %v874_v32 = vmul.f32 0.6931472, %v1867_v27  ;;  %v825_v50 = vadd.f32 %v1826_v37, %v824_v40  ;;  %v1302_v26 = vmul.f32 %v2268_v41, %v2268_v41 }
 0x3de   :  { %v734_v33 = vpack.c.bf16 %v732_v28, %v732_v28  ;;  %v722_v34 = vmax.f32 %v720_v30, 0.001  ;;  %1868 = vlog2.f32 %v872_v29 }
 0x3df   :  { %v877_v35 = vsel %vm863_vm8, %v859_v58, %v874_v32  ;;  %1870 = vrcp.f32 %v2268_v41  ;;  %v1278_v63 = vrot.slane %v825_v50, 1 }
 0x3e0   :  { %1597 = vst.msk [vmem:[%s2474_s12 + $0x10] sm:$0xf] %vm323_vm3, %v734_v33  ;;  %v2358_v36 = vmin.f32 %v722_v34, 5.0  ;;  %v879_v45 = vmax.f32 %v877_v35, 0.001  ;;  %1872 = vrcp.f32 %v2274_v52  ;;  %v1303_v34 = vmul.f32 %v2274_v52, %v2274_v52  ;;  %v1771_v52 = vld [vmem:[#allocation12 + $0x40] sm:$0xff] }
 0x3e1   :  { %v1282_v7 = vsel %vm1281_vm10, %v1277_v62, %v1278_v63  ;;  %v1283_v19 = vsel %vm1281_vm10, %v1278_v63, %v1277_v62 }
 0x3e2   :  { %v731_v42 = vmul.f32 %v1795_v31, %v2358_v36  ;;  %v881_v58 = vmin.f32 %v879_v45, 5.0  ;;  %v1304_v18 = vsub.f32 %v2270_v43, %v1282_v7  ;;  %v1305_v22 = vsub.f32 %v2280_v53, %v1283_v19 }
 0x3e4   :  { %v1869_v47 = vpop.eup %1868  ;;  %v733_v48 = vadd.f32 %v731_v42, %v2361_v38  ;;  %v888_v0 = vmul.f32 %v1798_v59, %v881_v58  ;;  %v1284_v4 = vrot.slane %v881_v58, 1  ;;  %v1306_v24 = vmul.f32 %v1304_v18, %v1304_v18  ;;  %v1830_v58 = vld [vmem:[#allocation4 + $0x4] ss:$0 sm:$0xff]  ;;  %v1831_v59 = vld [vmem:[#allocation7 + $0x4] ss:$0 sm:$0xff] }
 0x3e5   :  { %v876_v55 = vmul.f32 0.6931472, %v1869_v47  ;;  %v1871_v8 = vpop.eup %1870  ;;  %v1307_v28 = vmul.f32 %v1305_v22, %v1305_v22  ;;  %v1779_v18 = vld [vmem:[#allocation6 + $0x58] sm:$0xff]  ;;  %v1778_v22 = vld [vmem:[#allocation6 + $0x50] sm:$0xff] }
 0x3e6   :  { %v735_v57 = vpack.c.bf16 %v733_v48, %v733_v48  ;;  %v890_v9 = vadd.f32 %v888_v0, %v823_v49  ;;  %v1873_v13 = vpop.eup %1872  ;;  %v1308_v29 = vadd.f32 %v1306_v24, %v1302_v26  ;;  %v1774_v48 = vld [vmem:[#allocation9 + $0x48] sm:$0xff]  ;;  %1169 = vmatpush.bf16.msra.mxu3 %v1779_v18 }
 0x3e7   :  { %v878_v60 = vsel %vm864_vm9, %v861_v6, %v876_v55  ;;  %v1309_v39 = vadd.f32 %v1307_v28, %v1303_v34  ;;  %1052 = vmatpush.bf16.msra.mxu1 %v1774_v48  ;;  %v1772_v49 = vld [vmem:[#allocation12 + $0x48] sm:$0xff]  ;;  %v933_v55 = vpop.f32.mrf.mxu2  ;;  %vm1456_vm9 = vcmask 7168  }
 0x3e8   :  { %1598 = vst.msk [vmem:[%s2474_s12 + $0x14] sm:$0xf] %vm323_vm3, %v735_v57  ;;  %v880_v44 = vmax.f32 %v878_v60, 0.001  ;;  %1016 = vmatpush.bf16.msra.mxu0 %v1772_v49 }
 0x3ea   :  { %v882_v3 = vmin.f32 %v880_v44, 5.0  ;;  %v934_v44 = vadd.f32 %v1830_v58, %v933_v55  ;;  %1170 = vmatpush.bf16.msra.mxu3 %v1778_v22 }
 0x3ec   :  { %v889_v5 = vmul.f32 %v1799_v61, %v882_v3  ;;  %v1285_v6 = vrot.slane %v882_v3, 1  ;;  %1017 = vmatpush.bf16.msra.mxu0 %v1771_v52  ;;  %v938_v0 = vmax.f32 %v934_v44, 0.0 }
 0x3ee   :  { %v891_v10 = vadd.f32 %v889_v5, %v825_v50  ;;  %v1286_v11 = vsel %vm1281_vm10, %v1284_v4, %v1285_v6  ;;  %v1287_v12 = vsel %vm1281_vm10, %v1285_v6, %v1284_v4  ;;  %v1773_v50 = vld [vmem:[#allocation9 + $0x40] sm:$0xff] }
 0x3ef   :  { %v1288_v14 = vmul.f32 %v1286_v11, %v1286_v11  ;;  %v1294_v15 = vmul.f32 %v1871_v8, %v1286_v11  ;;  %v1295_v17 = vmul.f32 %v1873_v13, %v1287_v12  ;;  %v1289_v20 = vmul.f32 %v1287_v12, %v1287_v12  ;;  %1053 = vmatpush.bf16.msra.mxu1 %v1773_v50  ;;  %v935_v60 = vpop.f32.mrf.mxu2  ;;  %v1777_v11 = vld [vmem:[%s2466_s4 + $0x58] sm:$0xff] }
 0x3f0   :  { %v940_v16 = vpack.c.bf16 %v891_v10, %v890_v9  ;;  %v936_v62 = vadd.f32 %v1830_v58, %v935_v60  ;;  %v1833_v10 = vld [vmem:[#allocation10 + $0x4] ss:$0 sm:$0xff]  ;;  %1127 = vmatpush.bf16.msra.mxu2 %v1777_v11 }
 0x3f1   :  { %1874 = vrcp.f32 %v1288_v14  ;;  %v1776_v14 = vld [vmem:[%s2466_s4 + $0x50] sm:$0xff] }
 0x3f2   :  { %1661 = vmatmul.msk.bf16.vlgmr.msrb.gmra.mxu3 %vm201_vm0, %v940_v16  ;;  %1876 = vlog2.f32 %v1294_v15  ;;  %v939_v5 = vmax.f32 %v936_v62, 0.0 }
 0x3f3   :  { %1878 = vlog2.f32 %v1295_v17  ;;  %v1775_v17 = vld [vmem:[%s2464_s2 + $0x8] sm:$0xff] }
 0x3f4   :  { %1880 = vrcp.f32 %v1289_v20  ;;  %1128 = vmatpush.bf16.msra.mxu2 %v1776_v14  ;;  %v1346_v14 = vmul.f32 %v2311_v51, %v2311_v51 }
 0x3f7   :  { %v1875_v25 = vpop.eup %1874  ;;  %1698 = vmatmul.msk.bf16.vlgmr.msra.gmra.mxu2 %vm201_vm0, %v1775_v17 }
 0x3f8   :  { %v1877_v27 = vpop.eup %1876  ;;  %v1310_v32 = vmul.f32 %v1875_v25, %v1308_v29 }
 0x3f9   :  { %v1297_v43 = vmul.f32 0.6931472, %v1877_v27  ;;  %v1879_v30 = vpop.eup %1878 }
 0x3fa   :  { %v1299_v33 = vmul.f32 0.6931472, %v1879_v30  ;;  %v1881_v35 = vpop.eup %1880 }
 0x3fb   :  { %v1300_v31 = vmul.f32 2.0, %v1297_v43  ;;  %v1311_v42 = vmul.f32 %v1881_v35, %v1309_v39  ;;  %v1832_v35 = vld [vmem:[#allocation13 + $0x4] ss:$0 sm:$0xff] }
 0x3fc   :  { %v1301_v53 = vmul.f32 2.0, %v1299_v33 }
 0x3fd   :  { %v1312_v37 = vadd.f32 %v1310_v32, %v1300_v31 }
 0x3fe   :  { %v1313_v41 = vadd.f32 %v1311_v42, %v1301_v53 }
 0x3ff   :  { %v1726_v40 = vadd.f32 -1.0, %v1312_v37  ;;  %v1801_v37 = vld [vmem:[#allocation2 + $0x20] sm:$0xff]  }
 0x400   :  { %v1727_v46 = vadd.f32 -1.0, %v1313_v41  ;;  %v1803_v48 = vunpack.c.h.bf16 %v1801_v37 }
 0x401   :  { %v1316_v45 = vsel %vm201_vm0, %v1726_v40, 0.0 }
 0x402   :  { %1317 = vadd.xlane.f32.xlu0 %v1316_v45  ;;  %v1319_v47 = vsel %vm201_vm0, %v1727_v46, 0.0  ;;  %v1802_v45 = vunpack.c.l.bf16 %v1801_v37 }
 0x40a   :  { %1320 = vadd.xlane.f32.xlu0 %v1319_v47 }
 0x475   :  { %v975_v57 = vpop.f32.mrf.mxu3 }
 0x476   :  { %v976_v61 = vadd.f32 %v1831_v59, %v975_v57 }
 0x478   :  { %v980_v3 = vmax.f32 %v976_v61, 0.0 }
 0x47a   :  { %v982_v7 = vadd.f32 %v980_v3, %v938_v0 }
 0x47d   :  { %v977_v63 = vpop.f32.mrf.mxu3 }
 0x47e   :  { %v978_v4 = vadd.f32 %v1831_v59, %v977_v63 }
 0x480   :  { %v981_v6 = vmax.f32 %v978_v4, 0.0 }
 0x482   :  { %v983_v8 = vadd.f32 %v981_v6, %v939_v5 }
 0x484   :  { %v984_v9 = vpack.c.bf16 %v983_v8, %v982_v7 }
 0x486   :  { %1670 = vmatmul.msk.bf16.vlgmr.msra.gmra.mxu0 %vm201_vm0, %v984_v9  ;;  %1679 = vmatmul.msk.bf16.vlgmr.msra.gmra.mxu1 %vm201_vm0, %v984_v9 }
 0x503   :  { %v1055_v12 = vpop.f32.mrf.mxu1  ;;  %v1019_v28 = vpop.f32.mrf.mxu0 }
 0x504   :  { %v1056_v13 = vadd.f32 %v1833_v10, %v1055_v12  ;;  %v1020_v41 = vadd.f32 %v1832_v35, %v1019_v28 }
 0x506   :  { %v1062_v15 = vmin.f32 %v1056_v13, 20.0  ;;  %vm1060_vm11 = vcmp.gt.f32.partialorder %v1056_v13, 20.0  ;;  %v1324_v55 = vrot.slane %v1020_v41, 1 }
 0x508   :  { %v1064_v16 = vmul.f32 1.442695, %v1062_v15 }
 0x50a   :  { %1882 = vpow2.f32 %v1064_v16 }
 0x50b   :  { %v1057_v19 = vpop.f32.mrf.mxu1  ;;  %v1021_v34 = vpop.f32.mrf.mxu0 }
 0x50c   :  { %v1058_v20 = vadd.f32 %v1833_v10, %v1057_v19  ;;  %v1022_v39 = vadd.f32 %v1832_v35, %v1021_v34  ;;  %v1782_v34 = vld [vmem:[#allocation9 + $0x50] sm:$0xff]  ;;  %v1130_v35 = vpop.f32.mrf.mxu2 }
 0x50e   :  { %v1063_v24 = vmin.f32 %v1058_v20, 20.0  ;;  %vm1061_vm12 = vcmp.gt.f32.partialorder %v1058_v20, 20.0  ;;  %v1325_v49 = vrot.slane %v1022_v39, 1 }
 0x510   :  { %v1883_v25 = vpop.eup %1882  ;;  %v1066_v26 = vmul.f32 1.442695, %v1063_v24  ;;  %v1326_v60 = vsel %vm1281_vm10, %v1324_v55, %v1325_v49  ;;  %v1327_v9 = vsel %vm1281_vm10, %v1325_v49, %v1324_v55  ;;  %v1347_v24 = vmul.f32 %v2321_v1, %v2321_v1 }
 0x511   :  { %v1068_v27 = vadd.f32 1.0, %v1883_v25  ;;  %v1348_v8 = vsub.f32 %v2313_v56, %v1326_v60  ;;  %v1349_v11 = vsub.f32 %v2323_v2, %v1327_v9 }
 0x512   :  { %1884 = vpow2.f32 %v1066_v26 }
 0x513   :  { %1886 = vlog2.f32 %v1068_v27  ;;  %v1350_v12 = vmul.f32 %v1348_v8, %v1348_v8  ;;  %v1351_v16 = vmul.f32 %v1349_v11, %v1349_v11 }
 0x515   :  { %v1352_v17 = vadd.f32 %v1350_v12, %v1346_v14  ;;  %v1353_v27 = vadd.f32 %v1351_v16, %v1347_v24 }
 0x518   :  { %v1885_v43 = vpop.eup %1884 }
 0x519   :  { %v1887_v29 = vpop.eup %1886  ;;  %v1069_v30 = vadd.f32 1.0, %v1885_v43 }
 0x51a   :  { %v1071_v31 = vmul.f32 0.6931472, %v1887_v29 }
 0x51b   :  { %1888 = vlog2.f32 %v1069_v30 }
 0x51c   :  { %v1074_v32 = vsel %vm1060_vm11, %v1056_v13, %v1071_v31  ;;  %1890 = vrcp.f32 %v2311_v51 }
 0x51d   :  { %v1076_v33 = vmax.f32 %v1074_v32, 0.001  ;;  %1892 = vrcp.f32 %v2321_v1  ;;  %v1783_v32 = vld [vmem:[#allocation9 + $0x58] sm:$0xff] }
 0x51e   :  { %1249 = vmatpush.bf16.msrb.mxu1 %v1783_v32  ;;  %v1780_v1 = vld [vmem:[#allocation12 + $0x50] sm:$0xff] }
 0x51f   :  { %v1078_v42 = vmin.f32 %v1076_v33, 5.0  ;;  %v1781_v33 = vld [vmem:[#allocation12 + $0x58] sm:$0xff] }
 0x520   :  { %1213 = vmatpush.bf16.msrb.mxu0 %v1781_v33 }
 0x521   :  { %v1889_v53 = vpop.eup %1888  ;;  %v1085_v50 = vmul.f32 %v1802_v45, %v1078_v42  ;;  %v1328_v57 = vrot.slane %v1078_v42, 1 }
 0x522   :  { %v1073_v40 = vmul.f32 0.6931472, %v1889_v53  ;;  %v1891_v44 = vpop.eup %1890  ;;  %1250 = vmatpush.bf16.msrb.mxu1 %v1782_v34  ;;  %v1834_v53 = vld [vmem:[#allocation4 + $0x5] ss:$0 sm:$0xff] }
 0x523   :  { %v1087_v61 = vadd.f32 %v1085_v50, %v1020_v41  ;;  %v1893_v3 = vpop.eup %1892  ;;  %v1131_v42 = vadd.f32 %v1834_v53, %v1130_v35 }
 0x524   :  { %v1075_v46 = vsel %vm1061_vm12, %v1058_v20, %v1073_v40  ;;  %1214 = vmatpush.bf16.msrb.mxu0 %v1780_v1  ;;  %v1132_v40 = vpop.f32.mrf.mxu2 }
 0x525   :  { %v1077_v47 = vmax.f32 %v1075_v46, 0.001  ;;  %v1133_v41 = vadd.f32 %v1834_v53, %v1132_v40  ;;  %v1390_v40 = vmul.f32 %v2348_v21, %v2348_v21 }
 0x527   :  { %v1079_v52 = vmin.f32 %v1077_v47, 5.0  ;;  %v1135_v47 = vmax.f32 %v1131_v42, 0.0  ;;  %v1136_v50 = vmax.f32 %v1133_v41, 0.0 }
 0x529   :  { %v1086_v58 = vmul.f32 %v1803_v48, %v1079_v52  ;;  %v1329_v59 = vrot.slane %v1079_v52, 1 }
 0x52b   :  { %v1088_v62 = vadd.f32 %v1086_v58, %v1022_v39  ;;  %v1330_v63 = vsel %vm1281_vm10, %v1328_v57, %v1329_v59  ;;  %v1331_v0 = vsel %vm1281_vm10, %v1329_v59, %v1328_v57  ;;  %v1835_v39 = vld [vmem:[#allocation7 + $0x5] ss:$0 sm:$0xff]  ;;  %v1837_v59 = vld [vmem:[#allocation10 + $0x5] ss:$0 sm:$0xff] }
 0x52c   :  { %v1332_v4 = vmul.f32 %v1330_v63, %v1330_v63  ;;  %v1338_v5 = vmul.f32 %v1891_v44, %v1330_v63  ;;  %v1339_v7 = vmul.f32 %v1893_v3, %v1331_v0  ;;  %v1333_v10 = vmul.f32 %v1331_v0, %v1331_v0 }
 0x52d   :  { %v1137_v6 = vpack.c.bf16 %v1088_v62, %v1087_v61 }
 0x52e   :  { %1894 = vrcp.f32 %v1332_v4 }
 0x52f   :  { %1707 = vmatmul.msk.bf16.vlgmr.msra.gmra.mxu3 %vm201_vm0, %v1137_v6  ;;  %1896 = vlog2.f32 %v1338_v5 }
 0x530   :  { %1898 = vlog2.f32 %v1339_v7 }
 0x531   :  { %1900 = vrcp.f32 %v1333_v10 }
 0x534   :  { %v1895_v13 = vpop.eup %1894 }
 0x535   :  { %v1897_v15 = vpop.eup %1896  ;;  %v1354_v20 = vmul.f32 %v1895_v13, %v1352_v17 }
 0x536   :  { %v1341_v56 = vmul.f32 0.6931472, %v1897_v15  ;;  %v1899_v18 = vpop.eup %1898  ;;  %v1836_v15 = vld [vmem:[#allocation13 + $0x5] ss:$0 sm:$0xff] }
 0x537   :  { %v1343_v22 = vmul.f32 0.6931472, %v1899_v18  ;;  %v1901_v25 = vpop.eup %1900 }
 0x538   :  { %v1344_v19 = vmul.f32 2.0, %v1341_v56  ;;  %v1355_v43 = vmul.f32 %v1901_v25, %v1353_v27 }
 0x539   :  { %v1345_v2 = vmul.f32 2.0, %v1343_v22 }
 0x53a   :  { %v1356_v26 = vadd.f32 %v1354_v20, %v1344_v19 }
 0x53b   :  { %v1357_v51 = vadd.f32 %v1355_v43, %v1345_v2 }
 0x53c   :  { %v1728_v28 = vadd.f32 -1.0, %v1356_v26 }
 0x53d   :  { %v1729_v30 = vadd.f32 -1.0, %v1357_v51 }
 0x53e   :  { %v1360_v29 = vsel %vm201_vm0, %v1728_v28, 0.0 }
 0x53f   :  { %1361 = vadd.xlane.f32.xlu1 %v1360_v29  ;;  %v1363_v31 = vsel %vm201_vm0, %v1729_v30, 0.0 }
 0x547   :  { %1364 = vadd.xlane.f32.xlu1 %v1363_v31 }
 0x5b2   :  { %v1172_v37 = vpop.f32.mrf.mxu3 }
 0x5b3   :  { %v1173_v45 = vadd.f32 %v1835_v39, %v1172_v37 }
 0x5b5   :  { %v1177_v48 = vmax.f32 %v1173_v45, 0.0 }
 0x5b7   :  { %v1179_v55 = vadd.f32 %v1177_v48, %v1135_v47 }
 0x5ba   :  { %v1174_v46 = vpop.f32.mrf.mxu3 }
 0x5bb   :  { %v1175_v49 = vadd.f32 %v1835_v39, %v1174_v46 }
 0x5bd   :  { %v1178_v52 = vmax.f32 %v1175_v49, 0.0  ;;  %v1391_v49 = vmul.f32 %v2358_v36, %v2358_v36 }
 0x5bf   :  { %v1180_v57 = vadd.f32 %v1178_v52, %v1136_v50 }
 0x5c1   :  { %v1181_v58 = vpack.c.bf16 %v1180_v57, %v1179_v55 }
 0x5c3   :  { %1716 = vmatmul.msk.bf16.vlgmr.msrb.gmra.mxu0 %vm201_vm0, %v1181_v58  ;;  %1725 = vmatmul.msk.bf16.vlgmr.msrb.gmra.mxu1 %vm201_vm0, %v1181_v58 }
 0x640   :  { %v1252_v60 = vpop.f32.mrf.mxu1  ;;  %v1216_v7 = vpop.f32.mrf.mxu0 }
 0x641   :  { %v1253_v44 = vadd.f32 %v1837_v59, %v1252_v60  ;;  %v1217_v19 = vadd.f32 %v1836_v15, %v1216_v7 }
 0x643   :  { %v1259_v61 = vmin.f32 %v1253_v44, 20.0  ;;  %vm1257_vm13 = vcmp.gt.f32.partialorder %v1253_v44, 20.0  ;;  %v1368_v26 = vrot.slane %v1217_v19, 1 }
 0x645   :  { %v1261_v62 = vmul.f32 1.442695, %v1259_v61  ;;  %v171_v61 = vld [vmem:[%s2463_s1] sm:$0xff] }
 0x647   :  { %1902 = vpow2.f32 %v1261_v62  ;;  %v1732_v62 = vadd.s32 4294967295, %v171_v61 }
 0x648   :  { %v1254_v63 = vpop.f32.mrf.mxu1  ;;  %v1218_v13 = vpop.f32.mrf.mxu0 }
 0x649   :  { %v1255_v0 = vadd.f32 %v1837_v59, %v1254_v63  ;;  %v1219_v17 = vadd.f32 %v1836_v15, %v1218_v13  ;;  %vm1416_vm15 = vcmp.gt.s32.totalorder %v1732_v62, 1 }
 0x64a   :  { %v1417_v63 = vsel %vm1416_vm15, %v1732_v62, 1 }
 0x64b   :  { %v1260_v3 = vmin.f32 %v1255_v0, 20.0  ;;  %vm1258_vm14 = vcmp.gt.f32.partialorder %v1255_v0, 20.0  ;;  %v1369_v24 = vrot.slane %v1219_v17, 1  ;;  %v1362_v17 = vpop.xlane.xlu1 %1361 }
 0x64d   :  { %v1903_v4 = vpop.eup %1902  ;;  %v1263_v5 = vmul.f32 1.442695, %v1260_v3  ;;  %v1370_v43 = vsel %vm1281_vm10, %v1368_v26, %v1369_v24  ;;  %v1371_v1 = vsel %vm1281_vm10, %v1369_v24, %v1368_v26  ;;  %v1420_v3 = vmul.u32 96, %v1417_v63 }
 0x64e   :  { %v1265_v6 = vadd.f32 1.0, %v1903_v4  ;;  %v1392_v34 = vsub.f32 %v2350_v23, %v1370_v43  ;;  %v1393_v37 = vsub.f32 %v2361_v38, %v1371_v1 }
 0x64f   :  { %1904 = vpow2.f32 %v1263_v5  ;;  %v1422_v4 = vcvt.s32.f32 %v1420_v3 }
 0x650   :  { %1906 = vlog2.f32 %v1265_v6  ;;  %v1394_v53 = vmul.f32 %v1392_v34, %v1392_v34  ;;  %v1395_v45 = vmul.f32 %v1393_v37, %v1393_v37 }
 0x652   :  { %v1396_v46 = vadd.f32 %v1394_v53, %v1390_v40  ;;  %v1397_v55 = vadd.f32 %v1395_v45, %v1391_v49 }
 0x655   :  { %v1905_v8 = vpop.eup %1904 }
 0x656   :  { %v1907_v9 = vpop.eup %1906  ;;  %v1266_v10 = vadd.f32 1.0, %v1905_v8 }
 0x657   :  { %v1268_v11 = vmul.f32 0.6931472, %v1907_v9 }
 0x658   :  { %1908 = vlog2.f32 %v1266_v10 }
 0x659   :  { %v1271_v12 = vsel %vm1257_vm13, %v1253_v44, %v1268_v11  ;;  %1910 = vrcp.f32 %v2348_v21 }
 0x65a   :  { %v1273_v16 = vmax.f32 %v1271_v12, 0.001  ;;  %1912 = vrcp.f32 %v2358_v36  ;;  %v172_v36 = vld [vmem:[%s2463_s1 + $0x8] sm:$0xff] }
 0x65c   :  { %v1275_v20 = vmin.f32 %v1273_v16, 5.0  ;;  %v1433_v16 = vand.u32 2147483647, %v1422_v4 }
 0x65e   :  { %v1909_v14 = vpop.eup %1908  ;;  %v1372_v2 = vrot.slane %v1275_v20, 1  ;;  %vm1434_vm4 = vcmp.eq.f32.partialorder %v1433_v16, 8.507059e+37 }
 0x65f   :  { %v1270_v56 = vmul.f32 0.6931472, %v1909_v14  ;;  %v1911_v28 = vpop.eup %1910  ;;  %v1435_v14 = vand.u32 2147483648, %v1422_v4 }
 0x660   :  { %v1913_v30 = vpop.eup %1912 }
 0x661   :  { %v1272_v18 = vsel %vm1258_vm14, %v1255_v0, %v1270_v56  ;;  %v1733_v0 = vadd.s32 4294967295, %v172_v36  ;;  %v1436_v19 = vor.u32 1.1754944e-38, %v1435_v14 }
 0x662   :  { %v1274_v22 = vmax.f32 %v1272_v18, 0.001  ;;  %v1318_v18 = vpop.xlane.xlu0 %1317 }
 0x663   :  { %vm1418_vm1 = vcmp.gt.s32.totalorder %v1733_v0, 1  ;;  %v1366_v24 = vadd.f32 %v1362_v17, %v1318_v18 }
 0x664   :  { %v1276_v25 = vmin.f32 %v1274_v22, 5.0  ;;  %v1419_v5 = vsel %vm1418_vm1, %v1733_v0, 1 }
 0x665   :  { %v1421_v6 = vmul.u32 96, %v1419_v5 }
 0x666   :  { %v1373_v27 = vrot.slane %v1276_v25, 1  ;;  %v169_v25 = vld [vmem:[%s2462_s0] sm:$0xff] }
 0x667   :  { %v1423_v7 = vcvt.s32.f32 %v1421_v6  ;;  %vm1414_vm7 = vcmp.lt.s32.totalorder %v169_v25, %v1732_v62 }
 0x668   :  { %v1374_v29 = vsel %vm1281_vm10, %v1372_v2, %v1373_v27  ;;  %v1375_v51 = vsel %vm1281_vm10, %v1373_v27, %v1372_v2 }
 0x669   :  { %v1376_v31 = vmul.f32 %v1374_v29, %v1374_v29  ;;  %v1382_v32 = vmul.f32 %v1911_v28, %v1374_v29  ;;  %v1383_v33 = vmul.f32 %v1913_v30, %v1375_v51  ;;  %v1377_v35 = vmul.f32 %v1375_v51, %v1375_v51  ;;  %v1365_v30 = vpop.xlane.xlu1 %1364 }
 0x66a   :  { %vm1444_vm5 = vweird.f32 %v1423_v7  ;;  %v1450_v27 = vand.u32 2147483648, %v1423_v7  ;;  %v1448_v29 = vand.u32 2147483647, %v1423_v7  ;;  %v1321_v34 = vpop.xlane.xlu0 %1320 }
 0x66b   :  { %1914 = vrcp.f32 %v1376_v31  ;;  %v1367_v1 = vadd.f32 %v1365_v30, %v1321_v34 }
 0x66c   :  { %1916 = vlog2.f32 %v1382_v32  ;;  %v1451_v31 = vor.u32 1.1754944e-38, %v1450_v27  ;;  %vm1449_vm10 = vcmp.eq.f32.partialorder %v1448_v29, 8.507059e+37 }
 0x66d   :  { %1918 = vlog2.f32 %v1383_v33 }
 0x66e   :  { %1920 = vrcp.f32 %v1377_v35  ;;  %v170_v35 = vld [vmem:[%s2462_s0 + $0x8] sm:$0xff] }
 0x66f   :  { %1922 = vrcp.f32 %v1422_v4  ;;  %vm1415_vm11 = vcmp.lt.s32.totalorder %v170_v35, %v1733_v0 }
 0x670   :  { %1924 = vrcp.f32 %v1423_v7 }
 0x671   :  { %v1915_v39 = vpop.eup %1914 }
 0x672   :  { %v1917_v42 = vpop.eup %1916  ;;  %v1398_v48 = vmul.f32 %v1915_v39, %v1396_v46 }
 0x673   :  { %v1385_v41 = vmul.f32 0.6931472, %v1917_v42  ;;  %v1919_v23 = vpop.eup %1918 }
 0x674   :  { %v1387_v54 = vmul.f32 0.6931472, %v1919_v23  ;;  %v1921_v50 = vpop.eup %1920 }
 0x675   :  { %v1388_v47 = vmul.f32 2.0, %v1385_v41  ;;  %v1399_v58 = vmul.f32 %v1921_v50, %v1397_v55  ;;  %v1923_v8 = vpop.eup %1922 }
 0x676   :  { %v1389_v38 = vmul.f32 2.0, %v1387_v54  ;;  %v1425_v9 = vmul.f32 %v1923_v8, %v1422_v4  ;;  %v1925_v11 = vpop.eup %1924  ;;  %vm1430_vm2 = vweird.f32 %v1923_v8 }
 0x677   :  { %v1400_v52 = vadd.f32 %v1398_v48, %v1388_v47  ;;  %v1440_v13 = vmul.f32 %v1925_v11, %v1423_v7  ;;  %vm1445_vm6 = vweird.f32 %v1925_v11 }
 0x678   :  { %v1401_v21 = vadd.f32 %v1399_v58, %v1389_v38  ;;  %v1426_v10 = vsub.f32 1.0, %v1425_v9  ;;  %vm1446_vm8 = vmor %vm1444_vm5, %vm1445_vm6 }
 0x679   :  { %v1730_v57 = vadd.f32 -1.0, %v1400_v52  ;;  %v1441_v56 = vsub.f32 1.0, %v1440_v13 }
 0x67a   :  { %v1731_v60 = vadd.f32 -1.0, %v1401_v21  ;;  %v1427_v12 = vmul.f32 %v1923_v8, %v1426_v10 }
 0x67b   :  { %v1404_v59 = vsel %vm201_vm0, %v1730_v57, 0.0  ;;  %v1442_v22 = vmul.f32 %v1925_v11, %v1441_v56 }
 0x67c   :  { %1405 = vadd.xlane.f32.xlu2 %v1404_v59  ;;  %v1407_v44 = vsel %vm201_vm0, %v1731_v60, 0.0  ;;  %vm1429_vm0 = vweird.f32 %v1422_v4  ;;  %v1428_v15 = vadd.f32 %v1923_v8, %v1427_v12 }
 0x67d   :  { %vm1431_vm3 = vmor %vm1429_vm0, %vm1430_vm2  ;;  %v1443_v43 = vadd.f32 %v1925_v11, %v1442_v22 }
 0x67e   :  { %v1432_v20 = vsel %vm1431_vm3, %v1923_v8, %v1428_v15 }
 0x67f   :  { %v1437_v2 = vsel %vm1434_vm4, %v1436_v19, %v1432_v20  ;;  %v1447_v33 = vsel %vm1446_vm8, %v1925_v11, %v1443_v43 }
 0x680   :  { %v1452_v53 = vsel %vm1449_vm10, %v1451_v31, %v1447_v33 }
 0x684   :  { %1408 = vadd.xlane.f32.xlu2 %v1407_v44 }
 0x6ef   :  { %v1406_v26 = vpop.xlane.xlu2 %1405 }
 0x6f0   :  { %v1410_v28 = vadd.f32 %v1406_v26, %v1366_v24 }
 0x6f2   :  { %v1438_v51 = vmul.f32 %v1437_v2, %v1410_v28 }
 0x6f4   :  { %v1454_v32 = vsel %vm1414_vm7, %v1438_v51, 0.0 }
 0x6f5   :  { %1457 = vst.msk [vmem:[%s2475_s13] sm:$0xff] %vm1456_vm9, %v1454_v32 }
 0x6f7   :  { %v1409_v37 = vpop.xlane.xlu2 %1408 }
 0x6f8   :  { %v1411_v39 = vadd.f32 %v1409_v37, %v1367_v1 }
 0x6fa   :  { %v1453_v40 = vmul.f32 %v1452_v53, %v1411_v39 }
 0x6fc   :  { %v1455_v42 = vsel %vm1415_vm11, %v1453_v40, 0.0 }
 0x6fd   :  { %1458 = vst.msk [vmem:[%s2475_s13 + $0x8] sm:$0xff] %vm1456_vm9, %v1455_v42 }
 0x6fe   :  { %1467 = vsyncpa [#allocation3], 1 }
 0x6ff   :  { %1468 = vsyncpa [#allocation5], 1 }
 0x700   :  { %1469 = vsyncpa [#allocation8], 1 }
 0x701   :  { %1470 = vsyncpa [#allocation11], 1 }
 0x702   :  { %1471 = vsyncpa [#allocation14], 1 }

</bundles_post_ra>
